<compile_context>
chip_gen: v7x
topology: tpu7x:2x2x1
jax: 0.10.0
libtpu: 0.0.40
codegen_flags: <defaults>
</compile_context>

<pallas_src>
import functools

import numpy as np
import jax
import jax.numpy as jnp
from jax import lax
from jax.experimental import pallas as pl
from jax.experimental.pallas import tpu as pltpu

_INT_MIN = np.int32(-2 ** 31)   # 0x80000000
_DEC_GT = np.int32(-2 ** 30)    # 0xC0000000: top two key bits pre-decided for valid gt


def _order_key(x):
    """f32 -> int32 whose raw bit pattern (read MSB-first) preserves float order."""
    bits = pltpu.bitcast(x, jnp.int32)
    return jnp.where(bits >= 0, bits ^ _INT_MIN, ~bits)


def _key_to_float(key):
    """Element-wise inverse of _order_key."""
    bits = jnp.where(key < 0, key ^ _INT_MIN, ~key)
    return pltpu.bitcast(bits, jnp.float32)


def _hdn_kernel(pred_ref, gt_ref, out_ref,
                cnt_sm, kk_sm, pfx_sm, dec_sm, dig_sm, s_sm,
                *, num_bins, num_tiles, edges):
    """Phased kernel over grid (pass, tile).

    pass 0      : per-bin element counts
    pass 1..16  : radix-4 (2 bits / pass) median select; state in SMEM scalars
    pass 17     : per-bin sum |x - median| for gt and pred
    pass 18     : fused loss accumulation into out_ref
    """
    p = pl.program_id(0)
    t = pl.program_id(1)
    first_tile = t == 0
    last_tile = t == num_tiles - 1
    n_radix = 16

    gt = gt_ref[...]
    pred = pred_ref[...]

    # Per-bin membership masks (recomputed per tile; never resident across passes).
    masks = []
    for b in range(num_bins):
        lo, hi = edges[b], edges[b + 1]
        if b == 0:
            masks.append((gt > 0.0) & (gt < hi))      # validity mask folds into bin 0
        else:
            masks.append((gt >= lo) & (gt < hi))

    # ------------------------- pass 0: per-bin counts -------------------------
    @pl.when(p == 0)
    def _():
        @pl.when(first_tile)
        def _():
            for b in range(num_bins):
                cnt_sm[b] = jnp.int32(0)

        for b in range(num_bins):
            cnt_sm[b] += jnp.sum(masks[b], dtype=jnp.int32)

        @pl.when(last_tile)
        def _():
            for b in range(num_bins):
                c = cnt_sm[b]
                kk = jnp.maximum((c - 1) >> 1, 0)       # torch-style lower median rank
                kk_sm[b] = kk
                kk_sm[num_bins + b] = kk
                pfx_sm[b] = jnp.int32(_INT_MIN)         # valid gt keys: bit31=1, bit30=0
                pfx_sm[num_bins + b] = jnp.int32(0)
            dec_sm[0] = jnp.int32(_DEC_GT)              # gt group: 2 bits pre-decided
            dec_sm[1] = jnp.int32(0)                    # pred group: nothing decided

    # --------------------- passes 1..16: radix-4 select -----------------------
    @pl.when((p >= 1) & (p <= n_radix))
    def _():
        shift = 32 - 2 * p                              # in [0, 30] inside this branch
        bit_lo = lax.shift_left(jnp.int32(1), shift)
        bit_hi = lax.shift_left(jnp.int32(1), shift + 1)
        gt_active = p >= 2                              # gt chains skip pass 1

        @pl.when(first_tile)
        def _():
            for i in range(6 * num_bins):
                dig_sm[i] = jnp.int32(0)

        def accumulate(x, group):
            key = _order_key(x)
            dec = dec_sm[group]
            lo0 = (key & bit_lo) == 0
            hi0 = (key & bit_hi) == 0
            digit_is = (hi0 & lo0, hi0 & (~lo0), (~hi0) & lo0)   # digits 0,1,2
            for b in range(num_bins):
                c = group * num_bins + b
                cand = masks[b] & ((key & dec) == pfx_sm[c])     # prefix test, no carried masks
                for d in range(3):
                    dig_sm[3 * c + d] += jnp.sum(cand & digit_is[d], dtype=jnp.int32)

        @pl.when(gt_active)
        def _():
            accumulate(gt, 0)

        accumulate(pred, 1)

        @pl.when(last_tile)
        def _():
            for group in range(2):
                for b in range(num_bins):
                    c = group * num_bins + b
                    c0 = dig_sm[3 * c + 0]
                    c1 = dig_sm[3 * c + 1]
                    c2 = dig_sm[3 * c + 2]
                    kk = kk_sm[c]
                    ge1 = kk >= c0
                    ge2 = kk >= c0 + c1
                    ge3 = kk >= c0 + c1 + c2
                    d = (ge1.astype(jnp.int32) + ge2.astype(jnp.int32)
                         + ge3.astype(jnp.int32))
                    kk_new = (kk - jnp.where(ge1, c0, 0)
                                 - jnp.where(ge2, c1, 0)
                                 - jnp.where(ge3, c2, 0))
                    pfx_new = pfx_sm[c] | lax.shift_left(d, shift)
                    if group == 0:
                        kk_sm[c] = jnp.where(gt_active, kk_new, kk)
                        pfx_sm[c] = jnp.where(gt_active, pfx_new, pfx_sm[c])
                    else:
                        kk_sm[c] = kk_new
                        pfx_sm[c] = pfx_new
            dec_new0 = dec_sm[0] | bit_lo | bit_hi
            dec_sm[0] = jnp.where(gt_active, dec_new0, dec_sm[0])
            dec_sm[1] = dec_sm[1] | bit_lo | bit_hi

    # After pass 16, pfx_sm[c] is the exact 32-bit key of chain c's median.

    # ------------------ pass 17: per-bin sum |x - median| ----------------------
    @pl.when(p == n_radix + 1)
    def _():
        @pl.when(first_tile)
        def _():
            for c in range(2 * num_bins):
                s_sm[c] = jnp.float32(0.0)

        kmg = jnp.full(gt.shape, _INT_MIN, jnp.int32)   # default key -> 0.0
        kmp = jnp.full(gt.shape, _INT_MIN, jnp.int32)
        for b in range(num_bins):
            kmg = jnp.where(masks[b], pfx_sm[b], kmg)
            kmp = jnp.where(masks[b], pfx_sm[num_bins + b], kmp)
        dev_gt = jnp.abs(gt - _key_to_float(kmg))
        dev_pr = jnp.abs(pred - _key_to_float(kmp))
        for b in range(num_bins):
            s_sm[b] += jnp.sum(jnp.where(masks[b], dev_gt, 0.0))
            s_sm[num_bins + b] += jnp.sum(jnp.where(masks[b], dev_pr, 0.0))

    # ------------------------- pass 18: fused loss -----------------------------
    @pl.when(p == n_radix + 2)
    def _():
        @pl.when(first_tile)
        def _():
            out_ref[...] = jnp.zeros_like(out_ref)

        kmg = jnp.full(gt.shape, _INT_MIN, jnp.int32)
        kmp = jnp.full(gt.shape, _INT_MIN, jnp.int32)
        a_e = jnp.zeros(gt.shape, jnp.float32)          # 1/(s_pred + eps) per element
        b_e = jnp.zeros(gt.shape, jnp.float32)          # 1/(s_gt   + eps) per element
        w_e = jnp.zeros(gt.shape, jnp.float32)          # 1/(cnt * num_bins) per element
        for b in range(num_bins):
            cnt = cnt_sm[b]
            has = cnt > 0
            inv_cnt = jnp.where(has, 1.0 / cnt.astype(jnp.float32), 0.0)
            s_gt_b = s_sm[b] * inv_cnt
            s_pr_b = s_sm[num_bins + b] * inv_cnt
            ia = jnp.where(has, 1.0 / (s_pr_b + 1e-6), 0.0)
            ib = jnp.where(has, 1.0 / (s_gt_b + 1e-6), 0.0)
            wb = inv_cnt * (1.0 / num_bins)
            kmg = jnp.where(masks[b], pfx_sm[b], kmg)
            kmp = jnp.where(masks[b], pfx_sm[num_bins + b], kmp)
            a_e = jnp.where(masks[b], ia, a_e)
            b_e = jnp.where(masks[b], ib, b_e)
            w_e = jnp.where(masks[b], wb, w_e)
        med_gt_e = _key_to_float(kmg)
        med_pr_e = _key_to_float(kmp)
        diff = (pred - med_pr_e) * a_e - (gt - med_gt_e) * b_e
        # TODO(synk): PyTorch raises on an empty bin (median of an empty tensor);
        # here an empty bin simply contributes 0 (its weight w is 0).
        contrib = jnp.sum(jnp.where(w_e > 0.0, w_e * jnp.abs(diff), 0.0))
        out_ref[...] = out_ref[...] + contrib


@functools.partial(jax.jit, static_argnums=2)
def hdn_loss(pred_depth, gt_depth, num_bins):
    num_bins = int(num_bins)
    pred = jnp.asarray(pred_depth, jnp.float32).reshape(-1)
    gt = jnp.asarray(gt_depth, jnp.float32).reshape(-1)
    n = pred.shape[0]

    lane = 128
    rows = -(-n // lane)
    rows8 = ((rows + 7) // 8) * 8
    tile_r = 512 if rows8 >= 512 else rows8           # 512x128 f32 = 256 KB / block
    rows_pad = ((rows8 + tile_r - 1) // tile_r) * tile_r
    pad = rows_pad * lane - n
    if pad:
        pred = jnp.pad(pred, (0, pad))
        gt = jnp.pad(gt, (0, pad))                     # padded gt == 0 -> fails gt > 0
    pred2 = pred.reshape(rows_pad, lane)
    gt2 = gt.reshape(rows_pad, lane)
    num_tiles = rows_pad // tile_r

    edges = tuple(float(e) for e in np.linspace(0.0, 1.0, num_bins + 1))
    num_passes = 1 + 16 + 2                            # counts + radix-4 + 2 epilogue passes

    kernel = functools.partial(_hdn_kernel, num_bins=num_bins,
                               num_tiles=num_tiles, edges=edges)

    # Per-block footprint is tiny (a few double-buffered (tile_r,128) tiles), so a
    # modest limit is legal on every generation (v7x per-core VMEM is only 64 MiB).
    block_bytes = tile_r * lane * 4
    vmem_limit = int(min(48 * 1024 * 1024, max(16 * 1024 * 1024, 24 * block_bytes)))

    out = pl.pallas_call(
        kernel,
        out_shape=jax.ShapeDtypeStruct((1, lane), jnp.float32),
        grid_spec=pltpu.PrefetchScalarGridSpec(
            num_scalar_prefetch=0,
            grid=(num_passes, num_tiles),
            in_specs=[
                pl.BlockSpec((tile_r, lane), lambda p, t: (t, 0)),
                pl.BlockSpec((tile_r, lane), lambda p, t: (t, 0)),
            ],
            out_specs=pl.BlockSpec((1, lane), lambda p, t: (0, 0)),
            scratch_shapes=[
                pltpu.SMEM((num_bins,), jnp.int32),        # cnt_sm : per-bin counts
                pltpu.SMEM((2 * num_bins,), jnp.int32),    # kk_sm  : remaining median ranks
                pltpu.SMEM((2 * num_bins,), jnp.int32),    # pfx_sm : decided key prefixes
                pltpu.SMEM((2,), jnp.int32),               # dec_sm : decided-bit masks (gt, pred)
                pltpu.SMEM((6 * num_bins,), jnp.int32),    # dig_sm : per-pass digit counts
                pltpu.SMEM((2 * num_bins,), jnp.float32),  # s_sm   : per-bin sum |x - median|
            ],
        ),
        compiler_params=pltpu.CompilerParams(
            dimension_semantics=("arbitrary", "arbitrary"),
            vmem_limit_bytes=vmem_limit,
        ),
    )(pred2, gt2)
    return out[0, 0]


def hdn_loss_ref(pred, gt, num_bins):
    """Pure numpy reference reproducing the PyTorch forward."""
    pred = np.asarray(pred, np.float64).ravel()
    gt = np.asarray(gt, np.float64).ravel()
    m = gt > 0
    pred, gt = pred[m], gt[m]
    bins = np.linspace(0.0, 1.0, num_bins + 1)

    def norm(v):
        med = np.sort(v)[(v.size - 1) // 2]            # torch lower median
        s = np.mean(np.abs(v - med))
        return (v - med) / (s + 1e-6)

    total = 0.0
    for i in range(num_bins):
        idx = (gt >= bins[i]) & (gt < bins[i + 1])
        total += np.mean(np.abs(norm(pred[idx]) - norm(gt[idx])))
    return total / num_bins


if __name__ == "__main__":
    key = jax.random.PRNGKey(0)
    k1, k2 = jax.random.split(key)
    shape = (2, 4, 16, 16)
    gt = jax.random.uniform(k1, shape, jnp.float32, minval=0.01, maxval=0.99)
    pred = gt + 0.05 * jax.random.normal(k2, shape, jnp.float32)
    num_bins = 4

    loss = hdn_loss(pred, gt, num_bins)
    loss = jax.block_until_ready(loss)

    ref = hdn_loss_ref(np.asarray(pred), np.asarray(gt), num_bins)
    assert np.isfinite(float(loss))
    np.testing.assert_allclose(float(loss), float(ref), rtol=5e-3, atol=1e-4)
    print("KERNEL_OK")
</pallas_src>

<mosaic_0001>
module attributes {stable_mosaic.version = 11 : i64} {
  func.func @_hdn_kernel(%arg0: i32, %arg1: i32, %arg2: memref<16x128xf32, #tpu.memory_space<vmem>>, %arg3: memref<16x128xf32, #tpu.memory_space<vmem>>, %arg4: memref<1x128xf32, #tpu.memory_space<vmem>>, %arg5: memref<4xi32, #tpu.memory_space<smem>>, %arg6: memref<8xi32, #tpu.memory_space<smem>>, %arg7: memref<8xi32, #tpu.memory_space<smem>>, %arg8: memref<2xi32, #tpu.memory_space<smem>>, %arg9: memref<24xi32, #tpu.memory_space<smem>>, %arg10: memref<8xf32, #tpu.memory_space<smem>>) attributes {dimension_semantics = [#tpu.dimension_semantics<arbitrary>, #tpu.dimension_semantics<arbitrary>], iteration_bounds = array<i64: 19, 1>, scalar_prefetch = 0 : i64, scratch_operands = 6 : i64, tpu.core_type = #tpu.core_type<tc>, window_params = [{transform_indices = @transform_0, window_bounds = array<i64: 16, 128>}, {transform_indices = @transform_1, window_bounds = array<i64: 16, 128>}, {pipeline_mode = #tpu.pipeline_mode<synchronous>, transform_indices = @transform_2, window_bounds = array<i64: 1, 128>}]} {
    %c0_i32 = arith.constant 0 : i32
    %0 = arith.cmpi eq, %arg1, %c0_i32 : i32
    %c0_i32_0 = arith.constant 0 : i32
    %1 = arith.cmpi eq, %arg1, %c0_i32_0 : i32
    %c0 = arith.constant 0 : index
    %c0_1 = arith.constant 0 : index
    %2 = vector.load %arg3[%c0, %c0_1] : memref<16x128xf32, #tpu.memory_space<vmem>>, vector<16x128xf32>
    %c0_2 = arith.constant 0 : index
    %c0_3 = arith.constant 0 : index
    %3 = vector.load %arg2[%c0_2, %c0_3] : memref<16x128xf32, #tpu.memory_space<vmem>>, vector<16x128xf32>
    %cst = arith.constant 0.000000e+00 : f32
    %4 = vector.broadcast %cst : f32 to vector<16x128xf32>
    %5 = arith.cmpf ogt, %2, %4 : vector<16x128xf32>
    %cst_4 = arith.constant 2.500000e-01 : f32
    %6 = vector.broadcast %cst_4 : f32 to vector<16x128xf32>
    %7 = arith.cmpf olt, %2, %6 : vector<16x128xf32>
    %8 = arith.andi %5, %7 : vector<16x128xi1>
    %cst_5 = arith.constant 2.500000e-01 : f32
    %9 = vector.broadcast %cst_5 : f32 to vector<16x128xf32>
    %10 = arith.cmpf oge, %2, %9 : vector<16x128xf32>
    %cst_6 = arith.constant 5.000000e-01 : f32
    %11 = vector.broadcast %cst_6 : f32 to vector<16x128xf32>
    %12 = arith.cmpf olt, %2, %11 : vector<16x128xf32>
    %13 = arith.andi %10, %12 : vector<16x128xi1>
    %cst_7 = arith.constant 5.000000e-01 : f32
    %14 = vector.broadcast %cst_7 : f32 to vector<16x128xf32>
    %15 = arith.cmpf oge, %2, %14 : vector<16x128xf32>
    %cst_8 = arith.constant 7.500000e-01 : f32
    %16 = vector.broadcast %cst_8 : f32 to vector<16x128xf32>
    %17 = arith.cmpf olt, %2, %16 : vector<16x128xf32>
    %18 = arith.andi %15, %17 : vector<16x128xi1>
    %cst_9 = arith.constant 7.500000e-01 : f32
    %19 = vector.broadcast %cst_9 : f32 to vector<16x128xf32>
    %20 = arith.cmpf oge, %2, %19 : vector<16x128xf32>
    %cst_10 = arith.constant 1.000000e+00 : f32
    %21 = vector.broadcast %cst_10 : f32 to vector<16x128xf32>
    %22 = arith.cmpf olt, %2, %21 : vector<16x128xf32>
    %23 = arith.andi %20, %22 : vector<16x128xi1>
    %c0_i32_11 = arith.constant 0 : i32
    %24 = arith.cmpi eq, %arg0, %c0_i32_11 : i32
    %25 = arith.extui %24 : i1 to i32
    %c0_i32_12 = arith.constant 0 : i32
    %26 = arith.cmpi ne, %25, %c0_i32_12 : i32
    scf.if %26 {
      %38 = arith.extui %0 : i1 to i32
      %c0_i32_16 = arith.constant 0 : i32
      %39 = arith.cmpi ne, %38, %c0_i32_16 : i32
      scf.if %39 {
        %c0_i32_27 = arith.constant 0 : i32
        %c0_28 = arith.constant 0 : index
        %74 = memref.load %arg5[%c0_28] : memref<4xi32, #tpu.memory_space<smem>>
        memref.store %c0_i32_27, %arg5[%c0_28] : memref<4xi32, #tpu.memory_space<smem>>
        %c0_i32_29 = arith.constant 0 : i32
        %c1_30 = arith.constant 1 : index
        %75 = memref.load %arg5[%c1_30] : memref<4xi32, #tpu.memory_space<smem>>
        memref.store %c0_i32_29, %arg5[%c1_30] : memref<4xi32, #tpu.memory_space<smem>>
        %c0_i32_31 = arith.constant 0 : i32
        %c2_32 = arith.constant 2 : index
        %76 = memref.load %arg5[%c2_32] : memref<4xi32, #tpu.memory_space<smem>>
        memref.store %c0_i32_31, %arg5[%c2_32] : memref<4xi32, #tpu.memory_space<smem>>
        %c0_i32_33 = arith.constant 0 : i32
        %c3_34 = arith.constant 3 : index
        %77 = memref.load %arg5[%c3_34] : memref<4xi32, #tpu.memory_space<smem>>
        memref.store %c0_i32_33, %arg5[%c3_34] : memref<4xi32, #tpu.memory_space<smem>>
      } else {
      }
      %c0_17 = arith.constant 0 : index
      %40 = memref.load %arg5[%c0_17] : memref<4xi32, #tpu.memory_space<smem>>
      %41 = arith.extui %8 : vector<16x128xi1> to vector<16x128xi32>
      %42 = vector.shape_cast %41 : vector<16x128xi32> to vector<1x16x128xi32>
      %cst_18 = arith.constant dense<0> : vector<1xi32>
      %43 = vector.multi_reduction <add>, %42, %cst_18 [1, 2] : vector<1x16x128xi32> to vector<1xi32>
      %44 = vector.shape_cast %43 : vector<1xi32> to vector<1x1x1xi32>
      %45 = vector.extract %44[0, 0, 0] : i32 from vector<1x1x1xi32>
      %46 = arith.addi %40, %45 : i32
      %c0_19 = arith.constant 0 : index
      %47 = memref.load %arg5[%c0_19] : memref<4xi32, #tpu.memory_space<smem>>
      memref.store %46, %arg5[%c0_19] : memref<4xi32, #tpu.memory_space<smem>>
      %c1 = arith.constant 1 : index
      %48 = memref.load %arg5[%c1] : memref<4xi32, #tpu.memory_space<smem>>
      %49 = arith.extui %13 : vector<16x128xi1> to vector<16x128xi32>
      %50 = vector.shape_cast %49 : vector<16x128xi32> to vector<1x16x128xi32>
      %cst_20 = arith.constant dense<0> : vector<1xi32>
      %51 = vector.multi_reduction <add>, %50, %cst_20 [1, 2] : vector<1x16x128xi32> to vector<1xi32>
      %52 = vector.shape_cast %51 : vector<1xi32> to vector<1x1x1xi32>
      %53 = vector.extract %52[0, 0, 0] : i32 from vector<1x1x1xi32>
      %54 = arith.addi %48, %53 : i32
      %c1_21 = arith.constant 1 : index
      %55 = memref.load %arg5[%c1_21] : memref<4xi32, #tpu.memory_space<smem>>
      memref.store %54, %arg5[%c1_21] : memref<4xi32, #tpu.memory_space<smem>>
      %c2 = arith.constant 2 : index
      %56 = memref.load %arg5[%c2] : memref<4xi32, #tpu.memory_space<smem>>
      %57 = arith.extui %18 : vector<16x128xi1> to vector<16x128xi32>
      %58 = vector.shape_cast %57 : vector<16x128xi32> to vector<1x16x128xi32>
      %cst_22 = arith.constant dense<0> : vector<1xi32>
      %59 = vector.multi_reduction <add>, %58, %cst_22 [1, 2] : vector<1x16x128xi32> to vector<1xi32>
      %60 = vector.shape_cast %59 : vector<1xi32> to vector<1x1x1xi32>
      %61 = vector.extract %60[0, 0, 0] : i32 from vector<1x1x1xi32>
      %62 = arith.addi %56, %61 : i32
      %c2_23 = arith.constant 2 : index
      %63 = memref.load %arg5[%c2_23] : memref<4xi32, #tpu.memory_space<smem>>
      memref.store %62, %arg5[%c2_23] : memref<4xi32, #tpu.memory_space<smem>>
      %c3 = arith.constant 3 : index
      %64 = memref.load %arg5[%c3] : memref<4xi32, #tpu.memory_space<smem>>
      %65 = arith.extui %23 : vector<16x128xi1> to vector<16x128xi32>
      %66 = vector.shape_cast %65 : vector<16x128xi32> to vector<1x16x128xi32>
      %cst_24 = arith.constant dense<0> : vector<1xi32>
      %67 = vector.multi_reduction <add>, %66, %cst_24 [1, 2] : vector<1x16x128xi32> to vector<1xi32>
      %68 = vector.shape_cast %67 : vector<1xi32> to vector<1x1x1xi32>
      %69 = vector.extract %68[0, 0, 0] : i32 from vector<1x1x1xi32>
      %70 = arith.addi %64, %69 : i32
      %c3_25 = arith.constant 3 : index
      %71 = memref.load %arg5[%c3_25] : memref<4xi32, #tpu.memory_space<smem>>
      memref.store %70, %arg5[%c3_25] : memref<4xi32, #tpu.memory_space<smem>>
      %72 = arith.extui %1 : i1 to i32
      %c0_i32_26 = arith.constant 0 : i32
      %73 = arith.cmpi ne, %72, %c0_i32_26 : i32
      scf.if %73 {
        %c0_27 = arith.constant 0 : index
        %74 = memref.load %arg5[%c0_27] : memref<4xi32, #tpu.memory_space<smem>>
        %c1_i32_28 = arith.constant 1 : i32
        %75 = arith.subi %74, %c1_i32_28 : i32
        %c1_i32_29 = arith.constant 1 : i32
        %76 = arith.shrsi %75, %c1_i32_29 : i32
        %c0_i32_30 = arith.constant 0 : i32
        %77 = arith.maxsi %76, %c0_i32_30 : i32
        %c0_31 = arith.constant 0 : index
        %78 = memref.load %arg6[%c0_31] : memref<8xi32, #tpu.memory_space<smem>>
        memref.store %77, %arg6[%c0_31] : memref<8xi32, #tpu.memory_space<smem>>
        %c4 = arith.constant 4 : index
        %79 = memref.load %arg6[%c4] : memref<8xi32, #tpu.memory_space<smem>>
        memref.store %77, %arg6[%c4] : memref<8xi32, #tpu.memory_space<smem>>
        %c-2147483648_i32 = arith.constant -2147483648 : i32
        %c0_32 = arith.constant 0 : index
        %80 = memref.load %arg7[%c0_32] : memref<8xi32, #tpu.memory_space<smem>>
        memref.store %c-2147483648_i32, %arg7[%c0_32] : memref<8xi32, #tpu.memory_space<smem>>
        %c0_i32_33 = arith.constant 0 : i32
        %c4_34 = arith.constant 4 : index
        %81 = memref.load %arg7[%c4_34] : memref<8xi32, #tpu.memory_space<smem>>
        memref.store %c0_i32_33, %arg7[%c4_34] : memref<8xi32, #tpu.memory_space<smem>>
        %c1_35 = arith.constant 1 : index
        %82 = memref.load %arg5[%c1_35] : memref<4xi32, #tpu.memory_space<smem>>
        %c1_i32_36 = arith.constant 1 : i32
        %83 = arith.subi %82, %c1_i32_36 : i32
        %c1_i32_37 = arith.constant 1 : i32
        %84 = arith.shrsi %83, %c1_i32_37 : i32
        %c0_i32_38 = arith.constant 0 : i32
        %85 = arith.maxsi %84, %c0_i32_38 : i32
        %c1_39 = arith.constant 1 : index
        %86 = memref.load %arg6[%c1_39] : memref<8xi32, #tpu.memory_space<smem>>
        memref.store %85, %arg6[%c1_39] : memref<8xi32, #tpu.memory_space<smem>>
        %c5 = arith.constant 5 : index
        %87 = memref.load %arg6[%c5] : memref<8xi32, #tpu.memory_space<smem>>
        memref.store %85, %arg6[%c5] : memref<8xi32, #tpu.memory_space<smem>>
        %c-2147483648_i32_40 = arith.constant -2147483648 : i32
        %c1_41 = arith.constant 1 : index
        %88 = memref.load %arg7[%c1_41] : memref<8xi32, #tpu.memory_space<smem>>
        memref.store %c-2147483648_i32_40, %arg7[%c1_41] : memref<8xi32, #tpu.memory_space<smem>>
        %c0_i32_42 = arith.constant 0 : i32
        %c5_43 = arith.constant 5 : index
        %89 = memref.load %arg7[%c5_43] : memref<8xi32, #tpu.memory_space<smem>>
        memref.store %c0_i32_42, %arg7[%c5_43] : memref<8xi32, #tpu.memory_space<smem>>
        %c2_44 = arith.constant 2 : index
        %90 = memref.load %arg5[%c2_44] : memref<4xi32, #tpu.memory_space<smem>>
        %c1_i32_45 = arith.constant 1 : i32
        %91 = arith.subi %90, %c1_i32_45 : i32
        %c1_i32_46 = arith.constant 1 : i32
        %92 = arith.shrsi %91, %c1_i32_46 : i32
        %c0_i32_47 = arith.constant 0 : i32
        %93 = arith.maxsi %92, %c0_i32_47 : i32
        %c2_48 = arith.constant 2 : index
        %94 = memref.load %arg6[%c2_48] : memref<8xi32, #tpu.memory_space<smem>>
        memref.store %93, %arg6[%c2_48] : memref<8xi32, #tpu.memory_space<smem>>
        %c6 = arith.constant 6 : index
        %95 = memref.load %arg6[%c6] : memref<8xi32, #tpu.memory_space<smem>>
        memref.store %93, %arg6[%c6] : memref<8xi32, #tpu.memory_space<smem>>
        %c-2147483648_i32_49 = arith.constant -2147483648 : i32
        %c2_50 = arith.constant 2 : index
        %96 = memref.load %arg7[%c2_50] : memref<8xi32, #tpu.memory_space<smem>>
        memref.store %c-2147483648_i32_49, %arg7[%c2_50] : memref<8xi32, #tpu.memory_space<smem>>
        %c0_i32_51 = arith.constant 0 : i32
        %c6_52 = arith.constant 6 : index
        %97 = memref.load %arg7[%c6_52] : memref<8xi32, #tpu.memory_space<smem>>
        memref.store %c0_i32_51, %arg7[%c6_52] : memref<8xi32, #tpu.memory_space<smem>>
        %c3_53 = arith.constant 3 : index
        %98 = memref.load %arg5[%c3_53] : memref<4xi32, #tpu.memory_space<smem>>
        %c1_i32_54 = arith.constant 1 : i32
        %99 = arith.subi %98, %c1_i32_54 : i32
        %c1_i32_55 = arith.constant 1 : i32
        %100 = arith.shrsi %99, %c1_i32_55 : i32
        %c0_i32_56 = arith.constant 0 : i32
        %101 = arith.maxsi %100, %c0_i32_56 : i32
        %c3_57 = arith.constant 3 : index
        %102 = memref.load %arg6[%c3_57] : memref<8xi32, #tpu.memory_space<smem>>
        memref.store %101, %arg6[%c3_57] : memref<8xi32, #tpu.memory_space<smem>>
        %c7 = arith.constant 7 : index
        %103 = memref.load %arg6[%c7] : memref<8xi32, #tpu.memory_space<smem>>
        memref.store %101, %arg6[%c7] : memref<8xi32, #tpu.memory_space<smem>>
        %c-2147483648_i32_58 = arith.constant -2147483648 : i32
        %c3_59 = arith.constant 3 : index
        %104 = memref.load %arg7[%c3_59] : memref<8xi32, #tpu.memory_space<smem>>
        memref.store %c-2147483648_i32_58, %arg7[%c3_59] : memref<8xi32, #tpu.memory_space<smem>>
        %c0_i32_60 = arith.constant 0 : i32
        %c7_61 = arith.constant 7 : index
        %105 = memref.load %arg7[%c7_61] : memref<8xi32, #tpu.memory_space<smem>>
        memref.store %c0_i32_60, %arg7[%c7_61] : memref<8xi32, #tpu.memory_space<smem>>
        %c-1073741824_i32 = arith.constant -1073741824 : i32
        %c0_62 = arith.constant 0 : index
        %106 = memref.load %arg8[%c0_62] : memref<2xi32, #tpu.memory_space<smem>>
        memref.store %c-1073741824_i32, %arg8[%c0_62] : memref<2xi32, #tpu.memory_space<smem>>
        %c0_i32_63 = arith.constant 0 : i32
        %c1_64 = arith.constant 1 : index
        %107 = memref.load %arg8[%c1_64] : memref<2xi32, #tpu.memory_space<smem>>
        memref.store %c0_i32_63, %arg8[%c1_64] : memref<2xi32, #tpu.memory_space<smem>>
      } else {
      }
    } else {
    }
    %c1_i32 = arith.constant 1 : i32
    %27 = arith.cmpi sge, %arg0, %c1_i32 : i32
    %c16_i32 = arith.constant 16 : i32
    %28 = arith.cmpi sle, %arg0, %c16_i32 : i32
    %29 = arith.andi %27, %28 : i1
    %30 = arith.extui %29 : i1 to i32
    %c0_i32_13 = arith.constant 0 : i32
    %31 = arith.cmpi ne, %30, %c0_i32_13 : i32
    scf.if %31 {
      %c2_i32 = arith.constant 2 : i32
      %38 = arith.muli %c2_i32, %arg0 : i32
      %c32_i32 = arith.constant 32 : i32
      %39 = arith.subi %c32_i32, %38 : i32
      %c1_i32_16 = arith.constant 1 : i32
      %40 = arith.shli %c1_i32_16, %39 : i32
      %c1_i32_17 = arith.constant 1 : i32
      %41 = arith.addi %39, %c1_i32_17 : i32
      %c1_i32_18 = arith.constant 1 : i32
      %42 = arith.shli %c1_i32_18, %41 : i32
      %c2_i32_19 = arith.constant 2 : i32
      %43 = arith.cmpi sge, %arg0, %c2_i32_19 : i32
      %44 = arith.extui %0 : i1 to i32
      %c0_i32_20 = arith.constant 0 : i32
      %45 = arith.cmpi ne, %44, %c0_i32_20 : i32
      scf.if %45 {
        %c0_i32_53 = arith.constant 0 : i32
        %c0_54 = arith.constant 0 : index
        %203 = memref.load %arg9[%c0_54] : memref<24xi32, #tpu.memory_space<smem>>
        memref.store %c0_i32_53, %arg9[%c0_54] : memref<24xi32, #tpu.memory_space<smem>>
        %c0_i32_55 = arith.constant 0 : i32
        %c1_56 = arith.constant 1 : index
        %204 = memref.load %arg9[%c1_56] : memref<24xi32, #tpu.memory_space<smem>>
        memref.store %c0_i32_55, %arg9[%c1_56] : memref<24xi32, #tpu.memory_space<smem>>
        %c0_i32_57 = arith.constant 0 : i32
        %c2 = arith.constant 2 : index
        %205 = memref.load %arg9[%c2] : memref<24xi32, #tpu.memory_space<smem>>
        memref.store %c0_i32_57, %arg9[%c2] : memref<24xi32, #tpu.memory_space<smem>>
        %c0_i32_58 = arith.constant 0 : i32
        %c3 = arith.constant 3 : index
        %206 = memref.load %arg9[%c3] : memref<24xi32, #tpu.memory_space<smem>>
        memref.store %c0_i32_58, %arg9[%c3] : memref<24xi32, #tpu.memory_space<smem>>
        %c0_i32_59 = arith.constant 0 : i32
        %c4_60 = arith.constant 4 : index
        %207 = memref.load %arg9[%c4_60] : memref<24xi32, #tpu.memory_space<smem>>
        memref.store %c0_i32_59, %arg9[%c4_60] : memref<24xi32, #tpu.memory_space<smem>>
        %c0_i32_61 = arith.constant 0 : i32
        %c5_62 = arith.constant 5 : index
        %208 = memref.load %arg9[%c5_62] : memref<24xi32, #tpu.memory_space<smem>>
        memref.store %c0_i32_61, %arg9[%c5_62] : memref<24xi32, #tpu.memory_space<smem>>
        %c0_i32_63 = arith.constant 0 : i32
        %c6_64 = arith.constant 6 : index
        %209 = memref.load %arg9[%c6_64] : memref<24xi32, #tpu.memory_space<smem>>
        memref.store %c0_i32_63, %arg9[%c6_64] : memref<24xi32, #tpu.memory_space<smem>>
        %c0_i32_65 = arith.constant 0 : i32
        %c7_66 = arith.constant 7 : index
        %210 = memref.load %arg9[%c7_66] : memref<24xi32, #tpu.memory_space<smem>>
        memref.store %c0_i32_65, %arg9[%c7_66] : memref<24xi32, #tpu.memory_space<smem>>
        %c0_i32_67 = arith.constant 0 : i32
        %c8 = arith.constant 8 : index
        %211 = memref.load %arg9[%c8] : memref<24xi32, #tpu.memory_space<smem>>
        memref.store %c0_i32_67, %arg9[%c8] : memref<24xi32, #tpu.memory_space<smem>>
        %c0_i32_68 = arith.constant 0 : i32
        %c9 = arith.constant 9 : index
        %212 = memref.load %arg9[%c9] : memref<24xi32, #tpu.memory_space<smem>>
        memref.store %c0_i32_68, %arg9[%c9] : memref<24xi32, #tpu.memory_space<smem>>
        %c0_i32_69 = arith.constant 0 : i32
        %c10 = arith.constant 10 : index
        %213 = memref.load %arg9[%c10] : memref<24xi32, #tpu.memory_space<smem>>
        memref.store %c0_i32_69, %arg9[%c10] : memref<24xi32, #tpu.memory_space<smem>>
        %c0_i32_70 = arith.constant 0 : i32
        %c11 = arith.constant 11 : index
        %214 = memref.load %arg9[%c11] : memref<24xi32, #tpu.memory_space<smem>>
        memref.store %c0_i32_70, %arg9[%c11] : memref<24xi32, #tpu.memory_space<smem>>
        %c0_i32_71 = arith.constant 0 : i32
        %c12_72 = arith.constant 12 : index
        %215 = memref.load %arg9[%c12_72] : memref<24xi32, #tpu.memory_space<smem>>
        memref.store %c0_i32_71, %arg9[%c12_72] : memref<24xi32, #tpu.memory_space<smem>>
        %c0_i32_73 = arith.constant 0 : i32
        %c13_74 = arith.constant 13 : index
        %216 = memref.load %arg9[%c13_74] : memref<24xi32, #tpu.memory_space<smem>>
        memref.store %c0_i32_73, %arg9[%c13_74] : memref<24xi32, #tpu.memory_space<smem>>
        %c0_i32_75 = arith.constant 0 : i32
        %c14_76 = arith.constant 14 : index
        %217 = memref.load %arg9[%c14_76] : memref<24xi32, #tpu.memory_space<smem>>
        memref.store %c0_i32_75, %arg9[%c14_76] : memref<24xi32, #tpu.memory_space<smem>>
        %c0_i32_77 = arith.constant 0 : i32
        %c15_78 = arith.constant 15 : index
        %218 = memref.load %arg9[%c15_78] : memref<24xi32, #tpu.memory_space<smem>>
        memref.store %c0_i32_77, %arg9[%c15_78] : memref<24xi32, #tpu.memory_space<smem>>
        %c0_i32_79 = arith.constant 0 : i32
        %c16_80 = arith.constant 16 : index
        %219 = memref.load %arg9[%c16_80] : memref<24xi32, #tpu.memory_space<smem>>
        memref.store %c0_i32_79, %arg9[%c16_80] : memref<24xi32, #tpu.memory_space<smem>>
        %c0_i32_81 = arith.constant 0 : i32
        %c17_82 = arith.constant 17 : index
        %220 = memref.load %arg9[%c17_82] : memref<24xi32, #tpu.memory_space<smem>>
        memref.store %c0_i32_81, %arg9[%c17_82] : memref<24xi32, #tpu.memory_space<smem>>
        %c0_i32_83 = arith.constant 0 : i32
        %c18_84 = arith.constant 18 : index
        %221 = memref.load %arg9[%c18_84] : memref<24xi32, #tpu.memory_space<smem>>
        memref.store %c0_i32_83, %arg9[%c18_84] : memref<24xi32, #tpu.memory_space<smem>>
        %c0_i32_85 = arith.constant 0 : i32
        %c19_86 = arith.constant 19 : index
        %222 = memref.load %arg9[%c19_86] : memref<24xi32, #tpu.memory_space<smem>>
        memref.store %c0_i32_85, %arg9[%c19_86] : memref<24xi32, #tpu.memory_space<smem>>
        %c0_i32_87 = arith.constant 0 : i32
        %c20_88 = arith.constant 20 : index
        %223 = memref.load %arg9[%c20_88] : memref<24xi32, #tpu.memory_space<smem>>
        memref.store %c0_i32_87, %arg9[%c20_88] : memref<24xi32, #tpu.memory_space<smem>>
        %c0_i32_89 = arith.constant 0 : i32
        %c21_90 = arith.constant 21 : index
        %224 = memref.load %arg9[%c21_90] : memref<24xi32, #tpu.memory_space<smem>>
        memref.store %c0_i32_89, %arg9[%c21_90] : memref<24xi32, #tpu.memory_space<smem>>
        %c0_i32_91 = arith.constant 0 : i32
        %c22_92 = arith.constant 22 : index
        %225 = memref.load %arg9[%c22_92] : memref<24xi32, #tpu.memory_space<smem>>
        memref.store %c0_i32_91, %arg9[%c22_92] : memref<24xi32, #tpu.memory_space<smem>>
        %c0_i32_93 = arith.constant 0 : i32
        %c23_94 = arith.constant 23 : index
        %226 = memref.load %arg9[%c23_94] : memref<24xi32, #tpu.memory_space<smem>>
        memref.store %c0_i32_93, %arg9[%c23_94] : memref<24xi32, #tpu.memory_space<smem>>
      } else {
      }
      %46 = arith.extui %43 : i1 to i32
      %c0_i32_21 = arith.constant 0 : i32
      %47 = arith.cmpi ne, %46, %c0_i32_21 : i32
      scf.if %47 {
        %203 = tpu.bitcast %2 : vector<16x128xf32> -> vector<16x128xi32>
        %c0_i32_53 = arith.constant 0 : i32
        %204 = vector.broadcast %c0_i32_53 : i32 to vector<16x128xi32>
        %205 = arith.cmpi sge, %203, %204 : vector<16x128xi32>
        %c-2147483648_i32_54 = arith.constant -2147483648 : i32
        %206 = vector.broadcast %c-2147483648_i32_54 : i32 to vector<16x128xi32>
        %207 = arith.xori %203, %206 : vector<16x128xi32>
        %cst_55 = arith.constant dense<-1> : vector<16x128xi32>
        %208 = arith.xori %203, %cst_55 : vector<16x128xi32>
        %209 = arith.select %205, %207, %208 : vector<16x128xi1>, vector<16x128xi32>
        %c0_56 = arith.constant 0 : index
        %210 = memref.load %arg8[%c0_56] : memref<2xi32, #tpu.memory_space<smem>>
        %211 = vector.broadcast %40 : i32 to vector<16x128xi32>
        %212 = arith.andi %209, %211 : vector<16x128xi32>
        %c0_i32_57 = arith.constant 0 : i32
        %213 = vector.broadcast %c0_i32_57 : i32 to vector<16x128xi32>
        %214 = arith.cmpi eq, %212, %213 : vector<16x128xi32>
        %215 = vector.broadcast %42 : i32 to vector<16x128xi32>
        %216 = arith.andi %209, %215 : vector<16x128xi32>
        %c0_i32_58 = arith.constant 0 : i32
        %217 = vector.broadcast %c0_i32_58 : i32 to vector<16x128xi32>
        %218 = arith.cmpi eq, %216, %217 : vector<16x128xi32>
        %219 = arith.andi %218, %214 : vector<16x128xi1>
        %cst_59 = arith.constant dense<true> : vector<16x128xi1>
        %220 = arith.xori %214, %cst_59 : vector<16x128xi1>
        %221 = arith.andi %218, %220 : vector<16x128xi1>
        %cst_60 = arith.constant dense<true> : vector<16x128xi1>
        %222 = arith.xori %218, %cst_60 : vector<16x128xi1>
        %223 = arith.andi %222, %214 : vector<16x128xi1>
        %224 = vector.broadcast %210 : i32 to vector<16x128xi32>
        %225 = arith.andi %209, %224 : vector<16x128xi32>
        %c0_61 = arith.constant 0 : index
        %226 = memref.load %arg7[%c0_61] : memref<8xi32, #tpu.memory_space<smem>>
        %227 = vector.broadcast %226 : i32 to vector<16x128xi32>
        %228 = arith.cmpi eq, %225, %227 : vector<16x128xi32>
        %229 = arith.andi %8, %228 : vector<16x128xi1>
        %c0_62 = arith.constant 0 : index
        %230 = memref.load %arg9[%c0_62] : memref<24xi32, #tpu.memory_space<smem>>
        %231 = arith.andi %229, %219 : vector<16x128xi1>
        %232 = arith.extui %231 : vector<16x128xi1> to vector<16x128xi32>
        %233 = vector.shape_cast %232 : vector<16x128xi32> to vector<1x16x128xi32>
        %cst_63 = arith.constant dense<0> : vector<1xi32>
        %234 = vector.multi_reduction <add>, %233, %cst_63 [1, 2] : vector<1x16x128xi32> to vector<1xi32>
        %235 = vector.shape_cast %234 : vector<1xi32> to vector<1x1x1xi32>
        %236 = vector.extract %235[0, 0, 0] : i32 from vector<1x1x1xi32>
        %237 = arith.addi %230, %236 : i32
        %c0_64 = arith.constant 0 : index
        %238 = memref.load %arg9[%c0_64] : memref<24xi32, #tpu.memory_space<smem>>
        memref.store %237, %arg9[%c0_64] : memref<24xi32, #tpu.memory_space<smem>>
        %c1_65 = arith.constant 1 : index
        %239 = memref.load %arg9[%c1_65] : memref<24xi32, #tpu.memory_space<smem>>
        %240 = arith.andi %229, %221 : vector<16x128xi1>
        %241 = arith.extui %240 : vector<16x128xi1> to vector<16x128xi32>
        %242 = vector.shape_cast %241 : vector<16x128xi32> to vector<1x16x128xi32>
        %cst_66 = arith.constant dense<0> : vector<1xi32>
        %243 = vector.multi_reduction <add>, %242, %cst_66 [1, 2] : vector<1x16x128xi32> to vector<1xi32>
        %244 = vector.shape_cast %243 : vector<1xi32> to vector<1x1x1xi32>
        %245 = vector.extract %244[0, 0, 0] : i32 from vector<1x1x1xi32>
        %246 = arith.addi %239, %245 : i32
        %c1_67 = arith.constant 1 : index
        %247 = memref.load %arg9[%c1_67] : memref<24xi32, #tpu.memory_space<smem>>
        memref.store %246, %arg9[%c1_67] : memref<24xi32, #tpu.memory_space<smem>>
        %c2 = arith.constant 2 : index
        %248 = memref.load %arg9[%c2] : memref<24xi32, #tpu.memory_space<smem>>
        %249 = arith.andi %229, %223 : vector<16x128xi1>
        %250 = arith.extui %249 : vector<16x128xi1> to vector<16x128xi32>
        %251 = vector.shape_cast %250 : vector<16x128xi32> to vector<1x16x128xi32>
        %cst_68 = arith.constant dense<0> : vector<1xi32>
        %252 = vector.multi_reduction <add>, %251, %cst_68 [1, 2] : vector<1x16x128xi32> to vector<1xi32>
        %253 = vector.shape_cast %252 : vector<1xi32> to vector<1x1x1xi32>
        %254 = vector.extract %253[0, 0, 0] : i32 from vector<1x1x1xi32>
        %255 = arith.addi %248, %254 : i32
        %c2_69 = arith.constant 2 : index
        %256 = memref.load %arg9[%c2_69] : memref<24xi32, #tpu.memory_space<smem>>
        memref.store %255, %arg9[%c2_69] : memref<24xi32, #tpu.memory_space<smem>>
        %257 = vector.broadcast %210 : i32 to vector<16x128xi32>
        %258 = arith.andi %209, %257 : vector<16x128xi32>
        %c1_70 = arith.constant 1 : index
        %259 = memref.load %arg7[%c1_70] : memref<8xi32, #tpu.memory_space<smem>>
        %260 = vector.broadcast %259 : i32 to vector<16x128xi32>
        %261 = arith.cmpi eq, %258, %260 : vector<16x128xi32>
        %262 = arith.andi %13, %261 : vector<16x128xi1>
        %c3 = arith.constant 3 : index
        %263 = memref.load %arg9[%c3] : memref<24xi32, #tpu.memory_space<smem>>
        %264 = arith.andi %262, %219 : vector<16x128xi1>
        %265 = arith.extui %264 : vector<16x128xi1> to vector<16x128xi32>
        %266 = vector.shape_cast %265 : vector<16x128xi32> to vector<1x16x128xi32>
        %cst_71 = arith.constant dense<0> : vector<1xi32>
        %267 = vector.multi_reduction <add>, %266, %cst_71 [1, 2] : vector<1x16x128xi32> to vector<1xi32>
        %268 = vector.shape_cast %267 : vector<1xi32> to vector<1x1x1xi32>
        %269 = vector.extract %268[0, 0, 0] : i32 from vector<1x1x1xi32>
        %270 = arith.addi %263, %269 : i32
        %c3_72 = arith.constant 3 : index
        %271 = memref.load %arg9[%c3_72] : memref<24xi32, #tpu.memory_space<smem>>
        memref.store %270, %arg9[%c3_72] : memref<24xi32, #tpu.memory_space<smem>>
        %c4_73 = arith.constant 4 : index
        %272 = memref.load %arg9[%c4_73] : memref<24xi32, #tpu.memory_space<smem>>
        %273 = arith.andi %262, %221 : vector<16x128xi1>
        %274 = arith.extui %273 : vector<16x128xi1> to vector<16x128xi32>
        %275 = vector.shape_cast %274 : vector<16x128xi32> to vector<1x16x128xi32>
        %cst_74 = arith.constant dense<0> : vector<1xi32>
        %276 = vector.multi_reduction <add>, %275, %cst_74 [1, 2] : vector<1x16x128xi32> to vector<1xi32>
        %277 = vector.shape_cast %276 : vector<1xi32> to vector<1x1x1xi32>
        %278 = vector.extract %277[0, 0, 0] : i32 from vector<1x1x1xi32>
        %279 = arith.addi %272, %278 : i32
        %c4_75 = arith.constant 4 : index
        %280 = memref.load %arg9[%c4_75] : memref<24xi32, #tpu.memory_space<smem>>
        memref.store %279, %arg9[%c4_75] : memref<24xi32, #tpu.memory_space<smem>>
        %c5_76 = arith.constant 5 : index
        %281 = memref.load %arg9[%c5_76] : memref<24xi32, #tpu.memory_space<smem>>
        %282 = arith.andi %262, %223 : vector<16x128xi1>
        %283 = arith.extui %282 : vector<16x128xi1> to vector<16x128xi32>
        %284 = vector.shape_cast %283 : vector<16x128xi32> to vector<1x16x128xi32>
        %cst_77 = arith.constant dense<0> : vector<1xi32>
        %285 = vector.multi_reduction <add>, %284, %cst_77 [1, 2] : vector<1x16x128xi32> to vector<1xi32>
        %286 = vector.shape_cast %285 : vector<1xi32> to vector<1x1x1xi32>
        %287 = vector.extract %286[0, 0, 0] : i32 from vector<1x1x1xi32>
        %288 = arith.addi %281, %287 : i32
        %c5_78 = arith.constant 5 : index
        %289 = memref.load %arg9[%c5_78] : memref<24xi32, #tpu.memory_space<smem>>
        memref.store %288, %arg9[%c5_78] : memref<24xi32, #tpu.memory_space<smem>>
        %290 = vector.broadcast %210 : i32 to vector<16x128xi32>
        %291 = arith.andi %209, %290 : vector<16x128xi32>
        %c2_79 = arith.constant 2 : index
        %292 = memref.load %arg7[%c2_79] : memref<8xi32, #tpu.memory_space<smem>>
        %293 = vector.broadcast %292 : i32 to vector<16x128xi32>
        %294 = arith.cmpi eq, %291, %293 : vector<16x128xi32>
        %295 = arith.andi %18, %294 : vector<16x128xi1>
        %c6_80 = arith.constant 6 : index
        %296 = memref.load %arg9[%c6_80] : memref<24xi32, #tpu.memory_space<smem>>
        %297 = arith.andi %295, %219 : vector<16x128xi1>
        %298 = arith.extui %297 : vector<16x128xi1> to vector<16x128xi32>
        %299 = vector.shape_cast %298 : vector<16x128xi32> to vector<1x16x128xi32>
        %cst_81 = arith.constant dense<0> : vector<1xi32>
        %300 = vector.multi_reduction <add>, %299, %cst_81 [1, 2] : vector<1x16x128xi32> to vector<1xi32>
        %301 = vector.shape_cast %300 : vector<1xi32> to vector<1x1x1xi32>
        %302 = vector.extract %301[0, 0, 0] : i32 from vector<1x1x1xi32>
        %303 = arith.addi %296, %302 : i32
        %c6_82 = arith.constant 6 : index
        %304 = memref.load %arg9[%c6_82] : memref<24xi32, #tpu.memory_space<smem>>
        memref.store %303, %arg9[%c6_82] : memref<24xi32, #tpu.memory_space<smem>>
        %c7_83 = arith.constant 7 : index
        %305 = memref.load %arg9[%c7_83] : memref<24xi32, #tpu.memory_space<smem>>
        %306 = arith.andi %295, %221 : vector<16x128xi1>
        %307 = arith.extui %306 : vector<16x128xi1> to vector<16x128xi32>
        %308 = vector.shape_cast %307 : vector<16x128xi32> to vector<1x16x128xi32>
        %cst_84 = arith.constant dense<0> : vector<1xi32>
        %309 = vector.multi_reduction <add>, %308, %cst_84 [1, 2] : vector<1x16x128xi32> to vector<1xi32>
        %310 = vector.shape_cast %309 : vector<1xi32> to vector<1x1x1xi32>
        %311 = vector.extract %310[0, 0, 0] : i32 from vector<1x1x1xi32>
        %312 = arith.addi %305, %311 : i32
        %c7_85 = arith.constant 7 : index
        %313 = memref.load %arg9[%c7_85] : memref<24xi32, #tpu.memory_space<smem>>
        memref.store %312, %arg9[%c7_85] : memref<24xi32, #tpu.memory_space<smem>>
        %c8 = arith.constant 8 : index
        %314 = memref.load %arg9[%c8] : memref<24xi32, #tpu.memory_space<smem>>
        %315 = arith.andi %295, %223 : vector<16x128xi1>
        %316 = arith.extui %315 : vector<16x128xi1> to vector<16x128xi32>
        %317 = vector.shape_cast %316 : vector<16x128xi32> to vector<1x16x128xi32>
        %cst_86 = arith.constant dense<0> : vector<1xi32>
        %318 = vector.multi_reduction <add>, %317, %cst_86 [1, 2] : vector<1x16x128xi32> to vector<1xi32>
        %319 = vector.shape_cast %318 : vector<1xi32> to vector<1x1x1xi32>
        %320 = vector.extract %319[0, 0, 0] : i32 from vector<1x1x1xi32>
        %321 = arith.addi %314, %320 : i32
        %c8_87 = arith.constant 8 : index
        %322 = memref.load %arg9[%c8_87] : memref<24xi32, #tpu.memory_space<smem>>
        memref.store %321, %arg9[%c8_87] : memref<24xi32, #tpu.memory_space<smem>>
        %323 = vector.broadcast %210 : i32 to vector<16x128xi32>
        %324 = arith.andi %209, %323 : vector<16x128xi32>
        %c3_88 = arith.constant 3 : index
        %325 = memref.load %arg7[%c3_88] : memref<8xi32, #tpu.memory_space<smem>>
        %326 = vector.broadcast %325 : i32 to vector<16x128xi32>
        %327 = arith.cmpi eq, %324, %326 : vector<16x128xi32>
        %328 = arith.andi %23, %327 : vector<16x128xi1>
        %c9 = arith.constant 9 : index
        %329 = memref.load %arg9[%c9] : memref<24xi32, #tpu.memory_space<smem>>
        %330 = arith.andi %328, %219 : vector<16x128xi1>
        %331 = arith.extui %330 : vector<16x128xi1> to vector<16x128xi32>
        %332 = vector.shape_cast %331 : vector<16x128xi32> to vector<1x16x128xi32>
        %cst_89 = arith.constant dense<0> : vector<1xi32>
        %333 = vector.multi_reduction <add>, %332, %cst_89 [1, 2] : vector<1x16x128xi32> to vector<1xi32>
        %334 = vector.shape_cast %333 : vector<1xi32> to vector<1x1x1xi32>
        %335 = vector.extract %334[0, 0, 0] : i32 from vector<1x1x1xi32>
        %336 = arith.addi %329, %335 : i32
        %c9_90 = arith.constant 9 : index
        %337 = memref.load %arg9[%c9_90] : memref<24xi32, #tpu.memory_space<smem>>
        memref.store %336, %arg9[%c9_90] : memref<24xi32, #tpu.memory_space<smem>>
        %c10 = arith.constant 10 : index
        %338 = memref.load %arg9[%c10] : memref<24xi32, #tpu.memory_space<smem>>
        %339 = arith.andi %328, %221 : vector<16x128xi1>
        %340 = arith.extui %339 : vector<16x128xi1> to vector<16x128xi32>
        %341 = vector.shape_cast %340 : vector<16x128xi32> to vector<1x16x128xi32>
        %cst_91 = arith.constant dense<0> : vector<1xi32>
        %342 = vector.multi_reduction <add>, %341, %cst_91 [1, 2] : vector<1x16x128xi32> to vector<1xi32>
        %343 = vector.shape_cast %342 : vector<1xi32> to vector<1x1x1xi32>
        %344 = vector.extract %343[0, 0, 0] : i32 from vector<1x1x1xi32>
        %345 = arith.addi %338, %344 : i32
        %c10_92 = arith.constant 10 : index
        %346 = memref.load %arg9[%c10_92] : memref<24xi32, #tpu.memory_space<smem>>
        memref.store %345, %arg9[%c10_92] : memref<24xi32, #tpu.memory_space<smem>>
        %c11 = arith.constant 11 : index
        %347 = memref.load %arg9[%c11] : memref<24xi32, #tpu.memory_space<smem>>
        %348 = arith.andi %328, %223 : vector<16x128xi1>
        %349 = arith.extui %348 : vector<16x128xi1> to vector<16x128xi32>
        %350 = vector.shape_cast %349 : vector<16x128xi32> to vector<1x16x128xi32>
        %cst_93 = arith.constant dense<0> : vector<1xi32>
        %351 = vector.multi_reduction <add>, %350, %cst_93 [1, 2] : vector<1x16x128xi32> to vector<1xi32>
        %352 = vector.shape_cast %351 : vector<1xi32> to vector<1x1x1xi32>
        %353 = vector.extract %352[0, 0, 0] : i32 from vector<1x1x1xi32>
        %354 = arith.addi %347, %353 : i32
        %c11_94 = arith.constant 11 : index
        %355 = memref.load %arg9[%c11_94] : memref<24xi32, #tpu.memory_space<smem>>
        memref.store %354, %arg9[%c11_94] : memref<24xi32, #tpu.memory_space<smem>>
      } else {
      }
      %48 = tpu.bitcast %3 : vector<16x128xf32> -> vector<16x128xi32>
      %c0_i32_22 = arith.constant 0 : i32
      %49 = vector.broadcast %c0_i32_22 : i32 to vector<16x128xi32>
      %50 = arith.cmpi sge, %48, %49 : vector<16x128xi32>
      %c-2147483648_i32 = arith.constant -2147483648 : i32
      %51 = vector.broadcast %c-2147483648_i32 : i32 to vector<16x128xi32>
      %52 = arith.xori %48, %51 : vector<16x128xi32>
      %cst_23 = arith.constant dense<-1> : vector<16x128xi32>
      %53 = arith.xori %48, %cst_23 : vector<16x128xi32>
      %54 = arith.select %50, %52, %53 : vector<16x128xi1>, vector<16x128xi32>
      %c1 = arith.constant 1 : index
      %55 = memref.load %arg8[%c1] : memref<2xi32, #tpu.memory_space<smem>>
      %56 = vector.broadcast %40 : i32 to vector<16x128xi32>
      %57 = arith.andi %54, %56 : vector<16x128xi32>
      %c0_i32_24 = arith.constant 0 : i32
      %58 = vector.broadcast %c0_i32_24 : i32 to vector<16x128xi32>
      %59 = arith.cmpi eq, %57, %58 : vector<16x128xi32>
      %60 = vector.broadcast %42 : i32 to vector<16x128xi32>
      %61 = arith.andi %54, %60 : vector<16x128xi32>
      %c0_i32_25 = arith.constant 0 : i32
      %62 = vector.broadcast %c0_i32_25 : i32 to vector<16x128xi32>
      %63 = arith.cmpi eq, %61, %62 : vector<16x128xi32>
      %64 = arith.andi %63, %59 : vector<16x128xi1>
      %cst_26 = arith.constant dense<true> : vector<16x128xi1>
      %65 = arith.xori %59, %cst_26 : vector<16x128xi1>
      %66 = arith.andi %63, %65 : vector<16x128xi1>
      %cst_27 = arith.constant dense<true> : vector<16x128xi1>
      %67 = arith.xori %63, %cst_27 : vector<16x128xi1>
      %68 = arith.andi %67, %59 : vector<16x128xi1>
      %69 = vector.broadcast %55 : i32 to vector<16x128xi32>
      %70 = arith.andi %54, %69 : vector<16x128xi32>
      %c4 = arith.constant 4 : index
      %71 = memref.load %arg7[%c4] : memref<8xi32, #tpu.memory_space<smem>>
      %72 = vector.broadcast %71 : i32 to vector<16x128xi32>
      %73 = arith.cmpi eq, %70, %72 : vector<16x128xi32>
      %74 = arith.andi %8, %73 : vector<16x128xi1>
      %c12 = arith.constant 12 : index
      %75 = memref.load %arg9[%c12] : memref<24xi32, #tpu.memory_space<smem>>
      %76 = arith.andi %74, %64 : vector<16x128xi1>
      %77 = arith.extui %76 : vector<16x128xi1> to vector<16x128xi32>
      %78 = vector.shape_cast %77 : vector<16x128xi32> to vector<1x16x128xi32>
      %cst_28 = arith.constant dense<0> : vector<1xi32>
      %79 = vector.multi_reduction <add>, %78, %cst_28 [1, 2] : vector<1x16x128xi32> to vector<1xi32>
      %80 = vector.shape_cast %79 : vector<1xi32> to vector<1x1x1xi32>
      %81 = vector.extract %80[0, 0, 0] : i32 from vector<1x1x1xi32>
      %82 = arith.addi %75, %81 : i32
      %c12_29 = arith.constant 12 : index
      %83 = memref.load %arg9[%c12_29] : memref<24xi32, #tpu.memory_space<smem>>
      memref.store %82, %arg9[%c12_29] : memref<24xi32, #tpu.memory_space<smem>>
      %c13 = arith.constant 13 : index
      %84 = memref.load %arg9[%c13] : memref<24xi32, #tpu.memory_space<smem>>
      %85 = arith.andi %74, %66 : vector<16x128xi1>
      %86 = arith.extui %85 : vector<16x128xi1> to vector<16x128xi32>
      %87 = vector.shape_cast %86 : vector<16x128xi32> to vector<1x16x128xi32>
      %cst_30 = arith.constant dense<0> : vector<1xi32>
      %88 = vector.multi_reduction <add>, %87, %cst_30 [1, 2] : vector<1x16x128xi32> to vector<1xi32>
      %89 = vector.shape_cast %88 : vector<1xi32> to vector<1x1x1xi32>
      %90 = vector.extract %89[0, 0, 0] : i32 from vector<1x1x1xi32>
      %91 = arith.addi %84, %90 : i32
      %c13_31 = arith.constant 13 : index
      %92 = memref.load %arg9[%c13_31] : memref<24xi32, #tpu.memory_space<smem>>
      memref.store %91, %arg9[%c13_31] : memref<24xi32, #tpu.memory_space<smem>>
      %c14 = arith.constant 14 : index
      %93 = memref.load %arg9[%c14] : memref<24xi32, #tpu.memory_space<smem>>
      %94 = arith.andi %74, %68 : vector<16x128xi1>
      %95 = arith.extui %94 : vector<16x128xi1> to vector<16x128xi32>
      %96 = vector.shape_cast %95 : vector<16x128xi32> to vector<1x16x128xi32>
      %cst_32 = arith.constant dense<0> : vector<1xi32>
      %97 = vector.multi_reduction <add>, %96, %cst_32 [1, 2] : vector<1x16x128xi32> to vector<1xi32>
      %98 = vector.shape_cast %97 : vector<1xi32> to vector<1x1x1xi32>
      %99 = vector.extract %98[0, 0, 0] : i32 from vector<1x1x1xi32>
      %100 = arith.addi %93, %99 : i32
      %c14_33 = arith.constant 14 : index
      %101 = memref.load %arg9[%c14_33] : memref<24xi32, #tpu.memory_space<smem>>
      memref.store %100, %arg9[%c14_33] : memref<24xi32, #tpu.memory_space<smem>>
      %102 = vector.broadcast %55 : i32 to vector<16x128xi32>
      %103 = arith.andi %54, %102 : vector<16x128xi32>
      %c5 = arith.constant 5 : index
      %104 = memref.load %arg7[%c5] : memref<8xi32, #tpu.memory_space<smem>>
      %105 = vector.broadcast %104 : i32 to vector<16x128xi32>
      %106 = arith.cmpi eq, %103, %105 : vector<16x128xi32>
      %107 = arith.andi %13, %106 : vector<16x128xi1>
      %c15 = arith.constant 15 : index
      %108 = memref.load %arg9[%c15] : memref<24xi32, #tpu.memory_space<smem>>
      %109 = arith.andi %107, %64 : vector<16x128xi1>
      %110 = arith.extui %109 : vector<16x128xi1> to vector<16x128xi32>
      %111 = vector.shape_cast %110 : vector<16x128xi32> to vector<1x16x128xi32>
      %cst_34 = arith.constant dense<0> : vector<1xi32>
      %112 = vector.multi_reduction <add>, %111, %cst_34 [1, 2] : vector<1x16x128xi32> to vector<1xi32>
      %113 = vector.shape_cast %112 : vector<1xi32> to vector<1x1x1xi32>
      %114 = vector.extract %113[0, 0, 0] : i32 from vector<1x1x1xi32>
      %115 = arith.addi %108, %114 : i32
      %c15_35 = arith.constant 15 : index
      %116 = memref.load %arg9[%c15_35] : memref<24xi32, #tpu.memory_space<smem>>
      memref.store %115, %arg9[%c15_35] : memref<24xi32, #tpu.memory_space<smem>>
      %c16 = arith.constant 16 : index
      %117 = memref.load %arg9[%c16] : memref<24xi32, #tpu.memory_space<smem>>
      %118 = arith.andi %107, %66 : vector<16x128xi1>
      %119 = arith.extui %118 : vector<16x128xi1> to vector<16x128xi32>
      %120 = vector.shape_cast %119 : vector<16x128xi32> to vector<1x16x128xi32>
      %cst_36 = arith.constant dense<0> : vector<1xi32>
      %121 = vector.multi_reduction <add>, %120, %cst_36 [1, 2] : vector<1x16x128xi32> to vector<1xi32>
      %122 = vector.shape_cast %121 : vector<1xi32> to vector<1x1x1xi32>
      %123 = vector.extract %122[0, 0, 0] : i32 from vector<1x1x1xi32>
      %124 = arith.addi %117, %123 : i32
      %c16_37 = arith.constant 16 : index
      %125 = memref.load %arg9[%c16_37] : memref<24xi32, #tpu.memory_space<smem>>
      memref.store %124, %arg9[%c16_37] : memref<24xi32, #tpu.memory_space<smem>>
      %c17 = arith.constant 17 : index
      %126 = memref.load %arg9[%c17] : memref<24xi32, #tpu.memory_space<smem>>
      %127 = arith.andi %107, %68 : vector<16x128xi1>
      %128 = arith.extui %127 : vector<16x128xi1> to vector<16x128xi32>
      %129 = vector.shape_cast %128 : vector<16x128xi32> to vector<1x16x128xi32>
      %cst_38 = arith.constant dense<0> : vector<1xi32>
      %130 = vector.multi_reduction <add>, %129, %cst_38 [1, 2] : vector<1x16x128xi32> to vector<1xi32>
      %131 = vector.shape_cast %130 : vector<1xi32> to vector<1x1x1xi32>
      %132 = vector.extract %131[0, 0, 0] : i32 from vector<1x1x1xi32>
      %133 = arith.addi %126, %132 : i32
      %c17_39 = arith.constant 17 : index
      %134 = memref.load %arg9[%c17_39] : memref<24xi32, #tpu.memory_space<smem>>
      memref.store %133, %arg9[%c17_39] : memref<24xi32, #tpu.memory_space<smem>>
      %135 = vector.broadcast %55 : i32 to vector<16x128xi32>
      %136 = arith.andi %54, %135 : vector<16x128xi32>
      %c6 = arith.constant 6 : index
      %137 = memref.load %arg7[%c6] : memref<8xi32, #tpu.memory_space<smem>>
      %138 = vector.broadcast %137 : i32 to vector<16x128xi32>
      %139 = arith.cmpi eq, %136, %138 : vector<16x128xi32>
      %140 = arith.andi %18, %139 : vector<16x128xi1>
      %c18 = arith.constant 18 : index
      %141 = memref.load %arg9[%c18] : memref<24xi32, #tpu.memory_space<smem>>
      %142 = arith.andi %140, %64 : vector<16x128xi1>
      %143 = arith.extui %142 : vector<16x128xi1> to vector<16x128xi32>
      %144 = vector.shape_cast %143 : vector<16x128xi32> to vector<1x16x128xi32>
      %cst_40 = arith.constant dense<0> : vector<1xi32>
      %145 = vector.multi_reduction <add>, %144, %cst_40 [1, 2] : vector<1x16x128xi32> to vector<1xi32>
      %146 = vector.shape_cast %145 : vector<1xi32> to vector<1x1x1xi32>
      %147 = vector.extract %146[0, 0, 0] : i32 from vector<1x1x1xi32>
      %148 = arith.addi %141, %147 : i32
      %c18_41 = arith.constant 18 : index
      %149 = memref.load %arg9[%c18_41] : memref<24xi32, #tpu.memory_space<smem>>
      memref.store %148, %arg9[%c18_41] : memref<24xi32, #tpu.memory_space<smem>>
      %c19 = arith.constant 19 : index
      %150 = memref.load %arg9[%c19] : memref<24xi32, #tpu.memory_space<smem>>
      %151 = arith.andi %140, %66 : vector<16x128xi1>
      %152 = arith.extui %151 : vector<16x128xi1> to vector<16x128xi32>
      %153 = vector.shape_cast %152 : vector<16x128xi32> to vector<1x16x128xi32>
      %cst_42 = arith.constant dense<0> : vector<1xi32>
      %154 = vector.multi_reduction <add>, %153, %cst_42 [1, 2] : vector<1x16x128xi32> to vector<1xi32>
      %155 = vector.shape_cast %154 : vector<1xi32> to vector<1x1x1xi32>
      %156 = vector.extract %155[0, 0, 0] : i32 from vector<1x1x1xi32>
      %157 = arith.addi %150, %156 : i32
      %c19_43 = arith.constant 19 : index
      %158 = memref.load %arg9[%c19_43] : memref<24xi32, #tpu.memory_space<smem>>
      memref.store %157, %arg9[%c19_43] : memref<24xi32, #tpu.memory_space<smem>>
      %c20 = arith.constant 20 : index
      %159 = memref.load %arg9[%c20] : memref<24xi32, #tpu.memory_space<smem>>
      %160 = arith.andi %140, %68 : vector<16x128xi1>
      %161 = arith.extui %160 : vector<16x128xi1> to vector<16x128xi32>
      %162 = vector.shape_cast %161 : vector<16x128xi32> to vector<1x16x128xi32>
      %cst_44 = arith.constant dense<0> : vector<1xi32>
      %163 = vector.multi_reduction <add>, %162, %cst_44 [1, 2] : vector<1x16x128xi32> to vector<1xi32>
      %164 = vector.shape_cast %163 : vector<1xi32> to vector<1x1x1xi32>
      %165 = vector.extract %164[0, 0, 0] : i32 from vector<1x1x1xi32>
      %166 = arith.addi %159, %165 : i32
      %c20_45 = arith.constant 20 : index
      %167 = memref.load %arg9[%c20_45] : memref<24xi32, #tpu.memory_space<smem>>
      memref.store %166, %arg9[%c20_45] : memref<24xi32, #tpu.memory_space<smem>>
      %168 = vector.broadcast %55 : i32 to vector<16x128xi32>
      %169 = arith.andi %54, %168 : vector<16x128xi32>
      %c7 = arith.constant 7 : index
      %170 = memref.load %arg7[%c7] : memref<8xi32, #tpu.memory_space<smem>>
      %171 = vector.broadcast %170 : i32 to vector<16x128xi32>
      %172 = arith.cmpi eq, %169, %171 : vector<16x128xi32>
      %173 = arith.andi %23, %172 : vector<16x128xi1>
      %c21 = arith.constant 21 : index
      %174 = memref.load %arg9[%c21] : memref<24xi32, #tpu.memory_space<smem>>
      %175 = arith.andi %173, %64 : vector<16x128xi1>
      %176 = arith.extui %175 : vector<16x128xi1> to vector<16x128xi32>
      %177 = vector.shape_cast %176 : vector<16x128xi32> to vector<1x16x128xi32>
      %cst_46 = arith.constant dense<0> : vector<1xi32>
      %178 = vector.multi_reduction <add>, %177, %cst_46 [1, 2] : vector<1x16x128xi32> to vector<1xi32>
      %179 = vector.shape_cast %178 : vector<1xi32> to vector<1x1x1xi32>
      %180 = vector.extract %179[0, 0, 0] : i32 from vector<1x1x1xi32>
      %181 = arith.addi %174, %180 : i32
      %c21_47 = arith.constant 21 : index
      %182 = memref.load %arg9[%c21_47] : memref<24xi32, #tpu.memory_space<smem>>
      memref.store %181, %arg9[%c21_47] : memref<24xi32, #tpu.memory_space<smem>>
      %c22 = arith.constant 22 : index
      %183 = memref.load %arg9[%c22] : memref<24xi32, #tpu.memory_space<smem>>
      %184 = arith.andi %173, %66 : vector<16x128xi1>
      %185 = arith.extui %184 : vector<16x128xi1> to vector<16x128xi32>
      %186 = vector.shape_cast %185 : vector<16x128xi32> to vector<1x16x128xi32>
      %cst_48 = arith.constant dense<0> : vector<1xi32>
      %187 = vector.multi_reduction <add>, %186, %cst_48 [1, 2] : vector<1x16x128xi32> to vector<1xi32>
      %188 = vector.shape_cast %187 : vector<1xi32> to vector<1x1x1xi32>
      %189 = vector.extract %188[0, 0, 0] : i32 from vector<1x1x1xi32>
      %190 = arith.addi %183, %189 : i32
      %c22_49 = arith.constant 22 : index
      %191 = memref.load %arg9[%c22_49] : memref<24xi32, #tpu.memory_space<smem>>
      memref.store %190, %arg9[%c22_49] : memref<24xi32, #tpu.memory_space<smem>>
      %c23 = arith.constant 23 : index
      %192 = memref.load %arg9[%c23] : memref<24xi32, #tpu.memory_space<smem>>
      %193 = arith.andi %173, %68 : vector<16x128xi1>
      %194 = arith.extui %193 : vector<16x128xi1> to vector<16x128xi32>
      %195 = vector.shape_cast %194 : vector<16x128xi32> to vector<1x16x128xi32>
      %cst_50 = arith.constant dense<0> : vector<1xi32>
      %196 = vector.multi_reduction <add>, %195, %cst_50 [1, 2] : vector<1x16x128xi32> to vector<1xi32>
      %197 = vector.shape_cast %196 : vector<1xi32> to vector<1x1x1xi32>
      %198 = vector.extract %197[0, 0, 0] : i32 from vector<1x1x1xi32>
      %199 = arith.addi %192, %198 : i32
      %c23_51 = arith.constant 23 : index
      %200 = memref.load %arg9[%c23_51] : memref<24xi32, #tpu.memory_space<smem>>
      memref.store %199, %arg9[%c23_51] : memref<24xi32, #tpu.memory_space<smem>>
      %201 = arith.extui %1 : i1 to i32
      %c0_i32_52 = arith.constant 0 : i32
      %202 = arith.cmpi ne, %201, %c0_i32_52 : i32
      scf.if %202 {
        %c0_53 = arith.constant 0 : index
        %203 = memref.load %arg9[%c0_53] : memref<24xi32, #tpu.memory_space<smem>>
        %c1_54 = arith.constant 1 : index
        %204 = memref.load %arg9[%c1_54] : memref<24xi32, #tpu.memory_space<smem>>
        %c2 = arith.constant 2 : index
        %205 = memref.load %arg9[%c2] : memref<24xi32, #tpu.memory_space<smem>>
        %c0_55 = arith.constant 0 : index
        %206 = memref.load %arg6[%c0_55] : memref<8xi32, #tpu.memory_space<smem>>
        %207 = arith.cmpi sge, %206, %203 : i32
        %208 = arith.addi %203, %204 : i32
        %209 = arith.cmpi sge, %206, %208 : i32
        %210 = arith.addi %203, %204 : i32
        %211 = arith.addi %210, %205 : i32
        %212 = arith.cmpi sge, %206, %211 : i32
        %213 = arith.extui %207 : i1 to i32
        %214 = arith.extui %209 : i1 to i32
        %215 = arith.addi %213, %214 : i32
        %216 = arith.extui %212 : i1 to i32
        %217 = arith.addi %215, %216 : i32
        %c0_i32_56 = arith.constant 0 : i32
        %218 = arith.select %207, %203, %c0_i32_56 : i32
        %219 = arith.subi %206, %218 : i32
        %c0_i32_57 = arith.constant 0 : i32
        %220 = arith.select %209, %204, %c0_i32_57 : i32
        %221 = arith.subi %219, %220 : i32
        %c0_i32_58 = arith.constant 0 : i32
        %222 = arith.select %212, %205, %c0_i32_58 : i32
        %223 = arith.subi %221, %222 : i32
        %c0_59 = arith.constant 0 : index
        %224 = memref.load %arg7[%c0_59] : memref<8xi32, #tpu.memory_space<smem>>
        %225 = arith.shli %217, %39 : i32
        %226 = arith.ori %224, %225 : i32
        %227 = arith.select %43, %223, %206 : i32
        %c0_60 = arith.constant 0 : index
        %228 = memref.load %arg6[%c0_60] : memref<8xi32, #tpu.memory_space<smem>>
        memref.store %227, %arg6[%c0_60] : memref<8xi32, #tpu.memory_space<smem>>
        %c0_61 = arith.constant 0 : index
        %229 = memref.load %arg7[%c0_61] : memref<8xi32, #tpu.memory_space<smem>>
        %230 = arith.select %43, %226, %229 : i32
        %c0_62 = arith.constant 0 : index
        %231 = memref.load %arg7[%c0_62] : memref<8xi32, #tpu.memory_space<smem>>
        memref.store %230, %arg7[%c0_62] : memref<8xi32, #tpu.memory_space<smem>>
        %c3 = arith.constant 3 : index
        %232 = memref.load %arg9[%c3] : memref<24xi32, #tpu.memory_space<smem>>
        %c4_63 = arith.constant 4 : index
        %233 = memref.load %arg9[%c4_63] : memref<24xi32, #tpu.memory_space<smem>>
        %c5_64 = arith.constant 5 : index
        %234 = memref.load %arg9[%c5_64] : memref<24xi32, #tpu.memory_space<smem>>
        %c1_65 = arith.constant 1 : index
        %235 = memref.load %arg6[%c1_65] : memref<8xi32, #tpu.memory_space<smem>>
        %236 = arith.cmpi sge, %235, %232 : i32
        %237 = arith.addi %232, %233 : i32
        %238 = arith.cmpi sge, %235, %237 : i32
        %239 = arith.addi %232, %233 : i32
        %240 = arith.addi %239, %234 : i32
        %241 = arith.cmpi sge, %235, %240 : i32
        %242 = arith.extui %236 : i1 to i32
        %243 = arith.extui %238 : i1 to i32
        %244 = arith.addi %242, %243 : i32
        %245 = arith.extui %241 : i1 to i32
        %246 = arith.addi %244, %245 : i32
        %c0_i32_66 = arith.constant 0 : i32
        %247 = arith.select %236, %232, %c0_i32_66 : i32
        %248 = arith.subi %235, %247 : i32
        %c0_i32_67 = arith.constant 0 : i32
        %249 = arith.select %238, %233, %c0_i32_67 : i32
        %250 = arith.subi %248, %249 : i32
        %c0_i32_68 = arith.constant 0 : i32
        %251 = arith.select %241, %234, %c0_i32_68 : i32
        %252 = arith.subi %250, %251 : i32
        %c1_69 = arith.constant 1 : index
        %253 = memref.load %arg7[%c1_69] : memref<8xi32, #tpu.memory_space<smem>>
        %254 = arith.shli %246, %39 : i32
        %255 = arith.ori %253, %254 : i32
        %256 = arith.select %43, %252, %235 : i32
        %c1_70 = arith.constant 1 : index
        %257 = memref.load %arg6[%c1_70] : memref<8xi32, #tpu.memory_space<smem>>
        memref.store %256, %arg6[%c1_70] : memref<8xi32, #tpu.memory_space<smem>>
        %c1_71 = arith.constant 1 : index
        %258 = memref.load %arg7[%c1_71] : memref<8xi32, #tpu.memory_space<smem>>
        %259 = arith.select %43, %255, %258 : i32
        %c1_72 = arith.constant 1 : index
        %260 = memref.load %arg7[%c1_72] : memref<8xi32, #tpu.memory_space<smem>>
        memref.store %259, %arg7[%c1_72] : memref<8xi32, #tpu.memory_space<smem>>
        %c6_73 = arith.constant 6 : index
        %261 = memref.load %arg9[%c6_73] : memref<24xi32, #tpu.memory_space<smem>>
        %c7_74 = arith.constant 7 : index
        %262 = memref.load %arg9[%c7_74] : memref<24xi32, #tpu.memory_space<smem>>
        %c8 = arith.constant 8 : index
        %263 = memref.load %arg9[%c8] : memref<24xi32, #tpu.memory_space<smem>>
        %c2_75 = arith.constant 2 : index
        %264 = memref.load %arg6[%c2_75] : memref<8xi32, #tpu.memory_space<smem>>
        %265 = arith.cmpi sge, %264, %261 : i32
        %266 = arith.addi %261, %262 : i32
        %267 = arith.cmpi sge, %264, %266 : i32
        %268 = arith.addi %261, %262 : i32
        %269 = arith.addi %268, %263 : i32
        %270 = arith.cmpi sge, %264, %269 : i32
        %271 = arith.extui %265 : i1 to i32
        %272 = arith.extui %267 : i1 to i32
        %273 = arith.addi %271, %272 : i32
        %274 = arith.extui %270 : i1 to i32
        %275 = arith.addi %273, %274 : i32
        %c0_i32_76 = arith.constant 0 : i32
        %276 = arith.select %265, %261, %c0_i32_76 : i32
        %277 = arith.subi %264, %276 : i32
        %c0_i32_77 = arith.constant 0 : i32
        %278 = arith.select %267, %262, %c0_i32_77 : i32
        %279 = arith.subi %277, %278 : i32
        %c0_i32_78 = arith.constant 0 : i32
        %280 = arith.select %270, %263, %c0_i32_78 : i32
        %281 = arith.subi %279, %280 : i32
        %c2_79 = arith.constant 2 : index
        %282 = memref.load %arg7[%c2_79] : memref<8xi32, #tpu.memory_space<smem>>
        %283 = arith.shli %275, %39 : i32
        %284 = arith.ori %282, %283 : i32
        %285 = arith.select %43, %281, %264 : i32
        %c2_80 = arith.constant 2 : index
        %286 = memref.load %arg6[%c2_80] : memref<8xi32, #tpu.memory_space<smem>>
        memref.store %285, %arg6[%c2_80] : memref<8xi32, #tpu.memory_space<smem>>
        %c2_81 = arith.constant 2 : index
        %287 = memref.load %arg7[%c2_81] : memref<8xi32, #tpu.memory_space<smem>>
        %288 = arith.select %43, %284, %287 : i32
        %c2_82 = arith.constant 2 : index
        %289 = memref.load %arg7[%c2_82] : memref<8xi32, #tpu.memory_space<smem>>
        memref.store %288, %arg7[%c2_82] : memref<8xi32, #tpu.memory_space<smem>>
        %c9 = arith.constant 9 : index
        %290 = memref.load %arg9[%c9] : memref<24xi32, #tpu.memory_space<smem>>
        %c10 = arith.constant 10 : index
        %291 = memref.load %arg9[%c10] : memref<24xi32, #tpu.memory_space<smem>>
        %c11 = arith.constant 11 : index
        %292 = memref.load %arg9[%c11] : memref<24xi32, #tpu.memory_space<smem>>
        %c3_83 = arith.constant 3 : index
        %293 = memref.load %arg6[%c3_83] : memref<8xi32, #tpu.memory_space<smem>>
        %294 = arith.cmpi sge, %293, %290 : i32
        %295 = arith.addi %290, %291 : i32
        %296 = arith.cmpi sge, %293, %295 : i32
        %297 = arith.addi %290, %291 : i32
        %298 = arith.addi %297, %292 : i32
        %299 = arith.cmpi sge, %293, %298 : i32
        %300 = arith.extui %294 : i1 to i32
        %301 = arith.extui %296 : i1 to i32
        %302 = arith.addi %300, %301 : i32
        %303 = arith.extui %299 : i1 to i32
        %304 = arith.addi %302, %303 : i32
        %c0_i32_84 = arith.constant 0 : i32
        %305 = arith.select %294, %290, %c0_i32_84 : i32
        %306 = arith.subi %293, %305 : i32
        %c0_i32_85 = arith.constant 0 : i32
        %307 = arith.select %296, %291, %c0_i32_85 : i32
        %308 = arith.subi %306, %307 : i32
        %c0_i32_86 = arith.constant 0 : i32
        %309 = arith.select %299, %292, %c0_i32_86 : i32
        %310 = arith.subi %308, %309 : i32
        %c3_87 = arith.constant 3 : index
        %311 = memref.load %arg7[%c3_87] : memref<8xi32, #tpu.memory_space<smem>>
        %312 = arith.shli %304, %39 : i32
        %313 = arith.ori %311, %312 : i32
        %314 = arith.select %43, %310, %293 : i32
        %c3_88 = arith.constant 3 : index
        %315 = memref.load %arg6[%c3_88] : memref<8xi32, #tpu.memory_space<smem>>
        memref.store %314, %arg6[%c3_88] : memref<8xi32, #tpu.memory_space<smem>>
        %c3_89 = arith.constant 3 : index
        %316 = memref.load %arg7[%c3_89] : memref<8xi32, #tpu.memory_space<smem>>
        %317 = arith.select %43, %313, %316 : i32
        %c3_90 = arith.constant 3 : index
        %318 = memref.load %arg7[%c3_90] : memref<8xi32, #tpu.memory_space<smem>>
        memref.store %317, %arg7[%c3_90] : memref<8xi32, #tpu.memory_space<smem>>
        %c12_91 = arith.constant 12 : index
        %319 = memref.load %arg9[%c12_91] : memref<24xi32, #tpu.memory_space<smem>>
        %c13_92 = arith.constant 13 : index
        %320 = memref.load %arg9[%c13_92] : memref<24xi32, #tpu.memory_space<smem>>
        %c14_93 = arith.constant 14 : index
        %321 = memref.load %arg9[%c14_93] : memref<24xi32, #tpu.memory_space<smem>>
        %c4_94 = arith.constant 4 : index
        %322 = memref.load %arg6[%c4_94] : memref<8xi32, #tpu.memory_space<smem>>
        %323 = arith.cmpi sge, %322, %319 : i32
        %324 = arith.addi %319, %320 : i32
        %325 = arith.cmpi sge, %322, %324 : i32
        %326 = arith.addi %319, %320 : i32
        %327 = arith.addi %326, %321 : i32
        %328 = arith.cmpi sge, %322, %327 : i32
        %329 = arith.extui %323 : i1 to i32
        %330 = arith.extui %325 : i1 to i32
        %331 = arith.addi %329, %330 : i32
        %332 = arith.extui %328 : i1 to i32
        %333 = arith.addi %331, %332 : i32
        %c0_i32_95 = arith.constant 0 : i32
        %334 = arith.select %323, %319, %c0_i32_95 : i32
        %335 = arith.subi %322, %334 : i32
        %c0_i32_96 = arith.constant 0 : i32
        %336 = arith.select %325, %320, %c0_i32_96 : i32
        %337 = arith.subi %335, %336 : i32
        %c0_i32_97 = arith.constant 0 : i32
        %338 = arith.select %328, %321, %c0_i32_97 : i32
        %339 = arith.subi %337, %338 : i32
        %c4_98 = arith.constant 4 : index
        %340 = memref.load %arg7[%c4_98] : memref<8xi32, #tpu.memory_space<smem>>
        %341 = arith.shli %333, %39 : i32
        %342 = arith.ori %340, %341 : i32
        %c4_99 = arith.constant 4 : index
        %343 = memref.load %arg6[%c4_99] : memref<8xi32, #tpu.memory_space<smem>>
        memref.store %339, %arg6[%c4_99] : memref<8xi32, #tpu.memory_space<smem>>
        %c4_100 = arith.constant 4 : index
        %344 = memref.load %arg7[%c4_100] : memref<8xi32, #tpu.memory_space<smem>>
        memref.store %342, %arg7[%c4_100] : memref<8xi32, #tpu.memory_space<smem>>
        %c15_101 = arith.constant 15 : index
        %345 = memref.load %arg9[%c15_101] : memref<24xi32, #tpu.memory_space<smem>>
        %c16_102 = arith.constant 16 : index
        %346 = memref.load %arg9[%c16_102] : memref<24xi32, #tpu.memory_space<smem>>
        %c17_103 = arith.constant 17 : index
        %347 = memref.load %arg9[%c17_103] : memref<24xi32, #tpu.memory_space<smem>>
        %c5_104 = arith.constant 5 : index
        %348 = memref.load %arg6[%c5_104] : memref<8xi32, #tpu.memory_space<smem>>
        %349 = arith.cmpi sge, %348, %345 : i32
        %350 = arith.addi %345, %346 : i32
        %351 = arith.cmpi sge, %348, %350 : i32
        %352 = arith.addi %345, %346 : i32
        %353 = arith.addi %352, %347 : i32
        %354 = arith.cmpi sge, %348, %353 : i32
        %355 = arith.extui %349 : i1 to i32
        %356 = arith.extui %351 : i1 to i32
        %357 = arith.addi %355, %356 : i32
        %358 = arith.extui %354 : i1 to i32
        %359 = arith.addi %357, %358 : i32
        %c0_i32_105 = arith.constant 0 : i32
        %360 = arith.select %349, %345, %c0_i32_105 : i32
        %361 = arith.subi %348, %360 : i32
        %c0_i32_106 = arith.constant 0 : i32
        %362 = arith.select %351, %346, %c0_i32_106 : i32
        %363 = arith.subi %361, %362 : i32
        %c0_i32_107 = arith.constant 0 : i32
        %364 = arith.select %354, %347, %c0_i32_107 : i32
        %365 = arith.subi %363, %364 : i32
        %c5_108 = arith.constant 5 : index
        %366 = memref.load %arg7[%c5_108] : memref<8xi32, #tpu.memory_space<smem>>
        %367 = arith.shli %359, %39 : i32
        %368 = arith.ori %366, %367 : i32
        %c5_109 = arith.constant 5 : index
        %369 = memref.load %arg6[%c5_109] : memref<8xi32, #tpu.memory_space<smem>>
        memref.store %365, %arg6[%c5_109] : memref<8xi32, #tpu.memory_space<smem>>
        %c5_110 = arith.constant 5 : index
        %370 = memref.load %arg7[%c5_110] : memref<8xi32, #tpu.memory_space<smem>>
        memref.store %368, %arg7[%c5_110] : memref<8xi32, #tpu.memory_space<smem>>
        %c18_111 = arith.constant 18 : index
        %371 = memref.load %arg9[%c18_111] : memref<24xi32, #tpu.memory_space<smem>>
        %c19_112 = arith.constant 19 : index
        %372 = memref.load %arg9[%c19_112] : memref<24xi32, #tpu.memory_space<smem>>
        %c20_113 = arith.constant 20 : index
        %373 = memref.load %arg9[%c20_113] : memref<24xi32, #tpu.memory_space<smem>>
        %c6_114 = arith.constant 6 : index
        %374 = memref.load %arg6[%c6_114] : memref<8xi32, #tpu.memory_space<smem>>
        %375 = arith.cmpi sge, %374, %371 : i32
        %376 = arith.addi %371, %372 : i32
        %377 = arith.cmpi sge, %374, %376 : i32
        %378 = arith.addi %371, %372 : i32
        %379 = arith.addi %378, %373 : i32
        %380 = arith.cmpi sge, %374, %379 : i32
        %381 = arith.extui %375 : i1 to i32
        %382 = arith.extui %377 : i1 to i32
        %383 = arith.addi %381, %382 : i32
        %384 = arith.extui %380 : i1 to i32
        %385 = arith.addi %383, %384 : i32
        %c0_i32_115 = arith.constant 0 : i32
        %386 = arith.select %375, %371, %c0_i32_115 : i32
        %387 = arith.subi %374, %386 : i32
        %c0_i32_116 = arith.constant 0 : i32
        %388 = arith.select %377, %372, %c0_i32_116 : i32
        %389 = arith.subi %387, %388 : i32
        %c0_i32_117 = arith.constant 0 : i32
        %390 = arith.select %380, %373, %c0_i32_117 : i32
        %391 = arith.subi %389, %390 : i32
        %c6_118 = arith.constant 6 : index
        %392 = memref.load %arg7[%c6_118] : memref<8xi32, #tpu.memory_space<smem>>
        %393 = arith.shli %385, %39 : i32
        %394 = arith.ori %392, %393 : i32
        %c6_119 = arith.constant 6 : index
        %395 = memref.load %arg6[%c6_119] : memref<8xi32, #tpu.memory_space<smem>>
        memref.store %391, %arg6[%c6_119] : memref<8xi32, #tpu.memory_space<smem>>
        %c6_120 = arith.constant 6 : index
        %396 = memref.load %arg7[%c6_120] : memref<8xi32, #tpu.memory_space<smem>>
        memref.store %394, %arg7[%c6_120] : memref<8xi32, #tpu.memory_space<smem>>
        %c21_121 = arith.constant 21 : index
        %397 = memref.load %arg9[%c21_121] : memref<24xi32, #tpu.memory_space<smem>>
        %c22_122 = arith.constant 22 : index
        %398 = memref.load %arg9[%c22_122] : memref<24xi32, #tpu.memory_space<smem>>
        %c23_123 = arith.constant 23 : index
        %399 = memref.load %arg9[%c23_123] : memref<24xi32, #tpu.memory_space<smem>>
        %c7_124 = arith.constant 7 : index
        %400 = memref.load %arg6[%c7_124] : memref<8xi32, #tpu.memory_space<smem>>
        %401 = arith.cmpi sge, %400, %397 : i32
        %402 = arith.addi %397, %398 : i32
        %403 = arith.cmpi sge, %400, %402 : i32
        %404 = arith.addi %397, %398 : i32
        %405 = arith.addi %404, %399 : i32
        %406 = arith.cmpi sge, %400, %405 : i32
        %407 = arith.extui %401 : i1 to i32
        %408 = arith.extui %403 : i1 to i32
        %409 = arith.addi %407, %408 : i32
        %410 = arith.extui %406 : i1 to i32
        %411 = arith.addi %409, %410 : i32
        %c0_i32_125 = arith.constant 0 : i32
        %412 = arith.select %401, %397, %c0_i32_125 : i32
        %413 = arith.subi %400, %412 : i32
        %c0_i32_126 = arith.constant 0 : i32
        %414 = arith.select %403, %398, %c0_i32_126 : i32
        %415 = arith.subi %413, %414 : i32
        %c0_i32_127 = arith.constant 0 : i32
        %416 = arith.select %406, %399, %c0_i32_127 : i32
        %417 = arith.subi %415, %416 : i32
        %c7_128 = arith.constant 7 : index
        %418 = memref.load %arg7[%c7_128] : memref<8xi32, #tpu.memory_space<smem>>
        %419 = arith.shli %411, %39 : i32
        %420 = arith.ori %418, %419 : i32
        %c7_129 = arith.constant 7 : index
        %421 = memref.load %arg6[%c7_129] : memref<8xi32, #tpu.memory_space<smem>>
        memref.store %417, %arg6[%c7_129] : memref<8xi32, #tpu.memory_space<smem>>
        %c7_130 = arith.constant 7 : index
        %422 = memref.load %arg7[%c7_130] : memref<8xi32, #tpu.memory_space<smem>>
        memref.store %420, %arg7[%c7_130] : memref<8xi32, #tpu.memory_space<smem>>
        %c0_131 = arith.constant 0 : index
        %423 = memref.load %arg8[%c0_131] : memref<2xi32, #tpu.memory_space<smem>>
        %424 = arith.ori %423, %40 : i32
        %425 = arith.ori %424, %42 : i32
        %c0_132 = arith.constant 0 : index
        %426 = memref.load %arg8[%c0_132] : memref<2xi32, #tpu.memory_space<smem>>
        %427 = arith.select %43, %425, %426 : i32
        %c0_133 = arith.constant 0 : index
        %428 = memref.load %arg8[%c0_133] : memref<2xi32, #tpu.memory_space<smem>>
        memref.store %427, %arg8[%c0_133] : memref<2xi32, #tpu.memory_space<smem>>
        %c1_134 = arith.constant 1 : index
        %429 = memref.load %arg8[%c1_134] : memref<2xi32, #tpu.memory_space<smem>>
        %430 = arith.ori %429, %40 : i32
        %431 = arith.ori %430, %42 : i32
        %c1_135 = arith.constant 1 : index
        %432 = memref.load %arg8[%c1_135] : memref<2xi32, #tpu.memory_space<smem>>
        memref.store %431, %arg8[%c1_135] : memref<2xi32, #tpu.memory_space<smem>>
      } else {
      }
    } else {
    }
    %c17_i32 = arith.constant 17 : i32
    %32 = arith.cmpi eq, %arg0, %c17_i32 : i32
    %33 = arith.extui %32 : i1 to i32
    %c0_i32_14 = arith.constant 0 : i32
    %34 = arith.cmpi ne, %33, %c0_i32_14 : i32
    scf.if %34 {
      %38 = arith.extui %0 : i1 to i32
      %c0_i32_16 = arith.constant 0 : i32
      %39 = arith.cmpi ne, %38, %c0_i32_16 : i32
      scf.if %39 {
        %cst_57 = arith.constant 0.000000e+00 : f32
        %c0_58 = arith.constant 0 : index
        %156 = memref.load %arg10[%c0_58] : memref<8xf32, #tpu.memory_space<smem>>
        memref.store %cst_57, %arg10[%c0_58] : memref<8xf32, #tpu.memory_space<smem>>
        %cst_59 = arith.constant 0.000000e+00 : f32
        %c1_60 = arith.constant 1 : index
        %157 = memref.load %arg10[%c1_60] : memref<8xf32, #tpu.memory_space<smem>>
        memref.store %cst_59, %arg10[%c1_60] : memref<8xf32, #tpu.memory_space<smem>>
        %cst_61 = arith.constant 0.000000e+00 : f32
        %c2_62 = arith.constant 2 : index
        %158 = memref.load %arg10[%c2_62] : memref<8xf32, #tpu.memory_space<smem>>
        memref.store %cst_61, %arg10[%c2_62] : memref<8xf32, #tpu.memory_space<smem>>
        %cst_63 = arith.constant 0.000000e+00 : f32
        %c3_64 = arith.constant 3 : index
        %159 = memref.load %arg10[%c3_64] : memref<8xf32, #tpu.memory_space<smem>>
        memref.store %cst_63, %arg10[%c3_64] : memref<8xf32, #tpu.memory_space<smem>>
        %cst_65 = arith.constant 0.000000e+00 : f32
        %c4_66 = arith.constant 4 : index
        %160 = memref.load %arg10[%c4_66] : memref<8xf32, #tpu.memory_space<smem>>
        memref.store %cst_65, %arg10[%c4_66] : memref<8xf32, #tpu.memory_space<smem>>
        %cst_67 = arith.constant 0.000000e+00 : f32
        %c5_68 = arith.constant 5 : index
        %161 = memref.load %arg10[%c5_68] : memref<8xf32, #tpu.memory_space<smem>>
        memref.store %cst_67, %arg10[%c5_68] : memref<8xf32, #tpu.memory_space<smem>>
        %cst_69 = arith.constant 0.000000e+00 : f32
        %c6_70 = arith.constant 6 : index
        %162 = memref.load %arg10[%c6_70] : memref<8xf32, #tpu.memory_space<smem>>
        memref.store %cst_69, %arg10[%c6_70] : memref<8xf32, #tpu.memory_space<smem>>
        %cst_71 = arith.constant 0.000000e+00 : f32
        %c7_72 = arith.constant 7 : index
        %163 = memref.load %arg10[%c7_72] : memref<8xf32, #tpu.memory_space<smem>>
        memref.store %cst_71, %arg10[%c7_72] : memref<8xf32, #tpu.memory_space<smem>>
      } else {
      }
      %c-2147483648_i32 = arith.constant -2147483648 : i32
      %40 = vector.broadcast %c-2147483648_i32 : i32 to vector<16x128xi32>
      %c-2147483648_i32_17 = arith.constant -2147483648 : i32
      %41 = vector.broadcast %c-2147483648_i32_17 : i32 to vector<16x128xi32>
      %c0_18 = arith.constant 0 : index
      %42 = memref.load %arg7[%c0_18] : memref<8xi32, #tpu.memory_space<smem>>
      %43 = vector.broadcast %42 : i32 to vector<16x128xi32>
      %44 = arith.select %8, %43, %40 : vector<16x128xi1>, vector<16x128xi32>
      %c4 = arith.constant 4 : index
      %45 = memref.load %arg7[%c4] : memref<8xi32, #tpu.memory_space<smem>>
      %46 = vector.broadcast %45 : i32 to vector<16x128xi32>
      %47 = arith.select %8, %46, %41 : vector<16x128xi1>, vector<16x128xi32>
      %c1 = arith.constant 1 : index
      %48 = memref.load %arg7[%c1] : memref<8xi32, #tpu.memory_space<smem>>
      %49 = vector.broadcast %48 : i32 to vector<16x128xi32>
      %50 = arith.select %13, %49, %44 : vector<16x128xi1>, vector<16x128xi32>
      %c5 = arith.constant 5 : index
      %51 = memref.load %arg7[%c5] : memref<8xi32, #tpu.memory_space<smem>>
      %52 = vector.broadcast %51 : i32 to vector<16x128xi32>
      %53 = arith.select %13, %52, %47 : vector<16x128xi1>, vector<16x128xi32>
      %c2 = arith.constant 2 : index
      %54 = memref.load %arg7[%c2] : memref<8xi32, #tpu.memory_space<smem>>
      %55 = vector.broadcast %54 : i32 to vector<16x128xi32>
      %56 = arith.select %18, %55, %50 : vector<16x128xi1>, vector<16x128xi32>
      %c6 = arith.constant 6 : index
      %57 = memref.load %arg7[%c6] : memref<8xi32, #tpu.memory_space<smem>>
      %58 = vector.broadcast %57 : i32 to vector<16x128xi32>
      %59 = arith.select %18, %58, %53 : vector<16x128xi1>, vector<16x128xi32>
      %c3 = arith.constant 3 : index
      %60 = memref.load %arg7[%c3] : memref<8xi32, #tpu.memory_space<smem>>
      %61 = vector.broadcast %60 : i32 to vector<16x128xi32>
      %62 = arith.select %23, %61, %56 : vector<16x128xi1>, vector<16x128xi32>
      %c7 = arith.constant 7 : index
      %63 = memref.load %arg7[%c7] : memref<8xi32, #tpu.memory_space<smem>>
      %64 = vector.broadcast %63 : i32 to vector<16x128xi32>
      %65 = arith.select %23, %64, %59 : vector<16x128xi1>, vector<16x128xi32>
      %c0_i32_19 = arith.constant 0 : i32
      %66 = vector.broadcast %c0_i32_19 : i32 to vector<16x128xi32>
      %67 = arith.cmpi slt, %62, %66 : vector<16x128xi32>
      %c-2147483648_i32_20 = arith.constant -2147483648 : i32
      %68 = vector.broadcast %c-2147483648_i32_20 : i32 to vector<16x128xi32>
      %69 = arith.xori %62, %68 : vector<16x128xi32>
      %cst_21 = arith.constant dense<-1> : vector<16x128xi32>
      %70 = arith.xori %62, %cst_21 : vector<16x128xi32>
      %71 = arith.select %67, %69, %70 : vector<16x128xi1>, vector<16x128xi32>
      %72 = tpu.bitcast %71 : vector<16x128xi32> -> vector<16x128xf32>
      %73 = arith.subf %2, %72 : vector<16x128xf32>
      %74 = math.absf %73 : vector<16x128xf32>
      %c0_i32_22 = arith.constant 0 : i32
      %75 = vector.broadcast %c0_i32_22 : i32 to vector<16x128xi32>
      %76 = arith.cmpi slt, %65, %75 : vector<16x128xi32>
      %c-2147483648_i32_23 = arith.constant -2147483648 : i32
      %77 = vector.broadcast %c-2147483648_i32_23 : i32 to vector<16x128xi32>
      %78 = arith.xori %65, %77 : vector<16x128xi32>
      %cst_24 = arith.constant dense<-1> : vector<16x128xi32>
      %79 = arith.xori %65, %cst_24 : vector<16x128xi32>
      %80 = arith.select %76, %78, %79 : vector<16x128xi1>, vector<16x128xi32>
      %81 = tpu.bitcast %80 : vector<16x128xi32> -> vector<16x128xf32>
      %82 = arith.subf %3, %81 : vector<16x128xf32>
      %83 = math.absf %82 : vector<16x128xf32>
      %c0_25 = arith.constant 0 : index
      %84 = memref.load %arg10[%c0_25] : memref<8xf32, #tpu.memory_space<smem>>
      %cst_26 = arith.constant 0.000000e+00 : f32
      %85 = vector.broadcast %cst_26 : f32 to vector<16x128xf32>
      %86 = arith.select %8, %74, %85 : vector<16x128xi1>, vector<16x128xf32>
      %87 = vector.shape_cast %86 : vector<16x128xf32> to vector<1x16x128xf32>
      %cst_27 = arith.constant dense<0.000000e+00> : vector<1xf32>
      %88 = vector.multi_reduction <add>, %87, %cst_27 [1, 2] : vector<1x16x128xf32> to vector<1xf32>
      %89 = vector.shape_cast %88 : vector<1xf32> to vector<1x1x1xf32>
      %90 = vector.extract %89[0, 0, 0] : f32 from vector<1x1x1xf32>
      %91 = arith.addf %84, %90 : f32
      %c0_28 = arith.constant 0 : index
      %92 = memref.load %arg10[%c0_28] : memref<8xf32, #tpu.memory_space<smem>>
      memref.store %91, %arg10[%c0_28] : memref<8xf32, #tpu.memory_space<smem>>
      %c4_29 = arith.constant 4 : index
      %93 = memref.load %arg10[%c4_29] : memref<8xf32, #tpu.memory_space<smem>>
      %cst_30 = arith.constant 0.000000e+00 : f32
      %94 = vector.broadcast %cst_30 : f32 to vector<16x128xf32>
      %95 = arith.select %8, %83, %94 : vector<16x128xi1>, vector<16x128xf32>
      %96 = vector.shape_cast %95 : vector<16x128xf32> to vector<1x16x128xf32>
      %cst_31 = arith.constant dense<0.000000e+00> : vector<1xf32>
      %97 = vector.multi_reduction <add>, %96, %cst_31 [1, 2] : vector<1x16x128xf32> to vector<1xf32>
      %98 = vector.shape_cast %97 : vector<1xf32> to vector<1x1x1xf32>
      %99 = vector.extract %98[0, 0, 0] : f32 from vector<1x1x1xf32>
      %100 = arith.addf %93, %99 : f32
      %c4_32 = arith.constant 4 : index
      %101 = memref.load %arg10[%c4_32] : memref<8xf32, #tpu.memory_space<smem>>
      memref.store %100, %arg10[%c4_32] : memref<8xf32, #tpu.memory_space<smem>>
      %c1_33 = arith.constant 1 : index
      %102 = memref.load %arg10[%c1_33] : memref<8xf32, #tpu.memory_space<smem>>
      %cst_34 = arith.constant 0.000000e+00 : f32
      %103 = vector.broadcast %cst_34 : f32 to vector<16x128xf32>
      %104 = arith.select %13, %74, %103 : vector<16x128xi1>, vector<16x128xf32>
      %105 = vector.shape_cast %104 : vector<16x128xf32> to vector<1x16x128xf32>
      %cst_35 = arith.constant dense<0.000000e+00> : vector<1xf32>
      %106 = vector.multi_reduction <add>, %105, %cst_35 [1, 2] : vector<1x16x128xf32> to vector<1xf32>
      %107 = vector.shape_cast %106 : vector<1xf32> to vector<1x1x1xf32>
      %108 = vector.extract %107[0, 0, 0] : f32 from vector<1x1x1xf32>
      %109 = arith.addf %102, %108 : f32
      %c1_36 = arith.constant 1 : index
      %110 = memref.load %arg10[%c1_36] : memref<8xf32, #tpu.memory_space<smem>>
      memref.store %109, %arg10[%c1_36] : memref<8xf32, #tpu.memory_space<smem>>
      %c5_37 = arith.constant 5 : index
      %111 = memref.load %arg10[%c5_37] : memref<8xf32, #tpu.memory_space<smem>>
      %cst_38 = arith.constant 0.000000e+00 : f32
      %112 = vector.broadcast %cst_38 : f32 to vector<16x128xf32>
      %113 = arith.select %13, %83, %112 : vector<16x128xi1>, vector<16x128xf32>
      %114 = vector.shape_cast %113 : vector<16x128xf32> to vector<1x16x128xf32>
      %cst_39 = arith.constant dense<0.000000e+00> : vector<1xf32>
      %115 = vector.multi_reduction <add>, %114, %cst_39 [1, 2] : vector<1x16x128xf32> to vector<1xf32>
      %116 = vector.shape_cast %115 : vector<1xf32> to vector<1x1x1xf32>
      %117 = vector.extract %116[0, 0, 0] : f32 from vector<1x1x1xf32>
      %118 = arith.addf %111, %117 : f32
      %c5_40 = arith.constant 5 : index
      %119 = memref.load %arg10[%c5_40] : memref<8xf32, #tpu.memory_space<smem>>
      memref.store %118, %arg10[%c5_40] : memref<8xf32, #tpu.memory_space<smem>>
      %c2_41 = arith.constant 2 : index
      %120 = memref.load %arg10[%c2_41] : memref<8xf32, #tpu.memory_space<smem>>
      %cst_42 = arith.constant 0.000000e+00 : f32
      %121 = vector.broadcast %cst_42 : f32 to vector<16x128xf32>
      %122 = arith.select %18, %74, %121 : vector<16x128xi1>, vector<16x128xf32>
      %123 = vector.shape_cast %122 : vector<16x128xf32> to vector<1x16x128xf32>
      %cst_43 = arith.constant dense<0.000000e+00> : vector<1xf32>
      %124 = vector.multi_reduction <add>, %123, %cst_43 [1, 2] : vector<1x16x128xf32> to vector<1xf32>
      %125 = vector.shape_cast %124 : vector<1xf32> to vector<1x1x1xf32>
      %126 = vector.extract %125[0, 0, 0] : f32 from vector<1x1x1xf32>
      %127 = arith.addf %120, %126 : f32
      %c2_44 = arith.constant 2 : index
      %128 = memref.load %arg10[%c2_44] : memref<8xf32, #tpu.memory_space<smem>>
      memref.store %127, %arg10[%c2_44] : memref<8xf32, #tpu.memory_space<smem>>
      %c6_45 = arith.constant 6 : index
      %129 = memref.load %arg10[%c6_45] : memref<8xf32, #tpu.memory_space<smem>>
      %cst_46 = arith.constant 0.000000e+00 : f32
      %130 = vector.broadcast %cst_46 : f32 to vector<16x128xf32>
      %131 = arith.select %18, %83, %130 : vector<16x128xi1>, vector<16x128xf32>
      %132 = vector.shape_cast %131 : vector<16x128xf32> to vector<1x16x128xf32>
      %cst_47 = arith.constant dense<0.000000e+00> : vector<1xf32>
      %133 = vector.multi_reduction <add>, %132, %cst_47 [1, 2] : vector<1x16x128xf32> to vector<1xf32>
      %134 = vector.shape_cast %133 : vector<1xf32> to vector<1x1x1xf32>
      %135 = vector.extract %134[0, 0, 0] : f32 from vector<1x1x1xf32>
      %136 = arith.addf %129, %135 : f32
      %c6_48 = arith.constant 6 : index
      %137 = memref.load %arg10[%c6_48] : memref<8xf32, #tpu.memory_space<smem>>
      memref.store %136, %arg10[%c6_48] : memref<8xf32, #tpu.memory_space<smem>>
      %c3_49 = arith.constant 3 : index
      %138 = memref.load %arg10[%c3_49] : memref<8xf32, #tpu.memory_space<smem>>
      %cst_50 = arith.constant 0.000000e+00 : f32
      %139 = vector.broadcast %cst_50 : f32 to vector<16x128xf32>
      %140 = arith.select %23, %74, %139 : vector<16x128xi1>, vector<16x128xf32>
      %141 = vector.shape_cast %140 : vector<16x128xf32> to vector<1x16x128xf32>
      %cst_51 = arith.constant dense<0.000000e+00> : vector<1xf32>
      %142 = vector.multi_reduction <add>, %141, %cst_51 [1, 2] : vector<1x16x128xf32> to vector<1xf32>
      %143 = vector.shape_cast %142 : vector<1xf32> to vector<1x1x1xf32>
      %144 = vector.extract %143[0, 0, 0] : f32 from vector<1x1x1xf32>
      %145 = arith.addf %138, %144 : f32
      %c3_52 = arith.constant 3 : index
      %146 = memref.load %arg10[%c3_52] : memref<8xf32, #tpu.memory_space<smem>>
      memref.store %145, %arg10[%c3_52] : memref<8xf32, #tpu.memory_space<smem>>
      %c7_53 = arith.constant 7 : index
      %147 = memref.load %arg10[%c7_53] : memref<8xf32, #tpu.memory_space<smem>>
      %cst_54 = arith.constant 0.000000e+00 : f32
      %148 = vector.broadcast %cst_54 : f32 to vector<16x128xf32>
      %149 = arith.select %23, %83, %148 : vector<16x128xi1>, vector<16x128xf32>
      %150 = vector.shape_cast %149 : vector<16x128xf32> to vector<1x16x128xf32>
      %cst_55 = arith.constant dense<0.000000e+00> : vector<1xf32>
      %151 = vector.multi_reduction <add>, %150, %cst_55 [1, 2] : vector<1x16x128xf32> to vector<1xf32>
      %152 = vector.shape_cast %151 : vector<1xf32> to vector<1x1x1xf32>
      %153 = vector.extract %152[0, 0, 0] : f32 from vector<1x1x1xf32>
      %154 = arith.addf %147, %153 : f32
      %c7_56 = arith.constant 7 : index
      %155 = memref.load %arg10[%c7_56] : memref<8xf32, #tpu.memory_space<smem>>
      memref.store %154, %arg10[%c7_56] : memref<8xf32, #tpu.memory_space<smem>>
    } else {
    }
    %c18_i32 = arith.constant 18 : i32
    %35 = arith.cmpi eq, %arg0, %c18_i32 : i32
    %36 = arith.extui %35 : i1 to i32
    %c0_i32_15 = arith.constant 0 : i32
    %37 = arith.cmpi ne, %36, %c0_i32_15 : i32
    scf.if %37 {
      %38 = arith.extui %0 : i1 to i32
      %c0_i32_16 = arith.constant 0 : i32
      %39 = arith.cmpi ne, %38, %c0_i32_16 : i32
      scf.if %39 {
        %cst_87 = arith.constant 0.000000e+00 : f32
        %190 = vector.broadcast %cst_87 : f32 to vector<1x128xf32>
        %c0_88 = arith.constant 0 : index
        %c0_89 = arith.constant 0 : index
        %191 = vector.load %arg4[%c0_88, %c0_89] : memref<1x128xf32, #tpu.memory_space<vmem>>, vector<1x128xf32>
        tpu.vector_store %arg4[%c0_88, %c0_89], %190 {strides = array<i32>} : memref<1x128xf32, #tpu.memory_space<vmem>>, vector<1x128xf32>,
      } else {
      }
      %c-2147483648_i32 = arith.constant -2147483648 : i32
      %40 = vector.broadcast %c-2147483648_i32 : i32 to vector<16x128xi32>
      %c-2147483648_i32_17 = arith.constant -2147483648 : i32
      %41 = vector.broadcast %c-2147483648_i32_17 : i32 to vector<16x128xi32>
      %cst_18 = arith.constant 0.000000e+00 : f32
      %42 = vector.broadcast %cst_18 : f32 to vector<16x128xf32>
      %cst_19 = arith.constant 0.000000e+00 : f32
      %43 = vector.broadcast %cst_19 : f32 to vector<16x128xf32>
      %cst_20 = arith.constant 0.000000e+00 : f32
      %44 = vector.broadcast %cst_20 : f32 to vector<16x128xf32>
      %c0_21 = arith.constant 0 : index
      %45 = memref.load %arg5[%c0_21] : memref<4xi32, #tpu.memory_space<smem>>
      %c0_i32_22 = arith.constant 0 : i32
      %46 = arith.cmpi sgt, %45, %c0_i32_22 : i32
      %47 = arith.sitofp %45 : i32 to f32
      %cst_23 = arith.constant 1.000000e+00 : f32
      %48 = arith.divf %cst_23, %47 : f32
      %cst_24 = arith.constant 0.000000e+00 : f32
      %49 = arith.select %46, %48, %cst_24 : f32
      %c0_25 = arith.constant 0 : index
      %50 = memref.load %arg10[%c0_25] : memref<8xf32, #tpu.memory_space<smem>>
      %51 = arith.mulf %50, %49 : f32
      %c4 = arith.constant 4 : index
      %52 = memref.load %arg10[%c4] : memref<8xf32, #tpu.memory_space<smem>>
      %53 = arith.mulf %52, %49 : f32
      %cst_26 = arith.constant 9.99999997E-7 : f32
      %54 = arith.addf %53, %cst_26 : f32
      %cst_27 = arith.constant 1.000000e+00 : f32
      %55 = arith.divf %cst_27, %54 : f32
      %cst_28 = arith.constant 0.000000e+00 : f32
      %56 = arith.select %46, %55, %cst_28 : f32
      %cst_29 = arith.constant 9.99999997E-7 : f32
      %57 = arith.addf %51, %cst_29 : f32
      %cst_30 = arith.constant 1.000000e+00 : f32
      %58 = arith.divf %cst_30, %57 : f32
      %cst_31 = arith.constant 0.000000e+00 : f32
      %59 = arith.select %46, %58, %cst_31 : f32
      %cst_32 = arith.constant 2.500000e-01 : f32
      %60 = arith.mulf %49, %cst_32 : f32
      %c0_33 = arith.constant 0 : index
      %61 = memref.load %arg7[%c0_33] : memref<8xi32, #tpu.memory_space<smem>>
      %62 = vector.broadcast %61 : i32 to vector<16x128xi32>
      %63 = arith.select %8, %62, %40 : vector<16x128xi1>, vector<16x128xi32>
      %c4_34 = arith.constant 4 : index
      %64 = memref.load %arg7[%c4_34] : memref<8xi32, #tpu.memory_space<smem>>
      %65 = vector.broadcast %64 : i32 to vector<16x128xi32>
      %66 = arith.select %8, %65, %41 : vector<16x128xi1>, vector<16x128xi32>
      %67 = vector.broadcast %56 : f32 to vector<16x128xf32>
      %68 = arith.select %8, %67, %42 : vector<16x128xi1>, vector<16x128xf32>
      %69 = vector.broadcast %59 : f32 to vector<16x128xf32>
      %70 = arith.select %8, %69, %43 : vector<16x128xi1>, vector<16x128xf32>
      %71 = vector.broadcast %60 : f32 to vector<16x128xf32>
      %72 = arith.select %8, %71, %44 : vector<16x128xi1>, vector<16x128xf32>
      %c1 = arith.constant 1 : index
      %73 = memref.load %arg5[%c1] : memref<4xi32, #tpu.memory_space<smem>>
      %c0_i32_35 = arith.constant 0 : i32
      %74 = arith.cmpi sgt, %73, %c0_i32_35 : i32
      %75 = arith.sitofp %73 : i32 to f32
      %cst_36 = arith.constant 1.000000e+00 : f32
      %76 = arith.divf %cst_36, %75 : f32
      %cst_37 = arith.constant 0.000000e+00 : f32
      %77 = arith.select %74, %76, %cst_37 : f32
      %c1_38 = arith.constant 1 : index
      %78 = memref.load %arg10[%c1_38] : memref<8xf32, #tpu.memory_space<smem>>
      %79 = arith.mulf %78, %77 : f32
      %c5 = arith.constant 5 : index
      %80 = memref.load %arg10[%c5] : memref<8xf32, #tpu.memory_space<smem>>
      %81 = arith.mulf %80, %77 : f32
      %cst_39 = arith.constant 9.99999997E-7 : f32
      %82 = arith.addf %81, %cst_39 : f32
      %cst_40 = arith.constant 1.000000e+00 : f32
      %83 = arith.divf %cst_40, %82 : f32
      %cst_41 = arith.constant 0.000000e+00 : f32
      %84 = arith.select %74, %83, %cst_41 : f32
      %cst_42 = arith.constant 9.99999997E-7 : f32
      %85 = arith.addf %79, %cst_42 : f32
      %cst_43 = arith.constant 1.000000e+00 : f32
      %86 = arith.divf %cst_43, %85 : f32
      %cst_44 = arith.constant 0.000000e+00 : f32
      %87 = arith.select %74, %86, %cst_44 : f32
      %cst_45 = arith.constant 2.500000e-01 : f32
      %88 = arith.mulf %77, %cst_45 : f32
      %c1_46 = arith.constant 1 : index
      %89 = memref.load %arg7[%c1_46] : memref<8xi32, #tpu.memory_space<smem>>
      %90 = vector.broadcast %89 : i32 to vector<16x128xi32>
      %91 = arith.select %13, %90, %63 : vector<16x128xi1>, vector<16x128xi32>
      %c5_47 = arith.constant 5 : index
      %92 = memref.load %arg7[%c5_47] : memref<8xi32, #tpu.memory_space<smem>>
      %93 = vector.broadcast %92 : i32 to vector<16x128xi32>
      %94 = arith.select %13, %93, %66 : vector<16x128xi1>, vector<16x128xi32>
      %95 = vector.broadcast %84 : f32 to vector<16x128xf32>
      %96 = arith.select %13, %95, %68 : vector<16x128xi1>, vector<16x128xf32>
      %97 = vector.broadcast %87 : f32 to vector<16x128xf32>
      %98 = arith.select %13, %97, %70 : vector<16x128xi1>, vector<16x128xf32>
      %99 = vector.broadcast %88 : f32 to vector<16x128xf32>
      %100 = arith.select %13, %99, %72 : vector<16x128xi1>, vector<16x128xf32>
      %c2 = arith.constant 2 : index
      %101 = memref.load %arg5[%c2] : memref<4xi32, #tpu.memory_space<smem>>
      %c0_i32_48 = arith.constant 0 : i32
      %102 = arith.cmpi sgt, %101, %c0_i32_48 : i32
      %103 = arith.sitofp %101 : i32 to f32
      %cst_49 = arith.constant 1.000000e+00 : f32
      %104 = arith.divf %cst_49, %103 : f32
      %cst_50 = arith.constant 0.000000e+00 : f32
      %105 = arith.select %102, %104, %cst_50 : f32
      %c2_51 = arith.constant 2 : index
      %106 = memref.load %arg10[%c2_51] : memref<8xf32, #tpu.memory_space<smem>>
      %107 = arith.mulf %106, %105 : f32
      %c6 = arith.constant 6 : index
      %108 = memref.load %arg10[%c6] : memref<8xf32, #tpu.memory_space<smem>>
      %109 = arith.mulf %108, %105 : f32
      %cst_52 = arith.constant 9.99999997E-7 : f32
      %110 = arith.addf %109, %cst_52 : f32
      %cst_53 = arith.constant 1.000000e+00 : f32
      %111 = arith.divf %cst_53, %110 : f32
      %cst_54 = arith.constant 0.000000e+00 : f32
      %112 = arith.select %102, %111, %cst_54 : f32
      %cst_55 = arith.constant 9.99999997E-7 : f32
      %113 = arith.addf %107, %cst_55 : f32
      %cst_56 = arith.constant 1.000000e+00 : f32
      %114 = arith.divf %cst_56, %113 : f32
      %cst_57 = arith.constant 0.000000e+00 : f32
      %115 = arith.select %102, %114, %cst_57 : f32
      %cst_58 = arith.constant 2.500000e-01 : f32
      %116 = arith.mulf %105, %cst_58 : f32
      %c2_59 = arith.constant 2 : index
      %117 = memref.load %arg7[%c2_59] : memref<8xi32, #tpu.memory_space<smem>>
      %118 = vector.broadcast %117 : i32 to vector<16x128xi32>
      %119 = arith.select %18, %118, %91 : vector<16x128xi1>, vector<16x128xi32>
      %c6_60 = arith.constant 6 : index
      %120 = memref.load %arg7[%c6_60] : memref<8xi32, #tpu.memory_space<smem>>
      %121 = vector.broadcast %120 : i32 to vector<16x128xi32>
      %122 = arith.select %18, %121, %94 : vector<16x128xi1>, vector<16x128xi32>
      %123 = vector.broadcast %112 : f32 to vector<16x128xf32>
      %124 = arith.select %18, %123, %96 : vector<16x128xi1>, vector<16x128xf32>
      %125 = vector.broadcast %115 : f32 to vector<16x128xf32>
      %126 = arith.select %18, %125, %98 : vector<16x128xi1>, vector<16x128xf32>
      %127 = vector.broadcast %116 : f32 to vector<16x128xf32>
      %128 = arith.select %18, %127, %100 : vector<16x128xi1>, vector<16x128xf32>
      %c3 = arith.constant 3 : index
      %129 = memref.load %arg5[%c3] : memref<4xi32, #tpu.memory_space<smem>>
      %c0_i32_61 = arith.constant 0 : i32
      %130 = arith.cmpi sgt, %129, %c0_i32_61 : i32
      %131 = arith.sitofp %129 : i32 to f32
      %cst_62 = arith.constant 1.000000e+00 : f32
      %132 = arith.divf %cst_62, %131 : f32
      %cst_63 = arith.constant 0.000000e+00 : f32
      %133 = arith.select %130, %132, %cst_63 : f32
      %c3_64 = arith.constant 3 : index
      %134 = memref.load %arg10[%c3_64] : memref<8xf32, #tpu.memory_space<smem>>
      %135 = arith.mulf %134, %133 : f32
      %c7 = arith.constant 7 : index
      %136 = memref.load %arg10[%c7] : memref<8xf32, #tpu.memory_space<smem>>
      %137 = arith.mulf %136, %133 : f32
      %cst_65 = arith.constant 9.99999997E-7 : f32
      %138 = arith.addf %137, %cst_65 : f32
      %cst_66 = arith.constant 1.000000e+00 : f32
      %139 = arith.divf %cst_66, %138 : f32
      %cst_67 = arith.constant 0.000000e+00 : f32
      %140 = arith.select %130, %139, %cst_67 : f32
      %cst_68 = arith.constant 9.99999997E-7 : f32
      %141 = arith.addf %135, %cst_68 : f32
      %cst_69 = arith.constant 1.000000e+00 : f32
      %142 = arith.divf %cst_69, %141 : f32
      %cst_70 = arith.constant 0.000000e+00 : f32
      %143 = arith.select %130, %142, %cst_70 : f32
      %cst_71 = arith.constant 2.500000e-01 : f32
      %144 = arith.mulf %133, %cst_71 : f32
      %c3_72 = arith.constant 3 : index
      %145 = memref.load %arg7[%c3_72] : memref<8xi32, #tpu.memory_space<smem>>
      %146 = vector.broadcast %145 : i32 to vector<16x128xi32>
      %147 = arith.select %23, %146, %119 : vector<16x128xi1>, vector<16x128xi32>
      %c7_73 = arith.constant 7 : index
      %148 = memref.load %arg7[%c7_73] : memref<8xi32, #tpu.memory_space<smem>>
      %149 = vector.broadcast %148 : i32 to vector<16x128xi32>
      %150 = arith.select %23, %149, %122 : vector<16x128xi1>, vector<16x128xi32>
      %151 = vector.broadcast %140 : f32 to vector<16x128xf32>
      %152 = arith.select %23, %151, %124 : vector<16x128xi1>, vector<16x128xf32>
      %153 = vector.broadcast %143 : f32 to vector<16x128xf32>
      %154 = arith.select %23, %153, %126 : vector<16x128xi1>, vector<16x128xf32>
      %155 = vector.broadcast %144 : f32 to vector<16x128xf32>
      %156 = arith.select %23, %155, %128 : vector<16x128xi1>, vector<16x128xf32>
      %c0_i32_74 = arith.constant 0 : i32
      %157 = vector.broadcast %c0_i32_74 : i32 to vector<16x128xi32>
      %158 = arith.cmpi slt, %147, %157 : vector<16x128xi32>
      %c-2147483648_i32_75 = arith.constant -2147483648 : i32
      %159 = vector.broadcast %c-2147483648_i32_75 : i32 to vector<16x128xi32>
      %160 = arith.xori %147, %159 : vector<16x128xi32>
      %cst_76 = arith.constant dense<-1> : vector<16x128xi32>
      %161 = arith.xori %147, %cst_76 : vector<16x128xi32>
      %162 = arith.select %158, %160, %161 : vector<16x128xi1>, vector<16x128xi32>
      %163 = tpu.bitcast %162 : vector<16x128xi32> -> vector<16x128xf32>
      %c0_i32_77 = arith.constant 0 : i32
      %164 = vector.broadcast %c0_i32_77 : i32 to vector<16x128xi32>
      %165 = arith.cmpi slt, %150, %164 : vector<16x128xi32>
      %c-2147483648_i32_78 = arith.constant -2147483648 : i32
      %166 = vector.broadcast %c-2147483648_i32_78 : i32 to vector<16x128xi32>
      %167 = arith.xori %150, %166 : vector<16x128xi32>
      %cst_79 = arith.constant dense<-1> : vector<16x128xi32>
      %168 = arith.xori %150, %cst_79 : vector<16x128xi32>
      %169 = arith.select %165, %167, %168 : vector<16x128xi1>, vector<16x128xi32>
      %170 = tpu.bitcast %169 : vector<16x128xi32> -> vector<16x128xf32>
      %171 = arith.subf %3, %170 : vector<16x128xf32>
      %172 = arith.mulf %171, %152 : vector<16x128xf32>
      %173 = arith.subf %2, %163 : vector<16x128xf32>
      %174 = arith.mulf %173, %154 : vector<16x128xf32>
      %175 = arith.subf %172, %174 : vector<16x128xf32>
      %cst_80 = arith.constant 0.000000e+00 : f32
      %176 = vector.broadcast %cst_80 : f32 to vector<16x128xf32>
      %177 = arith.cmpf ogt, %156, %176 : vector<16x128xf32>
      %178 = math.absf %175 : vector<16x128xf32>
      %179 = arith.mulf %156, %178 : vector<16x128xf32>
      %cst_81 = arith.constant 0.000000e+00 : f32
      %180 = vector.broadcast %cst_81 : f32 to vector<16x128xf32>
      %181 = arith.select %177, %179, %180 : vector<16x128xi1>, vector<16x128xf32>
      %182 = vector.shape_cast %181 : vector<16x128xf32> to vector<1x16x128xf32>
      %cst_82 = arith.constant dense<0.000000e+00> : vector<1xf32>
      %183 = vector.multi_reduction <add>, %182, %cst_82 [1, 2] : vector<1x16x128xf32> to vector<1xf32>
      %184 = vector.shape_cast %183 : vector<1xf32> to vector<1x1x1xf32>
      %185 = vector.extract %184[0, 0, 0] : f32 from vector<1x1x1xf32>
      %c0_83 = arith.constant 0 : index
      %c0_84 = arith.constant 0 : index
      %186 = vector.load %arg4[%c0_83, %c0_84] : memref<1x128xf32, #tpu.memory_space<vmem>>, vector<1x128xf32>
      %187 = vector.broadcast %185 : f32 to vector<1x128xf32>
      %188 = arith.addf %186, %187 : vector<1x128xf32>
      %c0_85 = arith.constant 0 : index
      %c0_86 = arith.constant 0 : index
      %189 = vector.load %arg4[%c0_85, %c0_86] : memref<1x128xf32, #tpu.memory_space<vmem>>, vector<1x128xf32>
      tpu.vector_store %arg4[%c0_85, %c0_86], %188 {strides = array<i32>} : memref<1x128xf32, #tpu.memory_space<vmem>>, vector<1x128xf32>,
    } else {
    }
    return
  }
  func.func @transform_0(%arg0: i32, %arg1: i32) -> (i32, i32) {
    %c0_i32 = arith.constant 0 : i32
    %c0_i32_0 = arith.constant 0 : i32
    return %arg1, %c0_i32 : i32, i32
  }
  func.func @transform_1(%arg0: i32, %arg1: i32) -> (i32, i32) {
    %c0_i32 = arith.constant 0 : i32
    %c0_i32_0 = arith.constant 0 : i32
    return %arg1, %c0_i32 : i32, i32
  }
  func.func @transform_2(%arg0: i32, %arg1: i32) -> (i32, i32) {
    %c0_i32 = arith.constant 0 : i32
    %c0_i32_0 = arith.constant 0 : i32
    %c0_i32_1 = arith.constant 0 : i32
    return %c0_i32, %c0_i32_0 : i32, i32
  }
}

</mosaic_0001>

<bundles_post_ra>
// kernel: hdn_loss.1
= control target key start
LH: loop header
LB: loop body
LE: loop exit
PB: predicated region body
PF: predicated region fallthrough
CT: control target
= control target key end

     0   :  { %s3557_s0 = inlined_call_operand.vmem [shape: f32[16,128], index: 0, kind: input, shape index: {}]   ;;  %s3558_s1 = inlined_call_operand.vmem [shape: f32[16,128], index: 1, kind: input, shape index: {}]   ;;  %s3559_s2 = inlined_call_operand.hbm [shape: f32[1,128], index: 2, kind: output, shape index: {}]  }
   0x1   :  { %3605 = sst [smem:[#allocation26_spill]] %s3557_s0 }
   0x2   :  { %3606 = sst [smem:[#allocation27_spill]] %s3558_s1 }
   0x3   :  { %3607 = sst [smem:[#allocation28_spill]] %s3559_s2 }
   0x4   :  { %7 = vsyncpa [#allocation9], 0  ;;  %s2342_s9 = smov 0   ;;  %s2344_s10 = smov 0  }
   0x5   :  { %s2346_s11 = smov 0  }
   0x6 LB: > { %3608 = sst [smem:[#allocation11_spill]] %s2309_s10  ;;  %s25_s13 = sadd.s32 1, %s2309_s10  ;;  %s2313_s11 = sphi %s2346_s11, %s13_s11   ;;  %s2309_s10 = sphi %s2344_s10, %s3759_s10   ;;  %s2305_s9 = sphi %s2342_s9, %s3758_s9  }
   0x7   : > { %3609 = sst [smem:[#allocation12_spill]] %s2313_s11  ;;  %p27_p0 = scmp.ge.s32.totalorder %s25_s13, 19 }
   0x8   : > { %p1973_p1 = scmp.ge.s32.totalorder %s2313_s11, 1  ;;  %p132_p2 = scmp.lt.s32.totalorder %s2313_s11, 20 }
   0x9   : > { %s3761_s13 = smov (%p27_p0, %s25_s13), 0 }
   0xa   : > { %3610 = sst [smem:[#allocation13_spill]] %s3761_s13  ;;  %p133_p3 = pnand %p1973_p1, %p132_p2 }
   0xb   : > { %s3611_s1 = sld [smem:[#allocation27_spill]] (!%p133_p3)  ;;  %s3612_s0 = sld [smem:[#allocation26_spill]] (!%p133_p3)  ;;  %v3613_v4 = vmov (!%p133_p3), 0  ;;  %v3615_v5 = vmov (!%p133_p3), 0  ;;  %v3617_v6 = vmov (!%p133_p3), 0  ;;  %v3619_v7 = vmov (!%p133_p3), 0 }
   0xc   : > { %136 = sbr.rel (%p133_p3) target bundleno = 1761 (0x6e1), region = 28  ;;  %v3621_v8 = vmov (!%p133_p3), 0  ;;  %v3623_v9 = vmov (!%p133_p3), 0  ;;  %v3625_v10 = vmov (!%p133_p3), 0  ;;  %v3627_v11 = vmov (!%p133_p3), 0  ;;  %p1974_p4 = scmp.ne.s32.totalorder (!%p133_p3), %s2305_s9, 0 }
  0x11   : > { %v2366_v0 = vld [vmem:[%s3611_s1] sm:$0xff] (!%p133_p3)  ;;  %v2371_v1 = vld [vmem:[%s3611_s1 + $0x8] sm:$0xff] (!%p133_p3) }
  0x12   : > { %v2376_v2 = vld [vmem:[%s3612_s0] sm:$0xff] (!%p133_p3)  ;;  %v2381_v3 = vld [vmem:[%s3612_s0 + $0x8] sm:$0xff] (!%p133_p3)  ;;  %vm171_vm0 = vcmp.gt.f32.partialorder (!%p133_p3), %v2366_v0, 0.0  ;;  %vm172_vm1 = vcmp.gt.f32.partialorder (!%p133_p3), %v2371_v1, 0.0  ;;  %vm173_vm2 = vcmp.lt.f32.partialorder (!%p133_p3), %v2366_v0, 0.25  ;;  %vm174_vm3 = vcmp.lt.f32.partialorder (!%p133_p3), %v2371_v1, 0.25 }
  0x13   : > { %vm2387_vm4 = vmand %vm171_vm0, %vm173_vm2  ;;  %vm177_vm5 = vcmp.ge.f32.partialorder %v2366_v0, 0.25  ;;  %vm178_vm6 = vcmp.ge.f32.partialorder %v2371_v1, 0.25  ;;  %vm179_vm7 = vcmp.lt.f32.partialorder %v2366_v0, 0.5  ;;  %vm180_vm8 = vcmp.lt.f32.partialorder %v2371_v1, 0.5  ;;  %s2316_s22 = smov (!%p1974_p4), 0   ;;  %s2317_s23 = smov (!%p1974_p4), 2147483648  }
  0x14   : > { %v3614_v4 = vsel %vm2387_vm4, 4294967295, %v3613_v4  ;;  %vm2395_vm9 = vmand %vm172_vm1, %vm174_vm3  ;;  %vm183_vm10 = vcmp.ge.f32.partialorder %v2366_v0, 0.5  ;;  %vm185_vm11 = vcmp.lt.f32.partialorder %v2366_v0, 0.75  ;;  %vm184_vm13 = vcmp.ge.f32.partialorder %v2371_v1, 0.5  ;;  %329 = sst [smem:[#allocation4 + $0x4]] (!%p1974_p4), %s2316_s22  ;;  %s2318_s24 = smov (!%p1974_p4), 3221225472  }
  0x15   : > { %v3616_v5 = vsel %vm2395_vm9, 4294967295, %v3615_v5  ;;  %vm2401_vm12 = vmand %vm177_vm5, %vm179_vm7  ;;  %vm186_vm14 = vcmp.lt.f32.partialorder %v2371_v1, 0.75  ;;  %vm189_vm0 = vcmp.ge.f32.partialorder %v2366_v0, 0.75  ;;  %vm191_vm1 = vcmp.lt.f32.partialorder %v2366_v0, 1.0  ;;  %198 = sbr.rel (%p1974_p4) target bundleno = 264 (0x108), region = 32  ;;  %342 = sst [smem:[#allocation4 + $0x5]] (!%p1974_p4), %s2316_s22 }
  0x16   : > { %v3618_v6 = vsel %vm2401_vm12, 4294967295, %v3617_v6  ;;  %vm2407_vm15 = vmand %vm178_vm6, %vm180_vm8  ;;  %vm190_vm3 = vcmp.ge.f32.partialorder %v2371_v1, 0.75  ;;  %vm192_vm5 = vcmp.lt.f32.partialorder %v2371_v1, 1.0  ;;  %v2315_v12 = vmov (!%p1974_p4), 0   ;;  %355 = sst [smem:[#allocation4 + $0x6]] (!%p1974_p4), %s2316_s22 }
  0x17   : > { %v3620_v7 = vsel %vm2407_vm15, 4294967295, %v3619_v7  ;;  %vm2413_vm2 = vmand %vm183_vm10, %vm185_vm11  ;;  %v211_v15 = vsel (!%p1974_p4), %vm2387_vm4, 1, %v2315_v12  ;;  %v212_v16 = vsel (!%p1974_p4), %vm2395_vm9, 1, %v2315_v12  ;;  %v237_v22 = vsel (!%p1974_p4), %vm2401_vm12, 1, %v2315_v12  ;;  %368 = sst [smem:[#allocation4 + $0x7]] (!%p1974_p4), %s2316_s22 }
  0x18   : > { %v3622_v8 = vsel %vm2413_vm2, 4294967295, %v3621_v8  ;;  %vm2419_vm7 = vmand %vm184_vm13, %vm186_vm14  ;;  %v263_v13 = vsel (!%p1974_p4), %vm2413_vm2, 1, %v2315_v12  ;;  %v213_v18 = vadd.s32 (!%p1974_p4), %v212_v16, %v211_v15  ;;  %v238_v23 = vsel (!%p1974_p4), %vm2407_vm15, 1, %v2315_v12  ;;  %372 = sst [smem:[#allocation5 + $0x1]] (!%p1974_p4), %s2316_s22 }
  0x19   : > { %v3624_v9 = vsel %vm2419_vm7, 4294967295, %v3623_v9  ;;  %vm2423_vm6 = vmand %vm189_vm0, %vm191_vm1  ;;  %v264_v14 = vsel (!%p1974_p4), %vm2419_vm7, 1, %v2315_v12  ;;  %v239_v26 = vadd.s32 (!%p1974_p4), %v238_v23, %v237_v22  ;;  %327 = sst [smem:[#allocation4]] (!%p1974_p4), %s2317_s23 }
  0x1a   : > { %v3626_v10 = vsel %vm2423_vm6, 4294967295, %v3625_v10  ;;  %vm2427_vm8 = vmand %vm190_vm3, %vm192_vm5  ;;  %v265_v17 = vadd.s32 (!%p1974_p4), %v264_v14, %v263_v13  ;;  %v289_v19 = vsel (!%p1974_p4), %vm2423_vm6, 1, %v2315_v12  ;;  %v215_v25 = vshrl.u32 (!%p1974_p4), %v213_v18, 16  ;;  %340 = sst [smem:[#allocation4 + $0x1]] (!%p1974_p4), %s2317_s23 }
  0x1b   : > { %v3628_v11 = vsel %vm2427_vm8, 4294967295, %v3627_v11  ;;  %v290_v20 = vsel (!%p1974_p4), %vm2427_vm8, 1, %v2315_v12  ;;  %v241_v30 = vshrl.u32 (!%p1974_p4), %v239_v26, 16  ;;  %v240_v33 = vand.u32 (!%p1974_p4), 65535, %v239_v26  ;;  %353 = sst [smem:[#allocation4 + $0x2]] (!%p1974_p4), %s2317_s23 }
  0x1c   : > { %v291_v21 = vadd.s32 %v290_v20, %v289_v19  ;;  %v267_v24 = vshrl.u32 %v265_v17, 16  ;;  %v217_v29 = vcvt.s32.f32 %v215_v25  ;;  %v214_v34 = vand.u32 65535, %v213_v18  ;;  %366 = sst [smem:[#allocation4 + $0x3]] %s2317_s23 }
  0x1d   : > { %v243_v32 = vcvt.s32.f32 %v241_v30  ;;  %v242_v35 = vcvt.s32.f32 %v240_v33  ;;  %v266_v38 = vand.u32 65535, %v265_v17  ;;  %370 = sst [smem:[#allocation5]] %s2318_s24 }
  0x1e   : > { %v293_v27 = vshrl.u32 %v291_v21, 16  ;;  %v269_v28 = vcvt.s32.f32 %v267_v24  ;;  %220 = vadd.xlane.f32.xlu0 %v217_v29  ;;  %v216_v36 = vcvt.s32.f32 %v214_v34  ;;  %v292_v37 = vand.u32 65535, %v291_v21 }
  0x1f   : > { %v268_v40 = vcvt.s32.f32 %v266_v38 }
  0x20   : > { %272 = vadd.xlane.f32.xlu1 %v269_v28  ;;  %v295_v31 = vcvt.s32.f32 %v293_v27  ;;  %v294_v39 = vcvt.s32.f32 %v292_v37 }
  0x22   : > { %246 = vadd.xlane.f32.xlu0 %v243_v32 }
  0x24   : > { %298 = vadd.xlane.f32.xlu1 %v295_v31 }
  0x26   : > { %218 = vadd.xlane.f32.xlu0 %v216_v36 }
  0x28   : > { %244 = vadd.xlane.f32.xlu1 %v242_v35 }
  0x2a   : > { %270 = vadd.xlane.f32.xlu0 %v268_v40 }
  0x2c   : > { %296 = vadd.xlane.f32.xlu1 %v294_v39 }
  0xab   : > { %v221_v42 = vpop.xlane.xlu0 %220 }
  0xac   : > { %v223_v45 = vcvt.f32.s32 %v221_v42 }
  0xad   : > { %v273_v41 = vpop.xlane.xlu1 %272 }
  0xae   : > { %v275_v47 = vcvt.f32.s32 %v273_v41  ;;  %v224_v51 = vshll.u32 %v223_v45, 16 }
  0xaf   : > { %v247_v44 = vpop.xlane.xlu0 %246 }
  0xb0   : > { %v249_v46 = vcvt.f32.s32 %v247_v44  ;;  %v276_v57 = vshll.u32 %v275_v47, 16 }
  0xb1   : > { %v299_v43 = vpop.xlane.xlu1 %298 }
  0xb2   : > { %v301_v48 = vcvt.f32.s32 %v299_v43  ;;  %v250_v52 = vshll.u32 %v249_v46, 16 }
  0xb3   : > { %v219_v50 = vpop.xlane.xlu0 %218 }
  0xb4   : > { %v222_v54 = vcvt.f32.s32 %v219_v50  ;;  %v302_v58 = vshll.u32 %v301_v48, 16 }
  0xb5   : > { %v245_v49 = vpop.xlane.xlu1 %244 }
  0xb6   : > { %v248_v53 = vcvt.f32.s32 %v245_v49  ;;  %v225_v56 = vadd.s32 %v224_v51, %v222_v54 }
  0xb7   : > { %v271_v60 = vpop.xlane.xlu0 %270 }
  0xb8   : > { %v251_v55 = vadd.s32 %v250_v52, %v248_v53  ;;  %v226_v62 = vrot.slane %v225_v56, 4  ;;  %v274_v12 = vcvt.f32.s32 %v271_v60 }
  0xb9   : > { %v297_v59 = vpop.xlane.xlu1 %296 }
  0xba   : > { %v252_v61 = vrot.slane %v251_v55, 4  ;;  %v300_v63 = vcvt.f32.s32 %v297_v59  ;;  %v277_v15 = vadd.s32 %v276_v57, %v274_v12  ;;  %v227_v16 = vadd.s32 %v226_v62, %v225_v56 }
  0xbc   : > { %v253_v13 = vadd.s32 %v252_v61, %v251_v55  ;;  %v303_v14 = vadd.s32 %v302_v58, %v300_v63  ;;  %v278_v18 = vrot.slane %v277_v15, 4  ;;  %v228_v19 = vrot.slane %v227_v16, 2 }
  0xbe   : > { %v304_v17 = vrot.slane %v303_v14, 4  ;;  %v254_v20 = vrot.slane %v253_v13, 2  ;;  %v279_v22 = vadd.s32 %v278_v18, %v277_v15  ;;  %v229_v23 = vadd.s32 %v228_v19, %v227_v16 }
  0xc0   : > { %v305_v21 = vadd.s32 %v304_v17, %v303_v14  ;;  %v255_v24 = vadd.s32 %v254_v20, %v253_v13  ;;  %v230_v25 = vrot.slane %v229_v23, 1  ;;  %v280_v27 = vrot.slane %v279_v22, 2 }
  0xc2   : > { %v256_v26 = vrot.slane %v255_v24, 1  ;;  %v306_v28 = vrot.slane %v305_v21, 2  ;;  %v231_v29 = vadd.s32 %v230_v25, %v229_v23  ;;  %v281_v31 = vadd.s32 %v280_v27, %v279_v22 }
  0xc4   : > { %v257_v30 = vadd.s32 %v256_v26, %v255_v24  ;;  %v307_v32 = vadd.s32 %v306_v28, %v305_v21  ;;  %2096 = vpush %v231_v29  ;;  %v282_v33 = vrot.slane %v281_v31, 1 }
  0xc6   : > { %v308_v34 = vrot.slane %v307_v32, 1  ;;  %2098 = vpush %v257_v30  ;;  %v283_v35 = vadd.s32 %v282_v33, %v281_v31 }
  0xc8   : > { %v309_v36 = vadd.s32 %v308_v34, %v307_v32  ;;  %2100 = vpush %v283_v35 }
  0xca   : > { %2102 = vpush %v309_v36 }
  0xf5   : > { %s2097_s25 = spop %2096 }
  0xf6   : > { %235 = sst [smem:[#allocation2]] %s2097_s25  ;;  %s1978_s27 = sadd.s32 4294967295, %s2097_s25 }
  0xf7   : > { %s2099_s26 = spop %2098  ;;  %s319_s28 = sshra.s32 %s1978_s27, 1 }
  0xf8   : > { %p320_p5 = scmp.gt.s32.totalorder %s319_s28, 0  ;;  %261 = sst [smem:[#allocation2 + $0x1]] %s2099_s26 }
  0xf9   : > { %s1980_s29 = sadd.s32 4294967295, %s2099_s26  ;;  %s2101_s30 = spop %2100 }
  0xfa   : > { %s3763_s28 = smov (!%p320_p5, %s319_s28), 0  ;;  %s332_s3 = sshra.s32 %s1980_s29, 1 }
  0xfb   : > { %323 = sst [smem:[#allocation3]] %s3763_s28  ;;  %p333_p6 = scmp.gt.s32.totalorder %s332_s3, 0 }
  0xfc   : > { %325 = sst [smem:[#allocation3 + $0x4]] %s3763_s28  ;;  %s1982_s4 = sadd.s32 4294967295, %s2101_s30 }
  0xfd   : > { %s3765_s3 = smov (!%p333_p6, %s332_s3), 0  ;;  %287 = sst [smem:[#allocation2 + $0x2]] %s2101_s30 }
  0xfe   : > { %s345_s5 = sshra.s32 %s1982_s4, 1  ;;  %336 = sst [smem:[#allocation3 + $0x1]] %s3765_s3 }
  0xff   : > { %p346_p7 = scmp.gt.s32.totalorder %s345_s5, 0  ;;  %338 = sst [smem:[#allocation3 + $0x5]] %s3765_s3 }
 0x100   : > { %s2103_s6 = spop %2102 }
 0x101   : > { %s3767_s5 = smov (!%p346_p7, %s345_s5), 0  ;;  %s1984_s7 = sadd.s32 4294967295, %s2103_s6 }
 0x102   : > { %349 = sst [smem:[#allocation3 + $0x2]] %s3767_s5  ;;  %s358_s8 = sshra.s32 %s1984_s7, 1 }
 0x103   : > { %351 = sst [smem:[#allocation3 + $0x6]] %s3767_s5  ;;  %p359_p8 = scmp.gt.s32.totalorder %s358_s8, 0 }
 0x104   : > { %313 = sst [smem:[#allocation2 + $0x3]] %s2103_s6 }
 0x105   : > { %s3769_s8 = smov (!%p359_p8, %s358_s8), 0 }
 0x106   : > { %362 = sst [smem:[#allocation3 + $0x3]] %s3769_s8 }
 0x107   : > { %364 = sst [smem:[#allocation3 + $0x7]] %s3769_s8 }
 0x108 PF: > { %p373_p9 = scmp.ge.s32.totalorder %s2305_s9, 1  ;;  %p374_p10 = scmp.le.s32.totalorder %s2305_s9, 16 }
 0x10a   : > { %p375_p11 = pnand %p374_p10, %p373_p9 }
 0x10c   : > { %378 = sbr.rel (%p375_p11) target bundleno = 912 (0x390), region = 44 }
 0x113   : > { %s1985_s14 = sshll.u32 %s2305_s9, 1  ;;  %s2319_s17 = smov 1  }
 0x114   : > { %s2451_s15 = ssub.s32 32, %s1985_s14  ;;  %s382_s16 = ssub.s32 33, %s1985_s14 }
 0x115   : > { %s2454_s18 = sshll.u32 %s2319_s17, %s2451_s15  ;;  %s2456_s19 = sshll.u32 %s2319_s17, %s382_s16 }
 0x116   : > { %3629 = sst [smem:[#allocation14_spill]] %s2456_s19  ;;  %p384_p12 = scmp.ge.s32.totalorder %s2305_s9, 2 }
 0x117   : > { %s2320_s20 = smov 0   ;;  %p1986_p13 = scmp.lt.s32.totalorder %s2305_s9, 2 }
 0x118   : > { %389 = sst [smem:[#allocation6]] %s2320_s20  ;;  %vm441_vm10 = vcmp.ge.s32.totalorder (!%p1986_p13), %v2366_v0, 0  ;;  %vm442_vm11 = vcmp.ge.s32.totalorder (!%p1986_p13), %v2371_v1, 0  ;;  %v443_v37 = vxor.u32 (!%p1986_p13), 2147483648, %v2366_v0  ;;  %v444_v38 = vxor.u32 (!%p1986_p13), 2147483648, %v2371_v1  ;;  %s1989_s23 = sld [smem:[#allocation4 + $0x1]] (!%p1986_p13) }
 0x119   : > { %391 = sst [smem:[#allocation6 + $0x1]] %s2320_s20  ;;  %s449_s21 = sld [smem:[#allocation5]] (!%p1986_p13)  ;;  %v445_v39 = vxor.u32 (!%p1986_p13), 4294967295, %v2366_v0  ;;  %v446_v40 = vxor.u32 (!%p1986_p13), 4294967295, %v2371_v1  ;;  %v450_v41 = vstv (!%p1986_p13), %s2454_s18  ;;  %v455_v42 = vstv (!%p1986_p13), %s2456_s19 }
 0x11a   : > { %393 = sst [smem:[#allocation6 + $0x2]] %s2320_s20  ;;  %s473_s22 = sld [smem:[#allocation4]] (!%p1986_p13)  ;;  %vm3567_vm3 = vmmov (!%p1986_p13), 1   ;;  %v2322_v58 = vmov (!%p1986_p13), 0   ;;  %v3639_v61 = vmov (!%p1986_p13), 0 }
 0x11b   : > { %395 = sst [smem:[#allocation6 + $0x3]] %s2320_s20  ;;  %v447_v43 = vsel (!%p1986_p13), %vm441_vm10, %v443_v37, %v445_v39  ;;  %v448_v44 = vsel (!%p1986_p13), %vm442_vm11, %v444_v38, %v446_v40  ;;  %s2543_s24 = sld [smem:[#allocation4 + $0x2]] (!%p1986_p13) }
 0x11c   : > { %397 = sst [smem:[#allocation6 + $0x4]] %s2320_s20  ;;  %v451_v45 = vand.u32 (!%p1986_p13), %v450_v41, %v447_v43  ;;  %v452_v46 = vand.u32 (!%p1986_p13), %v450_v41, %v448_v44  ;;  %v456_v47 = vand.u32 (!%p1986_p13), %v455_v42, %v447_v43  ;;  %v457_v48 = vand.u32 (!%p1986_p13), %v455_v42, %v448_v44  ;;  %s2575_s25 = sld [smem:[#allocation4 + $0x3]] (!%p1986_p13) }
 0x11d   : > { %399 = sst [smem:[#allocation6 + $0x5]] %s2320_s20  ;;  %s479_s26 = sld [smem:[#allocation6]] (!%p1986_p13) }
 0x11e   : > { %401 = sst [smem:[#allocation6 + $0x6]] %s2320_s20  ;;  %vm453_vm13 = vcmp.eq.s32.totalorder (!%p1986_p13), %v451_v45, 0  ;;  %vm3563_vm14 = vcmp.eq.s32.totalorder (!%p1986_p13), %v456_v47, 0  ;;  %vm3569_vm0 = vcmp.eq.s32.totalorder (!%p1986_p13), %v457_v48, 0  ;;  %vm3579_vm1 = vcmp.eq.s32.totalorder (!%p1986_p13), %v452_v46, 0  ;;  %s1987_s27 = sld [smem:[#allocation6 + $0x1]] (!%p1986_p13) }
 0x11f   : > { %403 = sst [smem:[#allocation6 + $0x7]] %s2320_s20  ;;  %vm466_vm5 = vmxor (!%p1986_p13), %vm3563_vm14, %vm3567_vm3  ;;  %v470_v49 = vstv (!%p1986_p13), %s449_s21  ;;  %v564_v57 = vstv (!%p1986_p13), %s1989_s23  ;;  %s1988_s28 = sld [smem:[#allocation6 + $0x2]] (!%p1986_p13) }
 0x120   : > { %405 = sst [smem:[#allocation6 + $0x8]] %s2320_s20  ;;  %v474_v50 = vstv (!%p1986_p13), %s473_s22  ;;  %vm467_vm8 = vmxor (!%p1986_p13), %vm3569_vm0, %vm3567_vm3  ;;  %v2472_v51 = vand.u32 (!%p1986_p13), %v470_v49, %v447_v43  ;;  %v2474_v52 = vand.u32 (!%p1986_p13), %v470_v49, %v448_v44  ;;  %s1990_s29 = sld [smem:[#allocation6 + $0x3]] (!%p1986_p13) }
 0x121   : > { %407 = sst [smem:[#allocation6 + $0x9]] %s2320_s20  ;;  %vm2477_vm10 = vmand (!%p1986_p13), %vm466_vm5, %vm453_vm13  ;;  %v654_v27 = vstv (!%p1986_p13), %s2543_s24  ;;  %s1991_s30 = sld [smem:[#allocation6 + $0x4]] (!%p1986_p13) }
 0x122   : > { %409 = sst [smem:[#allocation6 + $0xa]] %s2320_s20  ;;  %vm2482_vm11 = vmand (!%p1986_p13), %vm467_vm8, %vm3579_vm1  ;;  %vm475_vm14 = vcmp.eq.s32.totalorder (!%p1986_p13), %v2472_v51, %v474_v50  ;;  %vm476_vm6 = vcmp.eq.s32.totalorder (!%p1986_p13), %v2474_v52, %v474_v50  ;;  %vm565_vm7 = vcmp.eq.s32.totalorder (!%p1986_p13), %v2472_v51, %v564_v57  ;;  %v744_v39 = vstv (!%p1986_p13), %s2575_s25  ;;  %s1992_s4 = sld [smem:[#allocation6 + $0x5]] (!%p1986_p13) }
 0x123   : > { %411 = sst [smem:[#allocation6 + $0xb]] %s2320_s20  ;;  %vm2490_vm3 = vmand (!%p1986_p13), %vm2387_vm4, %vm475_vm14  ;;  %s1994_s8 = sld [smem:[#allocation6 + $0x6]] (!%p1986_p13) }
 0x124   : > { %413 = sst [smem:[#allocation6 + $0xc]] %s2320_s20  ;;  %vm2496_vm5 = vmand (!%p1986_p13), %vm2395_vm9, %vm476_vm6  ;;  %vm3638_vm6 = vcmp.eq.s32.totalorder (!%p1986_p13), %v456_v47, 0  ;;  %vm3641_vm9 = vcmp.eq.s32.totalorder (!%p1986_p13), %v457_v48, 0  ;;  %s1995_s16 = sld [smem:[#allocation6 + $0x7]] (!%p1986_p13) }
 0x125   : > { %415 = sst [smem:[#allocation6 + $0xd]] %s2320_s20  ;;  %vm536_vm8 = vmand (!%p1986_p13), %vm2490_vm3, %vm2477_vm10  ;;  %s1996_s22 = sld [smem:[#allocation6 + $0x8]] (!%p1986_p13) }
 0x126   : > { %417 = sst [smem:[#allocation6 + $0xe]] %s2320_s20  ;;  %vm537_vm14 = vmand (!%p1986_p13), %vm2496_vm5, %vm2482_vm11  ;;  %v538_v59 = vsel (!%p1986_p13), %vm536_vm8, 1, %v2322_v58  ;;  %s1998_s24 = sld [smem:[#allocation6 + $0x9]] (!%p1986_p13) }
 0x127   : > { %419 = sst [smem:[#allocation6 + $0xf]] %s2320_s20  ;;  %v539_v60 = vsel (!%p1986_p13), %vm537_vm14, 1, %v2322_v58  ;;  %vm2512_vm0 = vmand (!%p1986_p13), %vm3638_vm6, %vm453_vm13  ;;  %vm566_vm14 = vcmp.eq.s32.totalorder (!%p1986_p13), %v2474_v52, %v564_v57 }
 0x128   : > { %421 = sst [smem:[#allocation6 + $0x10]] %s2320_s20  ;;  %v3640_v61 = vsel (!%p1986_p13), %vm2512_vm0, 4294967295, %v3639_v61  ;;  %v2516_v62 = vadd.s32 (!%p1986_p13), %v539_v60, %v538_v59  ;;  %vm2520_vm4 = vmand (!%p1986_p13), %vm3641_vm9, %vm3579_vm1 }
 0x129   : > { %423 = sst [smem:[#allocation6 + $0x11]] %s2320_s20  ;;  %438 = sbr.rel (%p1986_p13) target bundleno = 571 (0x23b), region = 52  ;;  %vm480_vm8 = vmand (!%p1986_p13), %vm2490_vm3, %vm2512_vm0 }
 0x12a   : > { %425 = sst [smem:[#allocation6 + $0x12]] %s2320_s20  ;;  %v542_v12 = vshrl.u32 (!%p1986_p13), %v2516_v62, 16  ;;  %vm481_vm6 = vmand (!%p1986_p13), %vm2496_vm5, %vm2520_vm4  ;;  %v482_v13 = vsel (!%p1986_p13), %vm480_vm8, 1, %v2322_v58 }
 0x12b   : > { %427 = sst [smem:[#allocation6 + $0x13]] %s2320_s20  ;;  %v483_v14 = vsel (!%p1986_p13), %vm481_vm6, 1, %v2322_v58  ;;  %vm2539_vm9 = vmand (!%p1986_p13), %vm2401_vm12, %vm565_vm7 }
 0x12c   : > { %429 = sst [smem:[#allocation6 + $0x14]] %s2320_s20  ;;  %v544_v16 = vcvt.s32.f32 (!%p1986_p13), %v542_v12  ;;  %v2545_v17 = vadd.s32 (!%p1986_p13), %v483_v14, %v482_v13  ;;  %vm2549_vm1 = vmand (!%p1986_p13), %vm2407_vm15, %vm566_vm14  ;;  %vm3648_vm14 = vmmov (!%p1986_p13), 1   ;;  %vm3649_vm15 = vcmp.eq.s32.totalorder (!%p1986_p13), %v452_v46, 0 }
 0x12d   : > { %431 = sst [smem:[#allocation6 + $0x15]] %s2320_s20  ;;  %vm570_vm8 = vmand (!%p1986_p13), %vm2539_vm9, %vm2512_vm0  ;;  %vm3650_vm0 = vcmp.eq.s32.totalorder (!%p1986_p13), %v456_v47, 0 }
 0x12e   : > { %433 = sst [smem:[#allocation6 + $0x16]] %s2320_s20  ;;  %547 = vadd.xlane.f32.xlu1 (!%p1986_p13), %v544_v16  ;;  %v486_v19 = vshrl.u32 (!%p1986_p13), %v2545_v17, 16  ;;  %vm571_vm7 = vmand (!%p1986_p13), %vm2549_vm1, %vm2520_vm4  ;;  %v572_v20 = vsel (!%p1986_p13), %vm570_vm8, 1, %v2322_v58  ;;  %vm3653_vm8 = vcmp.eq.s32.totalorder (!%p1986_p13), %v457_v48, 0 }
 0x12f   : > { %435 = sst [smem:[#allocation6 + $0x17]] %s2320_s20  ;;  %v573_v21 = vsel (!%p1986_p13), %vm571_vm7, 1, %v2322_v58  ;;  %vm462_vm6 = vmxor (!%p1986_p13), %vm453_vm13, %vm3648_vm14 }
 0x130   : > { %v488_v22 = vcvt.s32.f32 %v486_v19  ;;  %v2566_v23 = vadd.s32 %v573_v21, %v572_v20  ;;  %vm463_vm12 = vmxor %vm3649_vm15, %vm3648_vm14  ;;  %vm656_vm14 = vcmp.eq.s32.totalorder %v2474_v52, %v654_v27 }
 0x131   : > { %vm2571_vm2 = vmand %vm3650_vm0, %vm462_vm6 }
 0x132   : > { %491 = vadd.xlane.f32.xlu0 %v488_v22  ;;  %v576_v25 = vshrl.u32 %v2566_v23, 16  ;;  %vm2579_vm7 = vmand %vm3653_vm8, %vm463_vm12  ;;  %vm3656_vm8 = vnez %v3622_v8 }
 0x133   : > { %vm508_vm15 = vmand %vm2490_vm3, %vm2571_vm2  ;;  %vm655_vm3 = vcmp.eq.s32.totalorder %v2472_v51, %v654_v27 }
 0x134   : > { %v578_v28 = vcvt.s32.f32 %v576_v25  ;;  %vm509_vm13 = vmand %vm2496_vm5, %vm2579_vm7  ;;  %v510_v29 = vsel %vm508_vm15, 1, %v2322_v58 }
 0x135   : > { %v511_v30 = vsel %vm509_vm13, 1, %v2322_v58  ;;  %vm626_vm12 = vmand %vm2539_vm9, %vm2477_vm10 }
 0x136   : > { %581 = vadd.xlane.f32.xlu1 %v578_v28  ;;  %v2598_v31 = vadd.s32 %v511_v30, %v510_v29  ;;  %vm627_vm0 = vmand %vm2549_vm1, %vm2482_vm11  ;;  %v628_v32 = vsel %vm626_vm12, 1, %v2322_v58 }
 0x137   : > { %v629_v33 = vsel %vm627_vm0, 1, %v2322_v58  ;;  %vm598_vm5 = vmand %vm2539_vm9, %vm2571_vm2  ;;  %vm3659_vm9 = vnez %v3624_v9  ;;  %vm745_vm0 = vcmp.eq.s32.totalorder %v2472_v51, %v744_v39 }
 0x138   : > { %v514_v34 = vshrl.u32 %v2598_v31, 16  ;;  %v2613_v35 = vadd.s32 %v629_v33, %v628_v32  ;;  %vm599_vm6 = vmand %vm2549_vm1, %vm2579_vm7  ;;  %v600_v36 = vsel %vm598_vm5, 1, %v2322_v58  ;;  %v513_v24 = vand.u32 65535, %v2598_v31 }
 0x139   : > { %v601_v37 = vsel %vm599_vm6, 1, %v2322_v58  ;;  %vm2623_vm15 = vmand %vm3656_vm8, %vm655_vm3  ;;  %vm3662_vm3 = vnez %v3640_v61  ;;  %vm3663_vm8 = vnez %v3626_v10  ;;  %v485_v33 = vand.u32 65535, %v2545_v17 }
 0x13a   : > { %v516_v40 = vcvt.s32.f32 %v514_v34  ;;  %v632_v41 = vshrl.u32 %v2613_v35, 16  ;;  %v2629_v42 = vadd.s32 %v601_v37, %v600_v36  ;;  %vm2633_vm13 = vmand %vm3659_vm9, %vm656_vm14  ;;  %vm746_vm14 = vcmp.eq.s32.totalorder %v2474_v52, %v744_v39 }
 0x13b   : > { %vm688_vm1 = vmand %vm2623_vm15, %vm2571_vm2  ;;  %v515_v34 = vcvt.s32.f32 %v513_v24  ;;  %v575_v36 = vand.u32 65535, %v2566_v23  ;;  %v487_v37 = vcvt.s32.f32 %v485_v33  ;;  %v631_v39 = vand.u32 65535, %v2613_v35 }
 0x13c   : > { %519 = vadd.xlane.f32.xlu0 %v516_v40  ;;  %v634_v44 = vcvt.s32.f32 %v632_v41  ;;  %v604_v45 = vshrl.u32 %v2629_v42, 16  ;;  %vm689_vm12 = vmand %vm2633_vm13, %vm2579_vm7  ;;  %v690_v46 = vsel %vm688_vm1, 1, %v2322_v58  ;;  %vm3666_vm1 = vnez %v3628_v11 }
 0x13d   : > { %v691_v47 = vsel %vm689_vm12, 1, %v2322_v58  ;;  %vm660_vm5 = vmand %vm2623_vm15, %vm3662_vm3  ;;  %v577_v38 = vcvt.s32.f32 %v575_v36  ;;  %v603_v40 = vand.u32 65535, %v2629_v42  ;;  %v633_v41 = vcvt.s32.f32 %v631_v39 }
 0x13e   : > { %637 = vadd.xlane.f32.xlu1 %v634_v44  ;;  %v606_v48 = vcvt.s32.f32 %v604_v45  ;;  %v2654_v49 = vadd.s32 %v691_v47, %v690_v46  ;;  %vm661_vm6 = vmand %vm2633_vm13, %vm2520_vm4  ;;  %v662_v50 = vsel %vm660_vm5, 1, %v2322_v58 }
 0x13f   : > { %v663_v51 = vsel %vm661_vm6, 1, %v2322_v58  ;;  %vm2664_vm9 = vmand %vm3663_vm8, %vm745_vm0  ;;  %v605_v43 = vcvt.s32.f32 %v603_v40 }
 0x140   : > { %609 = vadd.xlane.f32.xlu0 %v606_v48  ;;  %v694_v52 = vshrl.u32 %v2654_v49, 16  ;;  %v664_v56 = vadd.s32 %v663_v51, %v662_v50  ;;  %vm2671_vm12 = vmand %vm3666_vm1, %vm746_vm14  ;;  %v693_v17 = vand.u32 65535, %v2654_v49 }
 0x141   : > { %vm750_vm5 = vmand %vm2664_vm9, %vm3662_vm3 }
 0x142   : > { %v696_v59 = vcvt.s32.f32 %v694_v52  ;;  %v666_v60 = vshrl.u32 %v664_v56, 16  ;;  %vm751_vm0 = vmand %vm2671_vm12, %vm2520_vm4  ;;  %v752_v12 = vsel %vm750_vm5, 1, %v2322_v58  ;;  %v665_v44 = vand.u32 65535, %v664_v56 }
 0x143   : > { %v753_v13 = vsel %vm751_vm0, 1, %v2322_v58  ;;  %vm716_vm14 = vmand %vm2623_vm15, %vm2477_vm10  ;;  %v695_v23 = vcvt.s32.f32 %v693_v17 }
 0x144   : > { %699 = vadd.xlane.f32.xlu1 %v696_v59  ;;  %v668_v61 = vcvt.s32.f32 %v666_v60  ;;  %v754_v14 = vadd.s32 %v753_v13, %v752_v12  ;;  %vm717_vm3 = vmand %vm2633_vm13, %vm2482_vm11  ;;  %v718_v63 = vsel %vm716_vm14, 1, %v2322_v58 }
 0x145   : > { %v719_v15 = vsel %vm717_vm3, 1, %v2322_v58  ;;  %vm806_vm4 = vmand %vm2664_vm9, %vm2477_vm10 }
 0x146   : > { %671 = vadd.xlane.f32.xlu0 %v668_v61  ;;  %v756_v16 = vshrl.u32 %v754_v14, 16  ;;  %v720_v18 = vadd.s32 %v719_v15, %v718_v63  ;;  %vm807_vm15 = vmand %vm2671_vm12, %vm2482_vm11  ;;  %v808_v19 = vsel %vm806_vm4, 1, %v2322_v58  ;;  %v755_v45 = vand.u32 65535, %v754_v14 }
 0x147   : > { %v809_v20 = vsel %vm807_vm15, 1, %v2322_v58  ;;  %vm778_vm13 = vmand %vm2664_vm9, %vm2571_vm2 }
 0x148   : > { %v758_v53 = vcvt.s32.f32 %v756_v16  ;;  %v722_v21 = vshrl.u32 %v720_v18, 16  ;;  %v810_v22 = vadd.s32 %v809_v20, %v808_v19  ;;  %vm779_vm10 = vmand %vm2671_vm12, %vm2579_vm7  ;;  %v780_v54 = vsel %vm778_vm13, 1, %v2322_v58 }
 0x149   : > { %v781_v25 = vsel %vm779_vm10, 1, %v2322_v58  ;;  %v541_v58 = vand.u32 65535, %v2516_v62  ;;  %v667_v62 = vcvt.s32.f32 %v665_v44  ;;  %v721_v46 = vand.u32 65535, %v720_v18 }
 0x14a   : > { %761 = vadd.xlane.f32.xlu1 %v758_v53  ;;  %v724_v27 = vcvt.s32.f32 %v722_v21  ;;  %v812_v28 = vshrl.u32 %v810_v22, 16  ;;  %v782_v29 = vadd.s32 %v781_v25, %v780_v54  ;;  %v757_v47 = vcvt.s32.f32 %v755_v45 }
 0x14b   : > { %v543_v31 = vcvt.s32.f32 %v541_v58  ;;  %v811_v35 = vand.u32 65535, %v810_v22  ;;  %v723_v48 = vcvt.s32.f32 %v721_v46 }
 0x14c   : > { %727 = vadd.xlane.f32.xlu0 %v724_v27  ;;  %v814_v30 = vcvt.s32.f32 %v812_v28  ;;  %v784_v32 = vshrl.u32 %v782_v29, 16  ;;  %v783_v50 = vand.u32 65535, %v782_v29 }
 0x14d   : > { %v813_v42 = vcvt.s32.f32 %v811_v35 }
 0x14e   : > { %817 = vadd.xlane.f32.xlu1 %v814_v30  ;;  %v786_v26 = vcvt.s32.f32 %v784_v32  ;;  %v785_v51 = vcvt.s32.f32 %v783_v50 }
 0x150   : > { %789 = vadd.xlane.f32.xlu0 %v786_v26 }
 0x152   : > { %517 = vadd.xlane.f32.xlu1 %v515_v34 }
 0x154   : > { %489 = vadd.xlane.f32.xlu0 %v487_v37 }
 0x156   : > { %579 = vadd.xlane.f32.xlu1 %v577_v38 }
 0x158   : > { %545 = vadd.xlane.f32.xlu0 %v543_v31 }
 0x15a   : > { %635 = vadd.xlane.f32.xlu1 %v633_v41 }
 0x15c   : > { %607 = vadd.xlane.f32.xlu0 %v605_v43 }
 0x15e   : > { %697 = vadd.xlane.f32.xlu1 %v695_v23 }
 0x160   : > { %669 = vadd.xlane.f32.xlu0 %v667_v62 }
 0x162   : > { %759 = vadd.xlane.f32.xlu1 %v757_v47 }
 0x164   : > { %725 = vadd.xlane.f32.xlu0 %v723_v48 }
 0x166   : > { %815 = vadd.xlane.f32.xlu1 %v813_v42 }
 0x168   : > { %787 = vadd.xlane.f32.xlu0 %v785_v51 }
 0x1bb   : > { %v548_v49 = vpop.xlane.xlu1 %547 }
 0x1bc   : > { %v550_v21 = vcvt.f32.s32 %v548_v49 }
 0x1be   : > { %v551_v36 = vshll.u32 %v550_v21, 16 }
 0x1bf   : > { %v492_v55 = vpop.xlane.xlu0 %491 }
 0x1c0   : > { %v494_v16 = vcvt.f32.s32 %v492_v55 }
 0x1c2   : > { %v495_v25 = vshll.u32 %v494_v16, 16 }
 0x1c3   : > { %v582_v52 = vpop.xlane.xlu1 %581 }
 0x1c4   : > { %v584_v19 = vcvt.f32.s32 %v582_v52 }
 0x1c6   : > { %v585_v32 = vshll.u32 %v584_v19, 16 }
 0x1c9   : > { %v520_v56 = vpop.xlane.xlu0 %519 }
 0x1ca   : > { %v522_v63 = vcvt.f32.s32 %v520_v56 }
 0x1cb   : > { %v638_v57 = vpop.xlane.xlu1 %637 }
 0x1cc   : > { %v523_v20 = vshll.u32 %v522_v63, 16  ;;  %v640_v22 = vcvt.f32.s32 %v638_v57 }
 0x1cd   : > { %v610_v59 = vpop.xlane.xlu0 %609 }
 0x1ce   : > { %v612_v29 = vcvt.f32.s32 %v610_v59  ;;  %v641_v37 = vshll.u32 %v640_v22, 16 }
 0x1d0   : > { %v613_v43 = vshll.u32 %v612_v29, 16 }
 0x1d1   : > { %v700_v60 = vpop.xlane.xlu1 %699 }
 0x1d2   : > { %v702_v24 = vcvt.f32.s32 %v700_v60 }
 0x1d3   : > { %v672_v12 = vpop.xlane.xlu0 %671 }
 0x1d4   : > { %v674_v58 = vcvt.f32.s32 %v672_v12  ;;  %v703_v44 = vshll.u32 %v702_v24, 16 }
 0x1d6   : > { %v675_v50 = vshll.u32 %v674_v58, 16 }
 0x1d7   : > { %v762_v13 = vpop.xlane.xlu1 %761 }
 0x1d8   : > { %v764_v38 = vcvt.f32.s32 %v762_v13 }
 0x1d9   : > { %v728_v61 = vpop.xlane.xlu0 %727 }
 0x1da   : > { %v730_v23 = vcvt.f32.s32 %v728_v61  ;;  %v765_v42 = vshll.u32 %v764_v38, 16 }
 0x1db   : > { %v818_v14 = vpop.xlane.xlu1 %817 }
 0x1dc   : > { %v820_v45 = vcvt.f32.s32 %v818_v14  ;;  %v731_v60 = vshll.u32 %v730_v23, 16 }
 0x1dd   : > { %v790_v15 = vpop.xlane.xlu0 %789 }
 0x1de   : > { %v792_v51 = vcvt.f32.s32 %v790_v15  ;;  %v821_v12 = vshll.u32 %v820_v45, 16 }
 0x1df   : > { %v518_v18 = vpop.xlane.xlu1 %517 }
 0x1e0   : > { %v521_v53 = vcvt.f32.s32 %v518_v18 }
 0x1e1   : > { %v490_v54 = vpop.xlane.xlu0 %489 }
 0x1e2   : > { %v524_v27 = vadd.s32 %v523_v20, %v521_v53  ;;  %v493_v28 = vcvt.f32.s32 %v490_v54  ;;  %v793_v20 = vshll.u32 %v792_v51, 16 }
 0x1e3   : > { %v580_v30 = vpop.xlane.xlu1 %579 }
 0x1e4   : > { %v525_v33 = vrot.slane %v524_v27, 4  ;;  %v496_v26 = vadd.s32 %v495_v25, %v493_v28  ;;  %v583_v34 = vcvt.f32.s32 %v580_v30 }
 0x1e5   : > { %v546_v39 = vpop.xlane.xlu0 %545 }
 0x1e6   : > { %v526_v31 = vadd.s32 %v525_v33, %v524_v27  ;;  %v497_v40 = vrot.slane %v496_v26, 4  ;;  %v586_v41 = vadd.s32 %v585_v32, %v583_v34  ;;  %v549_v17 = vcvt.f32.s32 %v546_v39 }
 0x1e7   : > { %v636_v62 = vpop.xlane.xlu1 %635 }
 0x1e8   : > { %v587_v46 = vrot.slane %v586_v41, 4  ;;  %v552_v47 = vadd.s32 %v551_v36, %v549_v17  ;;  %v639_v35 = vcvt.f32.s32 %v636_v62  ;;  %v498_v48 = vadd.s32 %v497_v40, %v496_v26 }
 0x1e9   : > { %v608_v49 = vpop.xlane.xlu0 %607  ;;  %v527_v55 = vrot.slane %v526_v31, 2 }
 0x1ea   : > { %v588_v52 = vadd.s32 %v587_v46, %v586_v41  ;;  %v553_v56 = vrot.slane %v552_v47, 4  ;;  %v642_v57 = vadd.s32 %v641_v37, %v639_v35  ;;  %v611_v59 = vcvt.f32.s32 %v608_v49 }
 0x1eb   : > { %v698_v13 = vpop.xlane.xlu1 %697  ;;  %v499_v63 = vrot.slane %v498_v48, 2  ;;  %v528_v61 = vadd.s32 %v527_v55, %v526_v31 }
 0x1ec   : > { %v554_v14 = vadd.s32 %v553_v56, %v552_v47  ;;  %v643_v16 = vrot.slane %v642_v57, 4  ;;  %v614_v18 = vadd.s32 %v613_v43, %v611_v59  ;;  %v701_v19 = vcvt.f32.s32 %v698_v13 }
 0x1ed   : > { %v670_v53 = vpop.xlane.xlu0 %669  ;;  %v500_v21 = vadd.s32 %v499_v63, %v498_v48  ;;  %v529_v22 = vrot.slane %v528_v61, 1  ;;  %v589_v15 = vrot.slane %v588_v52, 2 }
 0x1ee   : > { %v644_v54 = vadd.s32 %v643_v16, %v642_v57  ;;  %v615_v25 = vrot.slane %v614_v18, 4  ;;  %v704_v27 = vadd.s32 %v703_v44, %v701_v19  ;;  %v673_v28 = vcvt.f32.s32 %v670_v53 }
 0x1ef   : > { %v760_v29 = vpop.xlane.xlu1 %759  ;;  %v501_v24 = vrot.slane %v500_v21, 1  ;;  %v530_v30 = vadd.s32 %v529_v22, %v528_v61  ;;  %v555_v32 = vrot.slane %v554_v14, 2  ;;  %v590_v33 = vadd.s32 %v589_v15, %v588_v52 }
 0x1f0   : > { %v616_v26 = vadd.s32 %v615_v25, %v614_v18  ;;  %v705_v34 = vrot.slane %v704_v27, 4  ;;  %v676_v36 = vadd.s32 %v675_v50, %v673_v28  ;;  %v763_v37 = vcvt.f32.s32 %v760_v29 }
 0x1f1   : > { %v726_v58 = vpop.xlane.xlu0 %725  ;;  %v502_v38 = vadd.s32 %v501_v24, %v500_v21  ;;  %v556_v39 = vadd.s32 %v555_v32, %v554_v14  ;;  %v591_v31 = vrot.slane %v590_v33, 1  ;;  %v645_v40 = vrot.slane %v644_v54, 2 }
 0x1f2   : > { %v706_v41 = vadd.s32 %v705_v34, %v704_v27  ;;  %v677_v17 = vrot.slane %v676_v36, 4  ;;  %v766_v43 = vadd.s32 %v765_v42, %v763_v37  ;;  %v729_v23 = vcvt.f32.s32 %v726_v58 }
 0x1f3   : > { %2104 = vpush %v502_v38  ;;  %v816_v44 = vpop.xlane.xlu1 %815  ;;  %v557_v45 = vrot.slane %v556_v39, 1  ;;  %v592_v62 = vadd.s32 %v591_v31, %v590_v33  ;;  %v617_v46 = vrot.slane %v616_v26, 2  ;;  %v646_v47 = vadd.s32 %v645_v40, %v644_v54 }
 0x1f4   : > { %v678_v35 = vadd.s32 %v677_v17, %v676_v36  ;;  %v767_v48 = vrot.slane %v766_v43, 4  ;;  %v732_v51 = vadd.s32 %v731_v60, %v729_v23  ;;  %2106 = vpush %v530_v30  ;;  %v819_v50 = vcvt.f32.s32 %v816_v44 }
 0x1f5   : > { %v788_v49 = vpop.xlane.xlu0 %787  ;;  %v558_v55 = vadd.s32 %v557_v45, %v556_v39  ;;  %v618_v52 = vadd.s32 %v617_v46, %v616_v26  ;;  %v647_v56 = vrot.slane %v646_v47, 1  ;;  %v707_v57 = vrot.slane %v706_v41, 2 }
 0x1f6   : > { %v768_v59 = vadd.s32 %v767_v48, %v766_v43  ;;  %v733_v13 = vrot.slane %v732_v51, 4  ;;  %v822_v42 = vadd.s32 %v821_v12, %v819_v50  ;;  %v791_v63 = vcvt.f32.s32 %v788_v49 }
 0x1f7   : > { %2108 = vpush %v558_v55  ;;  %v619_v61 = vrot.slane %v618_v52, 1  ;;  %v648_v14 = vadd.s32 %v647_v56, %v646_v47  ;;  %v679_v16 = vrot.slane %v678_v35, 2  ;;  %v708_v18 = vadd.s32 %v707_v57, %v706_v41 }
 0x1f8   : > { %v734_v19 = vadd.s32 %v733_v13, %v732_v51  ;;  %v823_v53 = vrot.slane %v822_v42, 4  ;;  %v794_v21 = vadd.s32 %v793_v20, %v791_v63  ;;  %2110 = vpush %v592_v62  ;;  %v769_v60 = vrot.slane %v768_v59, 2 }
 0x1f9   : > { %v620_v22 = vadd.s32 %v619_v61, %v618_v52  ;;  %v680_v15 = vadd.s32 %v679_v16, %v678_v35  ;;  %v709_v54 = vrot.slane %v708_v18, 1 }
 0x1fa   : > { %v824_v25 = vadd.s32 %v823_v53, %v822_v42  ;;  %v795_v27 = vrot.slane %v794_v21, 4  ;;  %v735_v28 = vrot.slane %v734_v19, 2  ;;  %v770_v29 = vadd.s32 %v769_v60, %v768_v59 }
 0x1fb   : > { %2112 = vpush %v620_v22  ;;  %v681_v12 = vrot.slane %v680_v15, 1  ;;  %v710_v24 = vadd.s32 %v709_v54, %v708_v18 }
 0x1fc   : > { %v796_v30 = vadd.s32 %v795_v27, %v794_v21  ;;  %2114 = vpush %v648_v14  ;;  %v736_v32 = vadd.s32 %v735_v28, %v734_v19  ;;  %v771_v33 = vrot.slane %v770_v29, 1  ;;  %v825_v26 = vrot.slane %v824_v25, 2 }
 0x1fd   : > { %v682_v34 = vadd.s32 %v681_v12, %v680_v15 }
 0x1fe   : > { %v737_v36 = vrot.slane %v736_v32, 1  ;;  %v797_v20 = vrot.slane %v796_v30, 2  ;;  %v826_v37 = vadd.s32 %v825_v26, %v824_v25  ;;  %v772_v58 = vadd.s32 %v771_v33, %v770_v29 }
 0x1ff   : > { %2116 = vpush %v682_v34 }
 0x200   : > { %2118 = vpush %v710_v24  ;;  %v738_v38 = vadd.s32 %v737_v36, %v736_v32  ;;  %v798_v39 = vadd.s32 %v797_v20, %v796_v30  ;;  %v827_v31 = vrot.slane %v826_v37, 1 }
 0x202   : > { %2120 = vpush %v738_v38  ;;  %v799_v40 = vrot.slane %v798_v39, 1  ;;  %v828_v41 = vadd.s32 %v827_v31, %v826_v37 }
 0x203   : > { %2122 = vpush %v772_v58 }
 0x204   : > { %v800_v17 = vadd.s32 %v799_v40, %v798_v39 }
 0x206   : > { %2124 = vpush %v800_v17 }
 0x207   : > { %2126 = vpush %v828_v41 }
 0x224   : > { %s2105_s3 = spop %2104 }
 0x225   : > { %s504_s5 = sadd.s32 %s2105_s3, %s479_s26  ;;  %s2107_s6 = spop %2106 }
 0x226   : > { %506 = sst [smem:[#allocation6]] %s504_s5  ;;  %s532_s7 = sadd.s32 %s2107_s6, %s1987_s27 }
 0x227   : > { %534 = sst [smem:[#allocation6 + $0x1]] %s532_s7  ;;  %s1999_s26 = sld [smem:[#allocation6 + $0xa]] }
 0x228   : > { %s2109_s14 = spop %2108  ;;  %s2000_s27 = sld [smem:[#allocation6 + $0xb]] }
 0x229   : > { %s560_s17 = sadd.s32 %s2109_s14, %s1988_s28  ;;  %s2111_s20 = spop %2110 }
 0x22a   : > { %562 = sst [smem:[#allocation6 + $0x2]] %s560_s17  ;;  %s594_s21 = sadd.s32 %s2111_s20, %s1990_s29 }
 0x22b   : > { %596 = sst [smem:[#allocation6 + $0x3]] %s594_s21 }
 0x22c   : > { %s2113_s23 = spop %2112 }
 0x22d   : > { %s622_s25 = sadd.s32 %s2113_s23, %s1991_s30  ;;  %s2115_s12 = spop %2114 }
 0x22e   : > { %624 = sst [smem:[#allocation6 + $0x4]] %s622_s25  ;;  %s650_s0 = sadd.s32 %s2115_s12, %s1992_s4 }
 0x22f   : > { %652 = sst [smem:[#allocation6 + $0x5]] %s650_s0 }
 0x230   : > { %s2117_s3 = spop %2116 }
 0x231   : > { %s684_s5 = sadd.s32 %s2117_s3, %s1994_s8  ;;  %s2119_s6 = spop %2118 }
 0x232   : > { %686 = sst [smem:[#allocation6 + $0x6]] %s684_s5  ;;  %s712_s7 = sadd.s32 %s2119_s6, %s1995_s16 }
 0x233   : > { %714 = sst [smem:[#allocation6 + $0x7]] %s712_s7  ;;  %s2121_s28 = spop %2120 }
 0x234   : > { %s740_s14 = sadd.s32 %s2121_s28, %s1996_s22  ;;  %s2123_s29 = spop %2122 }
 0x235   : > { %742 = sst [smem:[#allocation6 + $0x8]] %s740_s14  ;;  %s774_s17 = sadd.s32 %s2123_s29, %s1998_s24 }
 0x236   : > { %776 = sst [smem:[#allocation6 + $0x9]] %s774_s17 }
 0x237   : > { %s2125_s20 = spop %2124 }
 0x238   : > { %s802_s30 = sadd.s32 %s2125_s20, %s1999_s26  ;;  %s2127_s21 = spop %2126 }
 0x239   : > { %804 = sst [smem:[#allocation6 + $0xa]] %s802_s30  ;;  %s830_s12 = sadd.s32 %s2127_s21, %s2000_s27 }
 0x23a   : > { %832 = sst [smem:[#allocation6 + $0xb]] %s830_s12 }
 0x23b PF: > { %vm835_vm2 = vcmp.ge.s32.totalorder %v2376_v2, 0  ;;  %vm836_vm11 = vcmp.ge.s32.totalorder %v2381_v3, 0  ;;  %v837_v43 = vxor.u32 2147483648, %v2376_v2  ;;  %v838_v23 = vxor.u32 2147483648, %v2381_v3  ;;  %s2001_s0 = sld [smem:[#allocation5 + $0x1]]  ;;  %s2730_s4 = sld [smem:[#allocation4 + $0x4]] }
 0x23c   : > { %v839_v44 = vxor.u32 4294967295, %v2376_v2  ;;  %v840_v45 = vxor.u32 4294967295, %v2381_v3  ;;  %v844_v62 = vstv %s2454_s18  ;;  %v849_v46 = vstv %s2456_s19  ;;  %s2732_s8 = sld [smem:[#allocation4 + $0x5]]  ;;  %s2813_s23 = sld [smem:[#allocation4 + $0x6]] }
 0x23d   : > { %vm2323_vm1 = vmmov 1   ;;  %vm3674_vm15 = vnez %v3614_v4  ;;  %vm3677_vm10 = vnez %v3616_v5  ;;  %v2324_v14 = vmov 0   ;;  %s2845_s24 = sld [smem:[#allocation4 + $0x7]]  ;;  %s2998_s25 = sld [smem:[#allocation6 + $0xc]] }
 0x23e   : > { %v841_v47 = vsel %vm835_vm2, %v837_v43, %v839_v44  ;;  %v842_v35 = vsel %vm836_vm11, %v838_v23, %v840_v45  ;;  %v3680_v19 = vmov 0  ;;  %s3000_s26 = sld [smem:[#allocation6 + $0xd]]  ;;  %s3002_s3 = sld [smem:[#allocation3 + $0x4]] }
 0x23f   : > { %v845_v48 = vand.u32 %v844_v62, %v841_v47  ;;  %v846_v51 = vand.u32 %v844_v62, %v842_v35  ;;  %v850_v50 = vand.u32 %v849_v46, %v841_v47  ;;  %v851_v49 = vand.u32 %v849_v46, %v842_v35  ;;  %s3006_s27 = sld [smem:[#allocation6 + $0xe]]  ;;  %s3008_s5 = sld [smem:[#allocation6 + $0xf]] }
 0x240   : > { %s3010_s6 = sld [smem:[#allocation6 + $0x10]]  ;;  %s3012_s7 = sld [smem:[#allocation3 + $0x5]] }
 0x241   : > { %vm847_vm7 = vcmp.eq.s32.totalorder %v845_v48, 0  ;;  %vm3592_vm6 = vcmp.eq.s32.totalorder %v850_v50, 0  ;;  %vm3591_vm8 = vcmp.eq.s32.totalorder %v851_v49, 0  ;;  %s1465_s16 = sor.u32 %s2001_s0, %s2454_s18  ;;  %vm3593_vm9 = vcmp.eq.s32.totalorder %v846_v51, 0  ;;  %s3016_s28 = sld [smem:[#allocation6 + $0x11]] }
 0x242   : > { %3669 = sst [smem:[#allocation15_spill]] %s2732_s8  ;;  %vm860_vm12 = vmxor %vm3592_vm6, %vm2323_vm1  ;;  %v864_v55 = vstv %s2001_s0  ;;  %v868_v52 = vstv %s2730_s4  ;;  %s1466_s22 = sor.u32 %s1465_s16, %s2456_s19  ;;  %v958_v61 = vstv %s2732_s8  ;;  %v1048_v36 = vstv %s2813_s23 }
 0x243   : > { %vm861_vm5 = vmxor %vm3591_vm8, %vm2323_vm1  ;;  %v2741_v56 = vand.u32 %v864_v55, %v841_v47  ;;  %v2743_v57 = vand.u32 %v864_v55, %v842_v35  ;;  %1468 = sst [smem:[#allocation5 + $0x1]] %s1466_s22  ;;  %v1138_v44 = vstv %s2845_s24  ;;  %s3018_s14 = sld [smem:[#allocation6 + $0x12]] }
 0x244   : > { %vm2746_vm0 = vmand %vm860_vm12, %vm847_vm7  ;;  %3687 = sst [smem:[#allocation16_spill]] %s2813_s23  ;;  %s3020_s29 = sld [smem:[#allocation6 + $0x13]] }
 0x245   : > { %vm2751_vm14 = vmand %vm861_vm5, %vm3593_vm9  ;;  %vm869_vm3 = vcmp.eq.s32.totalorder %v2741_v56, %v868_v52  ;;  %vm870_vm4 = vcmp.eq.s32.totalorder %v2743_v57, %v868_v52  ;;  %3695 = sst [smem:[#allocation17_spill]] %s2845_s24  ;;  %s3022_s17 = sld [smem:[#allocation3 + $0x6]] }
 0x246   : > { %vm2759_vm13 = vmand %vm3674_vm15, %vm869_vm3  ;;  %3712 = sst [smem:[#allocation18_spill]] %s3010_s6  ;;  %s3026_s20 = sld [smem:[#allocation6 + $0x14]] }
 0x247   : > { %vm2765_vm2 = vmand %vm3677_vm10, %vm870_vm4  ;;  %vm959_vm4 = vcmp.eq.s32.totalorder %v2741_v56, %v958_v61  ;;  %vm960_vm10 = vcmp.eq.s32.totalorder %v2743_v57, %v958_v61  ;;  %3713 = sst [smem:[#allocation19_spill]] %s3012_s7  ;;  %s3028_s30 = sld [smem:[#allocation6 + $0x15]] }
 0x248   : > { %vm930_vm11 = vmand %vm2759_vm13, %vm2746_vm0  ;;  %3714 = sst [smem:[#allocation20_spill]] %s3016_s28  ;;  %s3030_s21 = sld [smem:[#allocation6]] }
 0x249   : > { %vm931_vm12 = vmand %vm2765_vm2, %vm2751_vm14  ;;  %v932_v16 = vsel %vm930_vm11, 1, %v2324_v14  ;;  %3715 = sst [smem:[#allocation21_spill]] %s3018_s14  ;;  %s3032_s12 = sld [smem:[#allocation6 + $0x1]] }
 0x24a   : > { %v933_v18 = vsel %vm931_vm12, 1, %v2324_v14  ;;  %vm2782_vm5 = vmand %vm3592_vm6, %vm847_vm7  ;;  %vm3684_vm12 = vnez %v3618_v6  ;;  %vm3688_vm6 = vnez %v3620_v7  ;;  %3716 = sst [smem:[#allocation22_spill]] %s3020_s29  ;;  %s3036_s0 = sld [smem:[#allocation6 + $0x2]] }
 0x24b   : > { %v3681_v19 = vsel %vm2782_vm5, 4294967295, %v3680_v19  ;;  %v2786_v53 = vadd.s32 %v933_v18, %v932_v16  ;;  %vm2790_vm3 = vmand %vm3591_vm8, %vm3593_vm9  ;;  %3717 = sst [smem:[#allocation23_spill]] %s3022_s17  ;;  %s3038_s16 = sld [smem:[#allocation3]] }
 0x24c   : > { %vm874_vm15 = vmand %vm2759_vm13, %vm2782_vm5  ;;  %3718 = sst [smem:[#allocation24_spill]] %s3026_s20  ;;  %s3040_s22 = sld [smem:[#allocation6 + $0x3]] }
 0x24d   : > { %v936_v60 = vshrl.u32 %v2786_v53, 16  ;;  %vm875_vm11 = vmand %vm2765_vm2, %vm2790_vm3  ;;  %v876_v22 = vsel %vm874_vm15, 1, %v2324_v14  ;;  %3719 = sst [smem:[#allocation25_spill]] %s3028_s30  ;;  %s3042_s1 = sld [smem:[#allocation6 + $0x4]] }
 0x24e   : > { %v877_v15 = vsel %vm875_vm11, 1, %v2324_v14  ;;  %vm2809_vm8 = vmand %vm3684_vm12, %vm959_vm4  ;;  %vm3692_vm12 = vcmp.eq.s32.totalorder %v850_v50, 0  ;;  %s3044_s13 = sld [smem:[#allocation6 + $0x5]]  ;;  %s3046_s10 = sld [smem:[#allocation3 + $0x1]] }
 0x24f   : > { %v938_v25 = vcvt.s32.f32 %v936_v60  ;;  %v2815_v27 = vadd.s32 %v877_v15, %v876_v22  ;;  %vm2819_vm9 = vmand %vm3688_vm6, %vm960_vm10  ;;  %vm3691_vm10 = vcmp.eq.s32.totalorder %v846_v51, 0  ;;  %s3048_s2 = sld [smem:[#allocation6 + $0x6]]  ;;  %s3050_s11 = sld [smem:[#allocation6 + $0x7]] }
 0x250   : > { %vm964_vm15 = vmand %vm2809_vm8, %vm2782_vm5  ;;  %s3052_s24 = sld [smem:[#allocation6 + $0x8]]  ;;  %s3054_s19 = sld [smem:[#allocation3 + $0x2]] }
 0x251   : > { %941 = vadd.xlane.f32.xlu1 %v938_v25  ;;  %v880_v29 = vshrl.u32 %v2815_v27, 16  ;;  %vm965_vm4 = vmand %vm2819_vm9, %vm2790_vm3  ;;  %v966_v12 = vsel %vm964_vm15, 1, %v2324_v14  ;;  %vm3696_vm15 = vcmp.eq.s32.totalorder %v851_v49, 0  ;;  %s3058_s23 = sadd.s32 %s3032_s12, %s3030_s21  ;;  %s3060_s30 = sld [smem:[#allocation6 + $0x9]] }
 0x252   : > { %v967_v24 = vsel %vm965_vm4, 1, %v2324_v14  ;;  %vm856_vm6 = vmxor %vm847_vm7, %vm2323_vm1  ;;  %p1234_p0 = scmp.ge.s32.totalorder %s3038_s16, %s3030_s21  ;;  %p1236_p1 = scmp.ge.s32.totalorder %s3038_s16, %s3058_s23 }
 0x253   : > { %v882_v30 = vcvt.s32.f32 %v880_v29  ;;  %v2836_v32 = vadd.s32 %v967_v24, %v966_v12  ;;  %vm857_vm11 = vmxor %vm3691_vm10, %vm2323_vm1  ;;  %s1237_s20 = sadd.s32 %s3036_s0, %s3058_s23  ;;  %s3070_s17 = sld [smem:[#allocation4]] }
 0x254   : > { %vm2841_vm5 = vmand %vm3692_vm12, %vm856_vm6  ;;  %p3075_p2 = scmp.ge.s32.totalorder %s3038_s16, %s1237_s20  ;;  %p1264_p3 = scmp.ge.s32.totalorder %s3046_s10, %s3040_s22 }
 0x255   : > { %885 = vadd.xlane.f32.xlu0 %v882_v30  ;;  %v970_v26 = vshrl.u32 %v2836_v32, 16  ;;  %vm2849_vm4 = vmand %vm3696_vm15, %vm857_vm11  ;;  %vm1050_vm11 = vcmp.eq.s32.totalorder %v2743_v57, %v1048_v36  ;;  %vm3699_vm15 = vnez %v3622_v8  ;;  %s1239_s8 = scalar_select %p1234_p0, 1, 0 }
 0x256   : > { %vm902_vm7 = vmand %vm2759_vm13, %vm2841_vm5  ;;  %s1240_s20 = scalar_select %p1236_p1, 1, 0 }
 0x257   : > { %v972_v20 = vcvt.s32.f32 %v970_v26  ;;  %vm903_vm1 = vmand %vm2765_vm2, %vm2849_vm4  ;;  %v904_v37 = vsel %vm902_vm7, 1, %v2324_v14  ;;  %vm1049_vm2 = vcmp.eq.s32.totalorder %v2741_v56, %v1048_v36  ;;  %s1242_s14 = scalar_select %p3075_p2, 1, 0 }
 0x258   : > { %v905_v58 = vsel %vm903_vm1, 1, %v2324_v14  ;;  %vm1020_vm6 = vmand %vm2809_vm8, %vm2746_vm0  ;;  %s1241_s28 = sadd.s32 %s1240_s20, %s1239_s8  ;;  %s3094_s7 = sadd.s32 %s3042_s1, %s3040_s22 }
 0x259   : > { %975 = vadd.xlane.f32.xlu1 %v972_v20  ;;  %v2868_v38 = vadd.s32 %v905_v58, %v904_v37  ;;  %vm1021_vm13 = vmand %vm2819_vm9, %vm2751_vm14  ;;  %v1022_v39 = vsel %vm1020_vm6, 1, %v2324_v14  ;;  %s1243_s6 = sadd.s32 %s1242_s14, %s1241_s28  ;;  %p1266_p4 = scmp.ge.s32.totalorder %s3046_s10, %s3094_s7 }
 0x25a   : > { %v1023_v31 = vsel %vm1021_vm13, 1, %v2324_v14  ;;  %vm992_vm10 = vmand %vm2809_vm8, %vm2841_vm5  ;;  %vm3702_vm8 = vnez %v3624_v9  ;;  %vm1139_vm13 = vcmp.eq.s32.totalorder %v2741_v56, %v1138_v44  ;;  %s3771_s21 = smov (!%p1234_p0, %s3030_s21), 0  ;;  %s3773_s12 = smov (!%p1236_p1, %s3032_s12), 0 }
 0x25b   : > { %v908_v40 = vshrl.u32 %v2868_v38, 16  ;;  %v2883_v41 = vadd.s32 %v1023_v31, %v1022_v39  ;;  %vm993_vm12 = vmand %vm2819_vm9, %vm2849_vm4  ;;  %v994_v17 = vsel %vm992_vm10, 1, %v2324_v14  ;;  %v907_v33 = vand.u32 65535, %v2868_v38  ;;  %s1245_s8 = ssub.s32 %s3038_s16, %s3771_s21  ;;  %s1251_s28 = sshll.u32 %s1243_s6, %s2451_s15 }
 0x25c   : > { %v995_v43 = vsel %vm993_vm12, 1, %v2324_v14  ;;  %vm2893_vm7 = vmand %vm3699_vm15, %vm1049_vm2  ;;  %vm3705_vm2 = vnez %v3681_v19  ;;  %vm3706_vm15 = vnez %v3626_v10  ;;  %v879_v31 = vand.u32 65535, %v2815_v27  ;;  %s1247_s14 = ssub.s32 %s1245_s8, %s3773_s12  ;;  %s1252_s20 = sor.u32 %s1251_s28, %s3070_s17 }
 0x25d   : > { %v910_v45 = vcvt.s32.f32 %v908_v40  ;;  %v1026_v62 = vshrl.u32 %v2883_v41, 16  ;;  %v2899_v46 = vadd.s32 %v995_v43, %v994_v17  ;;  %vm2903_vm1 = vmand %vm3702_vm8, %vm1050_vm11  ;;  %vm1140_vm11 = vcmp.eq.s32.totalorder %v2743_v57, %v1138_v44  ;;  %s3775_s0 = smov (!%p3075_p2, %s3036_s0), 0  ;;  %s3777_s20 = smov (!%p384_p12, %s1252_s20), %s3070_s17 }
 0x25e   : > { %vm1082_vm9 = vmand %vm2893_vm7, %vm2841_vm5  ;;  %v909_v40 = vcvt.s32.f32 %v907_v33  ;;  %v969_v17 = vand.u32 65535, %v2836_v32  ;;  %v881_v43 = vcvt.s32.f32 %v879_v31  ;;  %v1025_v44 = vand.u32 65535, %v2883_v41  ;;  %s1249_s23 = ssub.s32 %s1247_s14, %s3775_s0  ;;  %s1267_s6 = sadd.s32 %s3044_s13, %s3094_s7 }
 0x25f   : > { %913 = vadd.xlane.f32.xlu0 %v910_v45  ;;  %v1028_v35 = vcvt.s32.f32 %v1026_v62  ;;  %v998_v48 = vshrl.u32 %v2899_v46, 16  ;;  %vm1083_vm6 = vmand %vm2903_vm1, %vm2849_vm4  ;;  %v1084_v51 = vsel %vm1082_vm9, 1, %v2324_v14  ;;  %vm3709_vm9 = vnez %v3628_v11  ;;  %s3779_s23 = smov (!%p384_p12, %s1249_s23), %s3038_s16  ;;  %1259 = sst [smem:[#allocation4]] %s3777_s20 }
 0x260   : > { %v1085_v50 = vsel %vm1083_vm6, 1, %v2324_v14  ;;  %vm1054_vm10 = vmand %vm2893_vm7, %vm3705_vm2  ;;  %v971_v23 = vcvt.s32.f32 %v969_v17  ;;  %v997_v45 = vand.u32 65535, %v2899_v46  ;;  %v1027_v62 = vcvt.s32.f32 %v1025_v44  ;;  %p3125_p5 = scmp.ge.s32.totalorder %s3046_s10, %s1267_s6  ;;  %1255 = sst [smem:[#allocation3]] %s3779_s23 }
 0x261   : > { %1031 = vadd.xlane.f32.xlu1 %v1028_v35  ;;  %v1000_v49 = vcvt.s32.f32 %v998_v48  ;;  %v2924_v55 = vadd.s32 %v1085_v50, %v1084_v51  ;;  %vm1055_vm12 = vmand %vm2903_vm1, %vm2790_vm3  ;;  %v1056_v52 = vsel %vm1054_vm10, 1, %v2324_v14  ;;  %s3129_s17 = sld [smem:[#allocation4 + $0x1]]  ;;  %p1294_p6 = scmp.ge.s32.totalorder %s3054_s19, %s3048_s2 }
 0x262   : > { %v1057_v56 = vsel %vm1055_vm12, 1, %v2324_v14  ;;  %vm2934_vm8 = vmand %vm3706_vm15, %vm1139_vm13  ;;  %v999_v47 = vcvt.s32.f32 %v997_v45  ;;  %s1269_s21 = scalar_select %p1264_p3, 1, 0 }
 0x263   : > { %1003 = vadd.xlane.f32.xlu0 %v1000_v49  ;;  %v1088_v57 = vshrl.u32 %v2924_v55, 16  ;;  %v1058_v63 = vadd.s32 %v1057_v56, %v1056_v52  ;;  %vm2941_vm6 = vmand %vm3709_vm9, %vm1140_vm11  ;;  %v1087_v27 = vand.u32 65535, %v2924_v55  ;;  %s1270_s12 = scalar_select %p1266_p4, 1, 0 }
 0x264   : > { %vm1144_vm10 = vmand %vm2934_vm8, %vm3705_vm2  ;;  %s1272_s0 = scalar_select %p3125_p5, 1, 0 }
 0x265   : > { %v1090_v16 = vcvt.s32.f32 %v1088_v57  ;;  %v1060_v18 = vshrl.u32 %v1058_v63, 16  ;;  %vm1145_vm13 = vmand %vm2941_vm6, %vm2790_vm3  ;;  %v1146_v60 = vsel %vm1144_vm10, 1, %v2324_v14  ;;  %v1059_v35 = vand.u32 65535, %v1058_v63  ;;  %s1271_s16 = sadd.s32 %s1270_s12, %s1269_s21  ;;  %s3145_s28 = sadd.s32 %s3050_s11, %s3048_s2 }
 0x266   : > { %v1147_v22 = vsel %vm1145_vm13, 1, %v2324_v14  ;;  %vm1110_vm11 = vmand %vm2893_vm7, %vm2746_vm0  ;;  %v1089_v32 = vcvt.s32.f32 %v1087_v27  ;;  %s1273_s8 = sadd.s32 %s1272_s0, %s1271_s16  ;;  %s3781_s22 = smov (!%p1264_p3, %s3040_s22), 0 }
 0x267   : > { %1093 = vadd.xlane.f32.xlu1 %v1090_v16  ;;  %v1062_v19 = vcvt.s32.f32 %v1060_v18  ;;  %v1148_v15 = vadd.s32 %v1147_v22, %v1146_v60  ;;  %vm1111_vm2 = vmand %vm2903_vm1, %vm2751_vm14  ;;  %v1112_v21 = vsel %vm1110_vm11, 1, %v2324_v14  ;;  %s3783_s1 = smov (!%p1266_p4, %s3042_s1), 0  ;;  %s1275_s14 = ssub.s32 %s3046_s10, %s3781_s22 }
 0x268   : > { %v1113_v54 = vsel %vm1111_vm2, 1, %v2324_v14  ;;  %vm1200_vm3 = vmand %vm2934_vm8, %vm2746_vm0  ;;  %s1281_s20 = sshll.u32 %s1273_s8, %s2451_s15  ;;  %s1277_s23 = ssub.s32 %s1275_s14, %s3783_s1 }
 0x269   : > { %1065 = vadd.xlane.f32.xlu0 %v1062_v19  ;;  %v1150_v25 = vshrl.u32 %v1148_v15, 16  ;;  %v1114_v28 = vadd.s32 %v1113_v54, %v1112_v21  ;;  %vm1201_vm7 = vmand %vm2941_vm6, %vm2751_vm14  ;;  %v1202_v29 = vsel %vm1200_vm3, 1, %v2324_v14  ;;  %v1149_v48 = vand.u32 65535, %v1148_v15  ;;  %s1282_s6 = sor.u32 %s3129_s17, %s1281_s20  ;;  %s3785_s13 = smov (!%p3125_p5, %s3044_s13), 0 }
 0x26a   : > { %v1203_v12 = vsel %vm1201_vm7, 1, %v2324_v14  ;;  %vm1172_vm1 = vmand %vm2934_vm8, %vm2841_vm5  ;;  %s3787_s6 = smov (!%p384_p12, %s1282_s6), %s3129_s17  ;;  %s1279_s1 = ssub.s32 %s1277_s23, %s3785_s13 }
 0x26b   : > { %v1152_v59 = vcvt.s32.f32 %v1150_v25  ;;  %v1116_v24 = vshrl.u32 %v1114_v28, 16  ;;  %v1204_v30 = vadd.s32 %v1203_v12, %v1202_v29  ;;  %vm1173_vm0 = vmand %vm2941_vm6, %vm2849_vm4  ;;  %v1174_v13 = vsel %vm1172_vm1, 1, %v2324_v14  ;;  %p1296_p7 = scmp.ge.s32.totalorder %s3054_s19, %s3145_s28  ;;  %s3789_s1 = smov (!%p384_p12, %s1279_s1), %s3046_s10 }
 0x26c   : > { %v1175_v26 = vsel %vm1173_vm0, 1, %v2324_v14  ;;  %v935_v14 = vand.u32 65535, %v2786_v53  ;;  %v1061_v53 = vcvt.s32.f32 %v1059_v35  ;;  %v1115_v51 = vand.u32 65535, %v1114_v28  ;;  %1289 = sst [smem:[#allocation4 + $0x1]] %s3787_s6  ;;  %s1297_s7 = sadd.s32 %s3052_s24, %s3145_s28 }
 0x26d   : > { %1155 = vadd.xlane.f32.xlu1 %v1152_v59  ;;  %v1118_v36 = vcvt.s32.f32 %v1116_v24  ;;  %v1206_v20 = vshrl.u32 %v1204_v30, 16  ;;  %v1176_v37 = vadd.s32 %v1175_v26, %v1174_v13  ;;  %v1151_v50 = vcvt.s32.f32 %v1149_v48  ;;  %1285 = sst [smem:[#allocation3 + $0x1]] %s3789_s1  ;;  %p3172_p8 = scmp.ge.s32.totalorder %s3054_s19, %s1297_s7 }
 0x26e   : > { %v937_v38 = vcvt.s32.f32 %v935_v14  ;;  %v1205_v41 = vand.u32 65535, %v1204_v30  ;;  %v1117_v49 = vcvt.s32.f32 %v1115_v51  ;;  %s1299_s10 = scalar_select %p1294_p6, 1, 0 }
 0x26f   : > { %1121 = vadd.xlane.f32.xlu0 %v1118_v36  ;;  %v1208_v58 = vcvt.s32.f32 %v1206_v20  ;;  %v1178_v39 = vshrl.u32 %v1176_v37, 16  ;;  %v1177_v52 = vand.u32 65535, %v1176_v37  ;;  %s1300_s22 = scalar_select %p1296_p7, 1, 0 }
 0x270   : > { %v1207_v46 = vcvt.s32.f32 %v1205_v41  ;;  %s1302_s29 = scalar_select %p3172_p8, 1, 0 }
 0x271   : > { %1211 = vadd.xlane.f32.xlu1 %v1208_v58  ;;  %v1180_v34 = vcvt.s32.f32 %v1178_v39  ;;  %v1179_v56 = vcvt.s32.f32 %v1177_v52  ;;  %s1301_s17 = sadd.s32 %s1300_s22, %s1299_s10  ;;  %s2030_s21 = sld [smem:[#allocation4 + $0x2]] }
 0x272   : > { %s1303_s12 = sadd.s32 %s1302_s29, %s1301_s17  ;;  %s3184_s0 = sld [smem:[#allocation6 + $0xa]] }
 0x273   : > { %1183 = vadd.xlane.f32.xlu0 %v1180_v34  ;;  %s3791_s2 = smov (!%p1294_p6, %s3048_s2), 0  ;;  %s3793_s11 = smov (!%p1296_p7, %s3050_s11), 0 }
 0x274   : > { %s1305_s16 = ssub.s32 %s3054_s19, %s3791_s2  ;;  %s1311_s8 = sshll.u32 %s1303_s12, %s2451_s15 }
 0x275   : > { %911 = vadd.xlane.f32.xlu1 %v909_v40  ;;  %s1307_s14 = ssub.s32 %s1305_s16, %s3793_s11  ;;  %s3196_s20 = sld [smem:[#allocation6 + $0xb]] }
 0x276   : > { %s3795_s24 = smov (!%p3172_p8, %s3052_s24), 0  ;;  %s3201_s6 = sld [smem:[#allocation3 + $0x3]] }
 0x277   : > { %883 = vadd.xlane.f32.xlu0 %v881_v43  ;;  %s1312_s23 = sor.u32 %s2030_s21, %s1311_s8  ;;  %s1309_s1 = ssub.s32 %s1307_s14, %s3795_s24 }
 0x278   : > { %s1325_s7 = sadd.s32 %s3184_s0, %s3060_s30  ;;  %s3797_s1 = smov (!%p384_p12, %s1309_s1), %s3054_s19 }
 0x279   : > { %973 = vadd.xlane.f32.xlu1 %v971_v23  ;;  %s3799_s23 = smov (!%p384_p12, %s1312_s23), %s2030_s21  ;;  %1315 = sst [smem:[#allocation3 + $0x2]] %s3797_s1 }
 0x27a   : > { %s3211_s11 = sld [smem:[#allocation3 + $0x7]]  ;;  %1319 = sst [smem:[#allocation4 + $0x2]] %s3799_s23 }
 0x27b   : > { %939 = vadd.xlane.f32.xlu0 %v937_v38  ;;  %s1327_s2 = sadd.s32 %s3196_s20, %s1325_s7  ;;  %s2036_s19 = sld [smem:[#allocation4 + $0x3]] }
 0x27c   : > { %p1324_p9 = scmp.ge.s32.totalorder %s3201_s6, %s3060_s30  ;;  %p1326_p10 = scmp.ge.s32.totalorder %s3201_s6, %s1325_s7 }
 0x27d   : > { %1029 = vadd.xlane.f32.xlu1 %v1027_v62  ;;  %p3217_p11 = scmp.ge.s32.totalorder %s3201_s6, %s1327_s2  ;;  %s3223_s22 = sld [smem:[#allocation6 + $0x16]] }
 0x27e   : > { %s1329_s24 = scalar_select %p1324_p9, 1, 0 }
 0x27f   : > { %1001 = vadd.xlane.f32.xlu0 %v999_v47  ;;  %s1330_s13 = scalar_select %p1326_p10, 1, 0 }
 0x280   : > { %s1332_s10 = scalar_select %p3217_p11, 1, 0 }
 0x281   : > { %1091 = vadd.xlane.f32.xlu1 %v1089_v32  ;;  %s1331_s29 = sadd.s32 %s1330_s13, %s1329_s24  ;;  %s3225_s21 = sld [smem:[#allocation5]] }
 0x282   : > { %s1333_s17 = sadd.s32 %s1332_s10, %s1331_s29  ;;  %s3801_s30 = smov (!%p1324_p9, %s3060_s30), 0 }
 0x283   : > { %1063 = vadd.xlane.f32.xlu0 %v1061_v53  ;;  %s3803_s0 = smov (!%p1326_p10, %s3184_s0), 0  ;;  %s1335_s12 = ssub.s32 %s3201_s6, %s3801_s30 }
 0x284   : > { %s1341_s16 = sshll.u32 %s1333_s17, %s2451_s15  ;;  %s1337_s8 = ssub.s32 %s1335_s12, %s3803_s0 }
 0x285   : > { %1153 = vadd.xlane.f32.xlu1 %v1151_v50  ;;  %s1342_s14 = sor.u32 %s2036_s19, %s1341_s16  ;;  %s3805_s20 = smov (!%p3217_p11, %s3196_s20), 0 }
 0x286   : > { %s3807_s14 = smov (!%p384_p12, %s1342_s14), %s2036_s19  ;;  %s3236_s23 = sld [smem:[#allocation6 + $0x17]] }
 0x287   : > { %1119 = vadd.xlane.f32.xlu0 %v1117_v49  ;;  %s1339_s1 = ssub.s32 %s1337_s8, %s3805_s20  ;;  %1349 = sst [smem:[#allocation4 + $0x3]] %s3807_s14 }
 0x288   : > { %s3809_s1 = smov (!%p384_p12, %s1339_s1), %s3201_s6  ;;  %s1459_s7 = sor.u32 %s3225_s21, %s2454_s18 }
 0x289   : > { %1209 = vadd.xlane.f32.xlu1 %v1207_v46  ;;  %1345 = sst [smem:[#allocation3 + $0x3]] %s3809_s1  ;;  %s3724_s17 = sld [smem:[#allocation18_spill]] }
 0x28a   : > { %s3725_s12 = sld [smem:[#allocation19_spill]] }
 0x28b   : > { %1181 = vadd.xlane.f32.xlu0 %v1179_v56 }
 0x2de   : > { %v942_v55 = vpop.xlane.xlu1 %941 }
 0x2df   : > { %v944_v24 = vcvt.f32.s32 %v942_v55 }
 0x2e1   : > { %v945_v17 = vshll.u32 %v944_v24, 16 }
 0x2e2   : > { %v886_v42 = vpop.xlane.xlu0 %885 }
 0x2e3   : > { %v888_v25 = vcvt.f32.s32 %v886_v42 }
 0x2e5   : > { %v889_v26 = vshll.u32 %v888_v25, 16 }
 0x2e6   : > { %v976_v57 = vpop.xlane.xlu1 %975 }
 0x2e7   : > { %v978_v29 = vcvt.f32.s32 %v976_v57 }
 0x2e9   : > { %v979_v39 = vshll.u32 %v978_v29, 16 }
 0x2ec   : > { %v914_v63 = vpop.xlane.xlu0 %913 }
 0x2ed   : > { %v916_v21 = vcvt.f32.s32 %v914_v63 }
 0x2ee   : > { %v1032_v61 = vpop.xlane.xlu1 %1031 }
 0x2ef   : > { %v917_v12 = vshll.u32 %v916_v21, 16  ;;  %v1034_v30 = vcvt.f32.s32 %v1032_v61 }
 0x2f0   : > { %v2992_v16 = vpop.xlane.xlu0 %1003 }
 0x2f1   : > { %v1006_v37 = vcvt.f32.s32 %v2992_v16  ;;  %v1035_v43 = vshll.u32 %v1034_v30, 16 }
 0x2f3   : > { %v1007_v47 = vshll.u32 %v1006_v37, 16 }
 0x2f4   : > { %v2994_v18 = vpop.xlane.xlu1 %1093 }
 0x2f5   : > { %v1096_v33 = vcvt.f32.s32 %v2994_v18 }
 0x2f6   : > { %v2996_v60 = vpop.xlane.xlu0 %1065 }
 0x2f7   : > { %v1068_v14 = vcvt.f32.s32 %v2996_v60  ;;  %v1097_v35 = vshll.u32 %v1096_v33, 16 }
 0x2f9   : > { %v1069_v52 = vshll.u32 %v1068_v14, 16 }
 0x2fa   : > { %v3004_v22 = vpop.xlane.xlu1 %1155 }
 0x2fb   : > { %v1158_v23 = vcvt.f32.s32 %v3004_v22 }
 0x2fc   : > { %v3014_v19 = vpop.xlane.xlu0 %1121 }
 0x2fd   : > { %v1124_v32 = vcvt.f32.s32 %v3014_v19  ;;  %v1159_v46 = vshll.u32 %v1158_v23, 16 }
 0x2fe   : > { %v3024_v15 = vpop.xlane.xlu1 %1211 }
 0x2ff   : > { %v1214_v48 = vcvt.f32.s32 %v3024_v15  ;;  %v1125_v18 = vshll.u32 %v1124_v32, 16 }
 0x300   : > { %v3034_v54 = vpop.xlane.xlu0 %1183 }
 0x301   : > { %v1186_v56 = vcvt.f32.s32 %v3034_v54  ;;  %v3098_v60 = vshll.u32 %v1214_v48, 16 }
 0x302   : > { %v912_v28 = vpop.xlane.xlu1 %911 }
 0x303   : > { %v915_v59 = vcvt.f32.s32 %v912_v28  ;;  %v3108_v29 = vshll.u32 %v1186_v56, 16 }
 0x304   : > { %v884_v13 = vpop.xlane.xlu0 %883 }
 0x305   : > { %v918_v36 = vadd.s32 %v917_v12, %v915_v59  ;;  %v887_v20 = vcvt.f32.s32 %v884_v13 }
 0x306   : > { %v974_v58 = vpop.xlane.xlu1 %973 }
 0x307   : > { %v919_v31 = vrot.slane %v918_v36, 4  ;;  %v890_v34 = vadd.s32 %v889_v26, %v887_v20  ;;  %v977_v40 = vcvt.f32.s32 %v974_v58 }
 0x308   : > { %v940_v44 = vpop.xlane.xlu0 %939 }
 0x309   : > { %v920_v38 = vadd.s32 %v919_v31, %v918_v36  ;;  %v891_v45 = vrot.slane %v890_v34, 4  ;;  %v980_v62 = vadd.s32 %v979_v39, %v977_v40  ;;  %v943_v27 = vcvt.f32.s32 %v940_v44 }
 0x30a   : > { %v1030_v53 = vpop.xlane.xlu1 %1029 }
 0x30b   : > { %v981_v51 = vrot.slane %v980_v62, 4  ;;  %v946_v50 = vadd.s32 %v945_v17, %v943_v27  ;;  %v1033_v41 = vcvt.f32.s32 %v1030_v53  ;;  %v892_v49 = vadd.s32 %v891_v45, %v890_v34 }
 0x30c   : > { %v1002_v55 = vpop.xlane.xlu0 %1001  ;;  %v921_v42 = vrot.slane %v920_v38, 2 }
 0x30d   : > { %v982_v57 = vadd.s32 %v981_v51, %v980_v62  ;;  %v947_v63 = vrot.slane %v946_v50, 4  ;;  %v1036_v61 = vadd.s32 %v1035_v43, %v1033_v41  ;;  %v1005_v16 = vcvt.f32.s32 %v1002_v55 }
 0x30e   : > { %v1092_v22 = vpop.xlane.xlu1 %1091  ;;  %v893_v19 = vrot.slane %v892_v49, 2  ;;  %v922_v15 = vadd.s32 %v921_v42, %v920_v38 }
 0x30f   : > { %v948_v21 = vadd.s32 %v947_v63, %v946_v50  ;;  %v1037_v54 = vrot.slane %v1036_v61, 4  ;;  %v1008_v25 = vadd.s32 %v1007_v47, %v1005_v16  ;;  %v1095_v28 = vcvt.f32.s32 %v1092_v22 }
 0x310   : > { %v1064_v12 = vpop.xlane.xlu0 %1063  ;;  %v894_v59 = vadd.s32 %v893_v19, %v892_v49  ;;  %v923_v24 = vrot.slane %v922_v15, 1  ;;  %v983_v30 = vrot.slane %v982_v57, 2 }
 0x311   : > { %v1038_v13 = vadd.s32 %v1037_v54, %v1036_v61  ;;  %v1009_v26 = vrot.slane %v1008_v25, 4  ;;  %v1098_v36 = vadd.s32 %v1097_v35, %v1095_v28  ;;  %v1067_v20 = vcvt.f32.s32 %v1064_v12 }
 0x312   : > { %v1154_v37 = vpop.xlane.xlu1 %1153  ;;  %v895_v33 = vrot.slane %v894_v59, 1  ;;  %v924_v58 = vadd.s32 %v923_v24, %v922_v15  ;;  %v949_v39 = vrot.slane %v948_v21, 2  ;;  %v984_v31 = vadd.s32 %v983_v30, %v982_v57 }
 0x313   : > { %v1010_v34 = vadd.s32 %v1009_v26, %v1008_v25  ;;  %v1099_v40 = vrot.slane %v1098_v36, 4  ;;  %v1070_v17 = vadd.s32 %v1069_v52, %v1067_v20  ;;  %v1157_v43 = vcvt.f32.s32 %v1154_v37 }
 0x314   : > { %v1120_v14 = vpop.xlane.xlu0 %1119  ;;  %v896_v23 = vadd.s32 %v895_v33, %v894_v59  ;;  %v950_v44 = vadd.s32 %v949_v39, %v948_v21  ;;  %v985_v38 = vrot.slane %v984_v31, 1  ;;  %v1039_v45 = vrot.slane %v1038_v13, 2 }
 0x315   : > { %v1100_v62 = vadd.s32 %v1099_v40, %v1098_v36  ;;  %v1071_v27 = vrot.slane %v1070_v17, 4  ;;  %v1160_v47 = vadd.s32 %v1159_v46, %v1157_v43  ;;  %v1123_v35 = vcvt.f32.s32 %v1120_v14 }
 0x316   : > { %2128 = vpush %v896_v23  ;;  %v1210_v32 = vpop.xlane.xlu1 %1209  ;;  %v951_v48 = vrot.slane %v950_v44, 1  ;;  %v986_v53 = vadd.s32 %v985_v38, %v984_v31  ;;  %v1011_v51 = vrot.slane %v1010_v34, 2  ;;  %v1040_v50 = vadd.s32 %v1039_v45, %v1038_v13 }
 0x317   : > { %v1072_v41 = vadd.s32 %v1071_v27, %v1070_v17  ;;  %v1161_v49 = vrot.slane %v1160_v47, 4  ;;  %v1126_v52 = vadd.s32 %v1125_v18, %v1123_v35  ;;  %2130 = vpush %v924_v58  ;;  %v1213_v46 = vcvt.f32.s32 %v1210_v32 }
 0x318   : > { %v1182_v56 = vpop.xlane.xlu0 %1181  ;;  %v952_v55 = vadd.s32 %v951_v48, %v950_v44  ;;  %v1012_v42 = vadd.s32 %v1011_v51, %v1010_v34  ;;  %v1041_v57 = vrot.slane %v1040_v50, 1  ;;  %v1101_v63 = vrot.slane %v1100_v62, 2 }
 0x319   : > { %v1162_v61 = vadd.s32 %v1161_v49, %v1160_v47  ;;  %v1127_v16 = vrot.slane %v1126_v52, 4  ;;  %v1216_v22 = vadd.s32 %v3098_v60, %v1213_v46  ;;  %v1185_v18 = vcvt.f32.s32 %v1182_v56 }
 0x31a   : > { %2132 = vpush %v952_v55  ;;  %v1013_v19 = vrot.slane %v1012_v42, 1  ;;  %v1042_v15 = vadd.s32 %v1041_v57, %v1040_v50  ;;  %v1073_v21 = vrot.slane %v1072_v41, 2  ;;  %v1102_v54 = vadd.s32 %v1101_v63, %v1100_v62 }
 0x31b   : > { %v1128_v25 = vadd.s32 %v1127_v16, %v1126_v52  ;;  %v1217_v28 = vrot.slane %v1216_v22, 4  ;;  %v1188_v12 = vadd.s32 %v3108_v29, %v1185_v18  ;;  %2134 = vpush %v986_v53  ;;  %v1163_v60 = vrot.slane %v1162_v61, 2 }
 0x31c   : > { %v1014_v59 = vadd.s32 %v1013_v19, %v1012_v42  ;;  %v1074_v24 = vadd.s32 %v1073_v21, %v1072_v41  ;;  %v1103_v30 = vrot.slane %v1102_v54, 1 }
 0x31d   : > { %v1218_v13 = vadd.s32 %v1217_v28, %v1216_v22  ;;  %v1189_v26 = vrot.slane %v1188_v12, 4  ;;  %v1129_v36 = vrot.slane %v1128_v25, 2  ;;  %v1164_v29 = vadd.s32 %v1163_v60, %v1162_v61 }
 0x31e   : > { %2136 = vpush %v1014_v59  ;;  %v1075_v20 = vrot.slane %v1074_v24, 1  ;;  %v1104_v37 = vadd.s32 %v1103_v30, %v1102_v54 }
 0x31f   : > { %v1190_v33 = vadd.s32 %v1189_v26, %v1188_v12  ;;  %2138 = vpush %v1042_v15  ;;  %v1130_v58 = vadd.s32 %v1129_v36, %v1128_v25  ;;  %v1165_v39 = vrot.slane %v1164_v29, 1  ;;  %v1219_v31 = vrot.slane %v1218_v13, 2 }
 0x320   : > { %v1076_v34 = vadd.s32 %v1075_v20, %v1074_v24 }
 0x321   : > { %v1131_v40 = vrot.slane %v1130_v58, 1  ;;  %v1191_v17 = vrot.slane %v1190_v33, 2  ;;  %v1220_v43 = vadd.s32 %v1219_v31, %v1218_v13  ;;  %v1166_v14 = vadd.s32 %v1165_v39, %v1164_v29 }
 0x322   : > { %2140 = vpush %v1076_v34 }
 0x323   : > { %2142 = vpush %v1104_v37  ;;  %v1132_v23 = vadd.s32 %v1131_v40, %v1130_v58  ;;  %v1192_v44 = vadd.s32 %v1191_v17, %v1190_v33  ;;  %v1221_v38 = vrot.slane %v1220_v43, 1 }
 0x325   : > { %2144 = vpush %v1132_v23  ;;  %v1193_v45 = vrot.slane %v1192_v44, 1  ;;  %v1222_v62 = vadd.s32 %v1221_v38, %v1220_v43 }
 0x326   : > { %2146 = vpush %v1166_v14 }
 0x327   : > { %v1194_v27 = vadd.s32 %v1193_v45, %v1192_v44 }
 0x329   : > { %2148 = vpush %v1194_v27 }
 0x32a   : > { %2150 = vpush %v1222_v62 }
 0x347   : > { %s2129_s2 = spop %2128 }
 0x348   : > { %s898_s30 = sadd.s32 %s2129_s2, %s2998_s25  ;;  %s2131_s0 = spop %2130 }
 0x349   : > { %900 = sst [smem:[#allocation6 + $0xc]] %s898_s30  ;;  %s926_s28 = sadd.s32 %s2131_s0, %s3000_s26 }
 0x34a   : > { %928 = sst [smem:[#allocation6 + $0xd]] %s926_s28  ;;  %p1354_p13 = scmp.ge.s32.totalorder %s3002_s3, %s898_s30 }
 0x34b   : > { %s1355_s19 = sadd.s32 %s926_s28, %s898_s30  ;;  %s2133_s24 = spop %2132 }
 0x34c   : > { %p1356_p0 = scmp.ge.s32.totalorder %s3002_s3, %s1355_s19  ;;  %s954_s13 = sadd.s32 %s2133_s24, %s3006_s27 }
 0x34d   : > { %s1359_s20 = scalar_select %p1354_p13, 1, 0 }
 0x34e   : > { %s1360_s10 = scalar_select %p1356_p0, 1, 0 }
 0x34f   : > { %s3811_s30 = smov (!%p1354_p13, %s898_s30), 0  ;;  %956 = sst [smem:[#allocation6 + $0xe]] %s954_s13 }
 0x350   : > { %s1361_s6 = sadd.s32 %s1360_s10, %s1359_s20  ;;  %s1365_s29 = ssub.s32 %s3002_s3, %s3811_s30 }
 0x351   : > { %s1357_s25 = sadd.s32 %s1355_s19, %s954_s13  ;;  %s3813_s28 = smov (!%p1356_p0, %s926_s28), 0 }
 0x352   : > { %p1358_p1 = scmp.ge.s32.totalorder %s3002_s3, %s1357_s25  ;;  %s2135_s26 = spop %2134 }
 0x353   : > { %s1367_s16 = ssub.s32 %s1365_s29, %s3813_s28  ;;  %s988_s8 = sadd.s32 %s2135_s26, %s3008_s5 }
 0x354   : > { %s1362_s14 = scalar_select %p1358_p1, 1, 0 }
 0x355   : > { %s3815_s13 = smov (!%p1358_p1, %s954_s13), 0  ;;  %990 = sst [smem:[#allocation6 + $0xf]] %s988_s8 }
 0x356   : > { %s1363_s27 = sadd.s32 %s1362_s14, %s1361_s6  ;;  %s1369_s1 = ssub.s32 %s1367_s16, %s3815_s13 }
 0x357   : > { %s3726_s2 = sld [smem:[#allocation20_spill]]  ;;  %s1371_s0 = sshll.u32 %s1363_s27, %s2451_s15 }
 0x358   : > { %s1372_s24 = sor.u32 %s2730_s4, %s1371_s0  ;;  %1374 = sst [smem:[#allocation3 + $0x4]] %s1369_s1 }
 0x359   : > { %1376 = sst [smem:[#allocation4 + $0x4]] %s1372_s24  ;;  %s2137_s30 = spop %2136 }
 0x35a   : > { %s1016_s19 = sadd.s32 %s2137_s30, %s3724_s17  ;;  %p1381_p2 = scmp.ge.s32.totalorder %s3725_s12, %s988_s8 }
 0x35b   : > { %1018 = sst [smem:[#allocation6 + $0x10]] %s1016_s19  ;;  %s3727_s3 = sld [smem:[#allocation21_spill]] }
 0x35c   : > { %s1382_s28 = sadd.s32 %s1016_s19, %s988_s8  ;;  %s2139_s5 = spop %2138 }
 0x35d   : > { %p1383_p3 = scmp.ge.s32.totalorder %s3725_s12, %s1382_s28  ;;  %s3817_s8 = smov (!%p1381_p2, %s988_s8), 0 }
 0x35e   : > { %s1386_s20 = scalar_select %p1381_p2, 1, 0 }
 0x35f   : > { %s1387_s10 = scalar_select %p1383_p3, 1, 0 }
 0x360   : > { %s1044_s13 = sadd.s32 %s2139_s5, %s3726_s2  ;;  %s3728_s29 = sld [smem:[#allocation15_spill]] }
 0x361   : > { %s1388_s6 = sadd.s32 %s1387_s10, %s1386_s20  ;;  %s1392_s25 = ssub.s32 %s3725_s12, %s3817_s8 }
 0x362   : > { %1046 = sst [smem:[#allocation6 + $0x11]] %s1044_s13  ;;  %s3819_s19 = smov (!%p1383_p3, %s1016_s19), 0 }
 0x363   : > { %s3729_s4 = sld [smem:[#allocation22_spill]]  ;;  %s1384_s26 = sadd.s32 %s1382_s28, %s1044_s13 }
 0x364   : > { %s2141_s17 = spop %2140  ;;  %s3730_s16 = sld [smem:[#allocation23_spill]] }
 0x365   : > { %s1394_s14 = ssub.s32 %s1392_s25, %s3819_s19  ;;  %p1385_p4 = scmp.ge.s32.totalorder %s3725_s12, %s1384_s26 }
 0x366   : > { %s1078_s27 = sadd.s32 %s2141_s17, %s3727_s3  ;;  %s2143_s1 = spop %2142 }
 0x367   : > { %s3731_s0 = sld [smem:[#allocation24_spill]]  ;;  %s3821_s13 = smov (!%p1385_p4, %s1044_s13), 0 }
 0x368   : > { %s1389_s24 = scalar_select %p1385_p4, 1, 0 }
 0x369   : > { %1080 = sst [smem:[#allocation6 + $0x12]] %s1078_s27  ;;  %s1396_s20 = ssub.s32 %s1394_s14, %s3821_s13 }
 0x36a   : > { %s1390_s30 = sadd.s32 %s1389_s24, %s1388_s6  ;;  %1401 = sst [smem:[#allocation3 + $0x5]] %s1396_s20 }
 0x36b   : > { %s1398_s2 = sshll.u32 %s1390_s30, %s2451_s15  ;;  %s1106_s28 = sadd.s32 %s2143_s1, %s3729_s4 }
 0x36c   : > { %s1399_s8 = sor.u32 %s3728_s29, %s1398_s2  ;;  %1108 = sst [smem:[#allocation6 + $0x13]] %s1106_s28 }
 0x36d   : > { %1403 = sst [smem:[#allocation4 + $0x5]] %s1399_s8  ;;  %p1408_p5 = scmp.ge.s32.totalorder %s3730_s16, %s1078_s27 }
 0x36e   : > { %s3732_s19 = sld [smem:[#allocation25_spill]]  ;;  %s1409_s12 = sadd.s32 %s1106_s28, %s1078_s27 }
 0x36f   : > { %s2145_s3 = spop %2144  ;;  %p1410_p6 = scmp.ge.s32.totalorder %s3730_s16, %s1409_s12 }
 0x370   : > { %s1134_s5 = sadd.s32 %s2145_s3, %s3731_s0  ;;  %s3823_s27 = smov (!%p1408_p5, %s1078_s27), 0 }
 0x371   : > { %s1413_s10 = scalar_select %p1408_p5, 1, 0 }
 0x372   : > { %s1414_s25 = scalar_select %p1410_p6, 1, 0 }
 0x373   : > { %s3733_s6 = sld [smem:[#allocation16_spill]]  ;;  %1136 = sst [smem:[#allocation6 + $0x14]] %s1134_s5 }
 0x374   : > { %s1415_s13 = sadd.s32 %s1414_s25, %s1413_s10  ;;  %s1419_s26 = ssub.s32 %s3730_s16, %s3823_s27 }
 0x375   : > { %s1411_s29 = sadd.s32 %s1409_s12, %s1134_s5  ;;  %s3825_s28 = smov (!%p1410_p6, %s1106_s28), 0 }
 0x376   : > { %p1412_p7 = scmp.ge.s32.totalorder %s3730_s16, %s1411_s29  ;;  %s2147_s4 = spop %2146 }
 0x377   : > { %s1421_s17 = ssub.s32 %s1419_s26, %s3825_s28  ;;  %s1168_s14 = sadd.s32 %s2147_s4, %s3732_s19 }
 0x378   : > { %s1416_s1 = scalar_select %p1412_p7, 1, 0 }
 0x379   : > { %s3827_s5 = smov (!%p1412_p7, %s1134_s5), 0  ;;  %1170 = sst [smem:[#allocation6 + $0x15]] %s1168_s14 }
 0x37a   : > { %s1417_s0 = sadd.s32 %s1416_s1, %s1415_s13  ;;  %s1423_s24 = ssub.s32 %s1421_s17, %s3827_s5 }
 0x37b   : > { %s3734_s30 = sld [smem:[#allocation14_spill]]  ;;  %s1425_s20 = sshll.u32 %s1417_s0, %s2451_s15 }
 0x37c   : > { %s1426_s27 = sor.u32 %s3733_s6, %s1425_s20  ;;  %1428 = sst [smem:[#allocation3 + $0x6]] %s1423_s24 }
 0x37d   : > { %1430 = sst [smem:[#allocation4 + $0x6]] %s1426_s27  ;;  %s2149_s2 = spop %2148 }
 0x37e   : > { %s1196_s16 = sadd.s32 %s2149_s2, %s3223_s22  ;;  %p1435_p8 = scmp.ge.s32.totalorder %s3211_s11, %s1168_s14 }
 0x37f   : > { %1198 = sst [smem:[#allocation6 + $0x16]] %s1196_s16  ;;  %s1436_s8 = sadd.s32 %s1196_s16, %s1168_s14 }
 0x380   : > { %p1437_p9 = scmp.ge.s32.totalorder %s3211_s11, %s1436_s8  ;;  %s2151_s28 = spop %2150 }
 0x381   : > { %s1440_s19 = scalar_select %p1435_p8, 1, 0 }
 0x382   : > { %s1441_s12 = scalar_select %p1437_p9, 1, 0 }
 0x383   : > { %s3829_s14 = smov (!%p1435_p8, %s1168_s14), 0  ;;  %s1224_s3 = sadd.s32 %s2151_s28, %s3236_s23 }
 0x384   : > { %s3735_s5 = sld [smem:[#allocation17_spill]]  ;;  %s1460_s10 = sor.u32 %s1459_s7, %s3734_s30 }
 0x385   : > { %s1442_s25 = sadd.s32 %s1441_s12, %s1440_s19  ;;  %1226 = sst [smem:[#allocation6 + $0x17]] %s1224_s3 }
 0x386   : > { %s3831_s16 = smov (!%p1437_p9, %s1196_s16), 0  ;;  %s1446_s22 = ssub.s32 %s3211_s11, %s3829_s14 }
 0x387   : > { %s1438_s6 = sadd.s32 %s1436_s8, %s1224_s3  ;;  %s1448_s13 = ssub.s32 %s1446_s22, %s3831_s16 }
 0x388   : > { %p1439_p10 = scmp.ge.s32.totalorder %s3211_s11, %s1438_s6  ;;  %s3833_s10 = smov (!%p384_p12, %s1460_s10), %s3225_s21 }
 0x389   : > { %1463 = sst [smem:[#allocation5]] %s3833_s10 }
 0x38a   : > { %s1443_s26 = scalar_select %p1439_p10, 1, 0 }
 0x38b   : > { %s3835_s3 = smov (!%p1439_p10, %s1224_s3), 0 }
 0x38c   : > { %s1444_s29 = sadd.s32 %s1443_s26, %s1442_s25  ;;  %s1450_s4 = ssub.s32 %s1448_s13, %s3835_s3 }
 0x38d   : > { %s1452_s17 = sshll.u32 %s1444_s29, %s2451_s15  ;;  %1455 = sst [smem:[#allocation3 + $0x7]] %s1450_s4 }
 0x38e   : > { %s1453_s1 = sor.u32 %s3735_s5, %s1452_s17 }
 0x38f   : > { %1457 = sst [smem:[#allocation4 + $0x7]] %s1453_s1 }
 0x390 PF: > { %p2059_p11 = scmp.ne.s32.totalorder %s2305_s9, 17 }
 0x391   : > { %s1492_s18 = sld [smem:[#allocation4]] (!%p2059_p11)  ;;  %s2061_s23 = sld [smem:[#allocation4 + $0x1]] (!%p2059_p11)  ;;  %vm3736_vm14 = vnez (!%p2059_p11), %v3614_v4  ;;  %vm3737_vm5 = vnez (!%p2059_p11), %v3616_v5  ;;  %vm3738_vm4 = vnez (!%p2059_p11), %v3618_v6  ;;  %vm3739_vm12 = vnez (!%p2059_p11), %v3620_v7 }
 0x392   : > { %1472 = sbr.rel (%p2059_p11) target bundleno = 1154 (0x482), region = 60  ;;  %s2063_s7 = sld [smem:[#allocation4 + $0x2]] (!%p2059_p11)  ;;  %vm3740_vm15 = vnez (!%p2059_p11), %v3622_v8  ;;  %vm3741_vm8 = vnez (!%p2059_p11), %v3624_v9  ;;  %vm3742_vm9 = vnez (!%p2059_p11), %v3626_v10  ;;  %vm3743_vm6 = vnez (!%p2059_p11), %v3628_v11 }
 0x393   : > { %s2065_s14 = sld [smem:[#allocation4 + $0x3]] (!%p2059_p11)  ;;  %s2060_s11 = sld [smem:[#allocation4 + $0x4]] (!%p2059_p11) }
 0x394   : > { %s2062_s0 = sld [smem:[#allocation4 + $0x5]] (!%p2059_p11)  ;;  %s2064_s21 = sld [smem:[#allocation4 + $0x6]] (!%p2059_p11) }
 0x395   : > { %s3287_s24 = sld [smem:[#allocation4 + $0x7]] (!%p2059_p11) }
 0x397   : > { %v1493_v47 = vstv (!%p2059_p11), %s1492_s18  ;;  %v1501_v35 = vstv (!%p2059_p11), %s2061_s23 }
 0x398   : > { %v1494_v32 = vsel (!%p2059_p11), %vm3736_vm14, %v1493_v47, 2147483648  ;;  %v1495_v48 = vsel (!%p2059_p11), %vm3737_vm5, %v1493_v47, 2147483648  ;;  %v1509_v53 = vstv (!%p2059_p11), %s2063_s7 }
 0x399   : > { %v1517_v51 = vstv %s2065_s14  ;;  %v1502_v50 = vsel %vm3738_vm4, %v1501_v35, %v1494_v32  ;;  %v1503_v41 = vsel %vm3739_vm12, %v1501_v35, %v1495_v48  ;;  %v1497_v49 = vstv %s2060_s11 }
 0x39a   : > { %v1505_v52 = vstv %s2062_s0  ;;  %v1510_v46 = vsel %vm3740_vm15, %v1509_v53, %v1502_v50  ;;  %v1511_v56 = vsel %vm3741_vm8, %v1509_v53, %v1503_v41  ;;  %v1498_v55 = vsel %vm3736_vm14, %v1497_v49, 2147483648 }
 0x39b   : > { %v1499_v42 = vsel %vm3737_vm5, %v1497_v49, 2147483648  ;;  %v1518_v57 = vsel %vm3742_vm9, %v1517_v51, %v1510_v46  ;;  %v1519_v63 = vsel %vm3743_vm6, %v1517_v51, %v1511_v56  ;;  %v1506_v61 = vsel %vm3738_vm4, %v1505_v52, %v1498_v55 }
 0x39c   : > { %v1507_v16 = vsel %vm3739_vm12, %v1505_v52, %v1499_v42  ;;  %vm1524_vm10 = vcmp.lt.s32.totalorder %v1518_v57, 0  ;;  %vm1525_vm13 = vcmp.lt.s32.totalorder %v1519_v63, 0  ;;  %v1526_v22 = vxor.u32 2147483648, %v1518_v57 }
 0x39d   : > { %v1527_v18 = vxor.u32 2147483648, %v1519_v63  ;;  %v1528_v19 = vxor.u32 4294967295, %v1518_v57  ;;  %v1529_v15 = vxor.u32 4294967295, %v1519_v63  ;;  %v1513_v21 = vstv %s2064_s21 }
 0x39e   : > { %v1521_v54 = vstv %s3287_s24  ;;  %v1514_v25 = vsel %vm3740_vm15, %v1513_v21, %v1506_v61  ;;  %v1515_v28 = vsel %vm3741_vm8, %v1513_v21, %v1507_v16 }
 0x39f   : > { %v1530_v12 = vsel %vm1524_vm10, %v1526_v22, %v1528_v19  ;;  %v1531_v60 = vsel %vm1525_vm13, %v1527_v18, %v1529_v15  ;;  %v1522_v59 = vsel %vm3742_vm9, %v1521_v54, %v1514_v25  ;;  %v1523_v24 = vsel %vm3743_vm6, %v1521_v54, %v1515_v28 }
 0x3a0   : > { %v1534_v30 = vsub.f32 %v2366_v0, %v1530_v12  ;;  %v1535_v13 = vsub.f32 %v2371_v1, %v1531_v60  ;;  %vm1538_vm11 = vcmp.lt.s32.totalorder %v1522_v59, 0  ;;  %vm1539_vm2 = vcmp.lt.s32.totalorder %v1523_v24, 0 }
 0x3a1   : > { %v1540_v26 = vxor.u32 2147483648, %v1522_v59  ;;  %v1541_v36 = vxor.u32 2147483648, %v1523_v24  ;;  %v1542_v29 = vxor.u32 4294967295, %v1522_v59  ;;  %v1543_v20 = vxor.u32 4294967295, %v1523_v24 }
 0x3a2   : > { %v1536_v37 = vand.u32 2147483647, %v1534_v30  ;;  %v1537_v33 = vand.u32 2147483647, %v1535_v13 }
 0x3a3   : > { %v1544_v58 = vsel %vm1538_vm11, %v1540_v26, %v1542_v29  ;;  %v1545_v39 = vsel %vm1539_vm2, %v1541_v36, %v1543_v20 }
 0x3a4   : > { %v1585_v31 = vsel %vm3738_vm4, %v1536_v37, 0.0  ;;  %v1586_v34 = vsel %vm3739_vm12, %v1537_v33, 0.0  ;;  %v1553_v40 = vsel %vm3736_vm14, %v1536_v37, 0.0  ;;  %v1554_v17 = vsel %vm3737_vm5, %v1537_v33, 0.0 }
 0x3a5   : > { %v1587_v43 = vadd.f32 %v1586_v34, %v1585_v31  ;;  %v1555_v14 = vadd.f32 %v1554_v17, %v1553_v40  ;;  %v1548_v23 = vsub.f32 %v2376_v2, %v1544_v58  ;;  %v1549_v44 = vsub.f32 %v2381_v3, %v1545_v39 }
 0x3a6   : > { %v1617_v62 = vsel %vm3740_vm15, %v1536_v37, 0.0  ;;  %v1618_v27 = vsel %vm3741_vm8, %v1537_v33, 0.0  ;;  %v1649_v55 = vsel %vm3742_vm9, %v1536_v37, 0.0  ;;  %v1650_v42 = vsel %vm3743_vm6, %v1537_v33, 0.0 }
 0x3a7   : > { %1588 = vadd.xlane.f32.xlu1 %v1587_v43  ;;  %1556 = vadd.xlane.f32.xlu0 %v1555_v14  ;;  %v1550_v38 = vand.u32 2147483647, %v1548_v23  ;;  %v1551_v45 = vand.u32 2147483647, %v1549_v44  ;;  %v1619_v52 = vadd.f32 %v1618_v27, %v1617_v62  ;;  %v1651_v63 = vadd.f32 %v1650_v42, %v1649_v55 }
 0x3a9   : > { %v1601_v47 = vsel %vm3738_vm4, %v1550_v38, 0.0  ;;  %v1602_v35 = vsel %vm3739_vm12, %v1551_v45, 0.0  ;;  %v1569_v32 = vsel %vm3736_vm14, %v1550_v38, 0.0  ;;  %v1570_v48 = vsel %vm3737_vm5, %v1551_v45, 0.0 }
 0x3aa   : > { %v1603_v53 = vadd.f32 %v1602_v35, %v1601_v47  ;;  %v1571_v51 = vadd.f32 %v1570_v48, %v1569_v32  ;;  %v1633_v50 = vsel %vm3740_vm15, %v1550_v38, 0.0  ;;  %v1634_v41 = vsel %vm3741_vm8, %v1551_v45, 0.0 }
 0x3ab   : > { %v1635_v49 = vadd.f32 %v1634_v41, %v1633_v50  ;;  %v1665_v46 = vsel %vm3742_vm9, %v1550_v38, 0.0  ;;  %v1666_v56 = vsel %vm3743_vm6, %v1551_v45, 0.0 }
 0x3ac   : > { %1604 = vadd.xlane.f32.xlu1 %v1603_v53  ;;  %1572 = vadd.xlane.f32.xlu0 %v1571_v51  ;;  %v1667_v57 = vadd.f32 %v1666_v56, %v1665_v46 }
 0x3b0   : > { %1636 = vadd.xlane.f32.xlu1 %v1635_v49  ;;  %1620 = vadd.xlane.f32.xlu0 %v1619_v52 }
 0x3b4   : > { %1668 = vadd.xlane.f32.xlu1 %v1667_v57  ;;  %1652 = vadd.xlane.f32.xlu0 %v1651_v63 }
 0x434   : > { %v1589_v61 = vpop.xlane.xlu1 %1588  ;;  %v1557_v16 = vpop.xlane.xlu0 %1556 }
 0x435   : > { %v1590_v22 = vrot.slane %v1589_v61, 4  ;;  %v1558_v18 = vrot.slane %v1557_v16, 4 }
 0x437   : > { %v1591_v19 = vadd.f32 %v1590_v22, %v1589_v61  ;;  %v1559_v15 = vadd.f32 %v1558_v18, %v1557_v16 }
 0x439   : > { %v1592_v21 = vrot.slane %v1591_v19, 2  ;;  %v1560_v54 = vrot.slane %v1559_v15, 2  ;;  %v1605_v25 = vpop.xlane.xlu1 %1604  ;;  %v1573_v28 = vpop.xlane.xlu0 %1572 }
 0x43a   : > { %v1606_v12 = vrot.slane %v1605_v25, 4  ;;  %v1574_v60 = vrot.slane %v1573_v28, 4 }
 0x43b   : > { %v1561_v59 = vadd.f32 %v1560_v54, %v1559_v15  ;;  %v1593_v29 = vadd.f32 %v1592_v21, %v1591_v19 }
 0x43c   : > { %v1607_v24 = vadd.f32 %v1606_v12, %v1605_v25  ;;  %v1575_v30 = vadd.f32 %v1574_v60, %v1573_v28 }
 0x43d   : > { %v1637_v13 = vpop.xlane.xlu1 %1636  ;;  %v1621_v26 = vpop.xlane.xlu0 %1620  ;;  %v1562_v36 = vrot.slane %v1561_v59, 1  ;;  %v1594_v23 = vrot.slane %v1593_v29, 1 }
 0x43e   : > { %v1608_v20 = vrot.slane %v1607_v24, 2  ;;  %v1576_v37 = vrot.slane %v1575_v30, 2  ;;  %v1638_v33 = vrot.slane %v1637_v13, 4  ;;  %v1622_v58 = vrot.slane %v1621_v26, 4 }
 0x43f   : > { %v1563_v39 = vadd.f32 %v1562_v36, %v1561_v59  ;;  %v1595_v50 = vadd.f32 %v1594_v23, %v1593_v29 }
 0x440   : > { %v1639_v31 = vadd.f32 %v1638_v33, %v1637_v13  ;;  %v1623_v34 = vadd.f32 %v1622_v58, %v1621_v26  ;;  %v1577_v40 = vadd.f32 %v1576_v37, %v1575_v30  ;;  %v1609_v17 = vadd.f32 %v1608_v20, %v1607_v24 }
 0x441   : > { %v1669_v43 = vpop.xlane.xlu1 %1668  ;;  %v1653_v14 = vpop.xlane.xlu0 %1652  ;;  %2152 = vpush %v1563_v39 }
 0x442   : > { %v1640_v44 = vrot.slane %v1639_v31, 2  ;;  %v1624_v38 = vrot.slane %v1623_v34, 2  ;;  %v1670_v45 = vrot.slane %v1669_v43, 4  ;;  %v1654_v62 = vrot.slane %v1653_v14, 4 }
 0x443   : > { %v1578_v27 = vrot.slane %v1577_v40, 1  ;;  %v1610_v47 = vrot.slane %v1609_v17, 1 }
 0x444   : > { %v1671_v35 = vadd.f32 %v1670_v45, %v1669_v43  ;;  %v1655_v32 = vadd.f32 %v1654_v62, %v1653_v14  ;;  %v1625_v48 = vadd.f32 %v1624_v38, %v1623_v34  ;;  %v1641_v53 = vadd.f32 %v1640_v44, %v1639_v31 }
 0x445   : > { %v1579_v51 = vadd.f32 %v1578_v27, %v1577_v40  ;;  %v1611_v41 = vadd.f32 %v1610_v47, %v1609_v17 }
 0x446   : > { %v1672_v49 = vrot.slane %v1671_v35, 2  ;;  %v1656_v52 = vrot.slane %v1655_v32, 2  ;;  %v1626_v46 = vrot.slane %v1625_v48, 1  ;;  %v1642_v56 = vrot.slane %v1641_v53, 1 }
 0x447   : > { %2154 = vpush %v1579_v51 }
 0x448   : > { %v1673_v55 = vadd.f32 %v1672_v49, %v1671_v35  ;;  %v1657_v42 = vadd.f32 %v1656_v52, %v1655_v32  ;;  %2156 = vpush %v1595_v50  ;;  %v1627_v57 = vadd.f32 %v1626_v46, %v1625_v48  ;;  %v1643_v63 = vadd.f32 %v1642_v56, %v1641_v53 }
 0x449   : > { %2158 = vpush %v1611_v41 }
 0x44a   : > { %2160 = vpush %v1627_v57  ;;  %v1658_v61 = vrot.slane %v1657_v42, 1  ;;  %v1674_v16 = vrot.slane %v1673_v55, 1 }
 0x44b   : > { %2162 = vpush %v1643_v63 }
 0x44c   : > { %v1659_v22 = vadd.f32 %v1658_v61, %v1657_v42  ;;  %v1675_v18 = vadd.f32 %v1674_v16, %v1673_v55 }
 0x44e   : > { %2164 = vpush %v1659_v22 }
 0x44f   : > { %2166 = vpush %v1675_v18 }
 0x472   : > { %s2153_s15 = spop %2152 }
 0x473   : > { %1567 = sst [smem:[#allocation7]] %s2153_s15 }
 0x478   : > { %s2155_s30 = spop %2154 }
 0x479   : > { %s2157_s20 = spop %2156  ;;  %1583 = sst [smem:[#allocation7 + $0x4]] %s2155_s30 }
 0x47a   : > { %s2159_s27 = spop %2158  ;;  %1599 = sst [smem:[#allocation7 + $0x1]] %s2157_s20 }
 0x47b   : > { %s2161_s2 = spop %2160  ;;  %1615 = sst [smem:[#allocation7 + $0x5]] %s2159_s27 }
 0x47c   : > { %s2163_s16 = spop %2162  ;;  %1631 = sst [smem:[#allocation7 + $0x2]] %s2161_s2 }
 0x47d   : > { %1647 = sst [smem:[#allocation7 + $0x6]] %s2163_s16 }
 0x47f   : > { %s2165_s8 = spop %2164 }
 0x480   : > { %s2167_s28 = spop %2166  ;;  %1663 = sst [smem:[#allocation7 + $0x3]] %s2165_s8 }
 0x481   : > { %1679 = sst [smem:[#allocation7 + $0x7]] %s2167_s28 }
 0x482 PF: > { %p2074_p12 = scmp.ne.s32.totalorder %s2305_s9, 18 }
 0x483   : > { %s3359_s19 = sld [smem:[#allocation2]] (!%p2074_p12)  ;;  %s3362_s3 = sld [smem:[#allocation2 + $0x1]] (!%p2074_p12)  ;;  %vm3744_vm3 = vnez (!%p2074_p12), %v3614_v4  ;;  %vm3745_vm7 = vnez (!%p2074_p12), %v3616_v5  ;;  %vm3746_vm1 = vnez (!%p2074_p12), %v3618_v6  ;;  %vm3747_vm0 = vnez (!%p2074_p12), %v3620_v7 }
 0x484   : > { %1683 = sbr.rel (%p2074_p12) target bundleno = 1726 (0x6be), region = 68  ;;  %s1695_s5 = sld [smem:[#allocation7]] (!%p2074_p12)  ;;  %vm3748_vm14 = vnez (!%p2074_p12), %v3622_v8  ;;  %vm3749_vm5 = vnez (!%p2074_p12), %v3624_v9  ;;  %vm3750_vm4 = vnez (!%p2074_p12), %v3626_v10  ;;  %vm3751_vm12 = vnez (!%p2074_p12), %v3628_v11 }
 0x485   : > { %s2075_s10 = sld [smem:[#allocation7 + $0x4]] (!%p2074_p12)  ;;  %s3372_s29 = sld [smem:[#allocation2 + $0x2]] (!%p2074_p12)  ;;  %v2325_v11 = vmov (!%p2074_p12), 0.0  }
 0x486   : > { %s2078_s4 = sld [smem:[#allocation7 + $0x1]] (!%p2074_p12)  ;;  %s2079_s1 = sld [smem:[#allocation7 + $0x5]] (!%p2074_p12)  ;;  %1687 = vst [vmem:[#allocation8] sm:$0x1] (!%p2074_p12), %v2325_v11 }
 0x487   : > { %s3395_s30 = sld [smem:[#allocation2 + $0x3]] (!%p2074_p12)  ;;  %s2083_s20 = sld [smem:[#allocation7 + $0x2]] (!%p2074_p12) }
 0x488   : > { %s2084_s2 = sld [smem:[#allocation7 + $0x6]] (!%p2074_p12) }
 0x489   : > { %s1690_s12 = scvt.s32.f32 (!%p2074_p12), %s3359_s19  ;;  %p1689_p13 = scmp.gt.s32.totalorder (!%p2074_p12), %s3359_s19, 0 }
 0x48a   : > { %s1729_s22 = scvt.s32.f32 (!%p2074_p12), %s3362_s3  ;;  %p1728_p0 = scmp.gt.s32.totalorder (!%p2074_p12), %s3362_s3, 0 }
 0x48b   : > { %v1691_v19 = vstv %s1690_s12  ;;  %s1768_s23 = scvt.s32.f32 %s3372_s29  ;;  %p1767_p1 = scmp.gt.s32.totalorder %s3372_s29, 0 }
 0x48c   : > { %2237 = vrcp.f32 %v1691_v19  ;;  %v1730_v21 = vstv %s1729_s22 }
 0x48d   : > { %2239 = vrcp.f32 %v1730_v21  ;;  %v1769_v59 = vstv %s1768_s23  ;;  %s1807_s28 = scvt.s32.f32 %s3395_s30  ;;  %p1806_p2 = scmp.gt.s32.totalorder %s3395_s30, 0 }
 0x48e   : > { %s1710_s23 = sld [smem:[#allocation4]] }
 0x48f   : > { %v1808_v47 = vstv %s1807_s28 }
 0x496   : > { %v2238_v15 = vpop.eup %2237 }
 0x497   : > { %2168 = vpush %v2238_v15  ;;  %v2240_v28 = vpop.eup %2239 }
 0x4c8   : > { %s2169_s25 = spop %2168 }
 0x4c9   : > { %s3837_s25 = smov (!%p1689_p13, %s2169_s25), 0.0 }
 0x4ca   : > { %s1696_s9 = smul.f32 %s1695_s5, %s3837_s25 }
 0x4cb   : > { %s1698_s6 = smul.f32 %s2075_s10, %s3837_s25 }
 0x4cc   : > { %s1704_s13 = sadd.f32 1e-06, %s1696_s9  ;;  %s1709_s7 = smul.f32 0.25, %s3837_s25 }
 0x4cd   : > { %s1699_s26 = sadd.f32 1e-06, %s1698_s6  ;;  %s2088_s25 = sld [smem:[#allocation7 + $0x3]] }
 0x4ce   : > { %v1705_v54 = vstv %s1704_s13  ;;  %v1724_v24 = vstv %s1709_s7  ;;  %s2089_s9 = sld [smem:[#allocation7 + $0x7]]  ;;  %s2081_s7 = sld [smem:[#allocation4 + $0x5]] }
 0x4cf   : > { %v1700_v25 = vstv %s1699_s26  ;;  %2241 = vrcp.f32 %v1705_v54  ;;  %v1725_v26 = vsel %vm3744_vm3, %v1724_v24, 0.0  ;;  %v1726_v36 = vsel %vm3745_vm7, %v1724_v24, 0.0 }
 0x4d0   : > { %2243 = vrcp.f32 %v1700_v25  ;;  %v1711_v54 = vstv %s1710_s23 }
 0x4d1   : > { %2245 = vrcp.f32 %v1769_v59  ;;  %v1713_v59 = vsel %vm3745_vm7, %v1711_v54, 2147483648 }
 0x4d9   : > { %v2242_v12 = vpop.eup %2241 }
 0x4da   : > { %v2244_v60 = vpop.eup %2243 }
 0x4db   : > { %2170 = vpush %v2244_v60  ;;  %v2246_v33 = vpop.eup %2245  ;;  %v1712_v60 = vsel %vm3744_vm3, %v1711_v54, 2147483648 }
 0x4dc   : > { %2172 = vpush %v2242_v12  ;;  %v1754_v12 = vstv %s2081_s7 }
 0x4dd   : > { %2174 = vpush %v2240_v28 }
 0x50c   : > { %s3374_s17 = spop %2170 }
 0x50d   : > { %s3377_s18 = spop %2172  ;;  %s3841_s17 = smov (!%p1689_p13, %s3374_s17), 0.0 }
 0x50e   : > { %s2175_s14 = spop %2174  ;;  %s3843_s18 = smov (!%p1689_p13, %s3377_s18), 0.0  ;;  %v1718_v31 = vstv %s3841_s17 }
 0x50f   : > { %s3839_s14 = smov (!%p1728_p0, %s2175_s14), 0.0  ;;  %v1721_v34 = vstv %s3843_s18  ;;  %v1719_v40 = vsel %vm3744_vm3, %v1718_v31, 0.0  ;;  %v1720_v17 = vsel %vm3745_vm7, %v1718_v31, 0.0  ;;  %s2076_s18 = sld [smem:[#allocation4 + $0x4]] }
 0x510   : > { %s1735_s11 = smul.f32 %s2078_s4, %s3839_s14  ;;  %v1722_v44 = vsel %vm3744_vm3, %v1721_v34, 0.0  ;;  %v1723_v38 = vsel %vm3745_vm7, %v1721_v34, 0.0 }
 0x511   : > { %s1737_s0 = smul.f32 %s2079_s1, %s3839_s14 }
 0x512   : > { %s1743_s21 = sadd.f32 1e-06, %s1735_s11  ;;  %s1748_s24 = smul.f32 0.25, %s3839_s14 }
 0x513   : > { %s1738_s15 = sadd.f32 1e-06, %s1737_s0  ;;  %s2080_s14 = sld [smem:[#allocation4 + $0x1]] }
 0x514   : > { %v1744_v30 = vstv %s1743_s21  ;;  %v1763_v13 = vstv %s1748_s24  ;;  %s2086_s11 = sld [smem:[#allocation4 + $0x6]]  ;;  %s2085_s0 = sld [smem:[#allocation4 + $0x2]] }
 0x515   : > { %v1739_v29 = vstv %s1738_s15  ;;  %2247 = vrcp.f32 %v1744_v30  ;;  %v3389_v20 = vsel %vm3746_vm1, %v1763_v13, %v1725_v26  ;;  %v3393_v37 = vsel %vm3747_vm0, %v1763_v13, %v1726_v36  ;;  %s2091_s21 = sld [smem:[#allocation4 + $0x7]]  ;;  %s2090_s24 = sld [smem:[#allocation4 + $0x3]] }
 0x516   : > { %2249 = vrcp.f32 %v1739_v29  ;;  %v1715_v21 = vstv %s2076_s18 }
 0x517   : > { %2251 = vrcp.f32 %v1808_v47  ;;  %v1716_v25 = vsel %vm3744_vm3, %v1715_v21, 2147483648  ;;  %v1717_v28 = vsel %vm3745_vm7, %v1715_v21, 2147483648 }
 0x518   : > { %v1755_v30 = vsel %vm3746_vm1, %v1754_v12, %v1716_v25  ;;  %v1756_v13 = vsel %vm3747_vm0, %v1754_v12, %v1717_v28 }
 0x519   : > { %v1750_v24 = vstv %s2080_s14 }
 0x51a   : > { %v1793_v26 = vstv %s2086_s11  ;;  %v1751_v36 = vsel %vm3746_vm1, %v1750_v24, %v1712_v60  ;;  %v1752_v29 = vsel %vm3747_vm0, %v1750_v24, %v1713_v59  ;;  %v1892_v60 = vld [vmem:[#allocation8] sm:$0x1] }
 0x51b   : > { %v1794_v4 = vsel %vm3748_vm14, %v1793_v26, %v1755_v30  ;;  %v1795_v5 = vsel %vm3749_vm5, %v1793_v26, %v1756_v13 }
 0x51f   : > { %v2248_v58 = vpop.eup %2247 }
 0x520   : > { %v2250_v39 = vpop.eup %2249 }
 0x521   : > { %2176 = vpush %v2250_v39  ;;  %v2252_v50 = vpop.eup %2251  ;;  %v1828_v39 = vstv %s2090_s24 }
 0x522   : > { %2178 = vpush %v2248_v58 }
 0x523   : > { %2180 = vpush %v2246_v33 }
 0x552   : > { %s2177_s27 = spop %2176 }
 0x553   : > { %s3845_s27 = smov (!%p1728_p0, %s2177_s27), 0.0  ;;  %s2179_s16 = spop %2178 }
 0x554   : > { %v1757_v43 = vstv %s3845_s27  ;;  %s3847_s16 = smov (!%p1728_p0, %s2179_s16), 0.0  ;;  %s2181_s8 = spop %2180 }
 0x555   : > { %v1758_v14 = vsel %vm3746_vm1, %v1757_v43, %v1719_v40  ;;  %v1759_v23 = vsel %vm3747_vm0, %v1757_v43, %v1720_v17  ;;  %v1760_v45 = vstv %s3847_s16  ;;  %s3849_s8 = smov (!%p1767_p1, %s2181_s8), 0.0 }
 0x556   : > { %v1761_v62 = vsel %vm3746_vm1, %v1760_v45, %v1722_v44  ;;  %v1762_v27 = vsel %vm3747_vm0, %v1760_v45, %v1723_v38  ;;  %s1774_s19 = smul.f32 %s2083_s20, %s3849_s8 }
 0x557   : > { %s1776_s12 = smul.f32 %s2084_s2, %s3849_s8 }
 0x558   : > { %s1782_s3 = sadd.f32 1e-06, %s1774_s19  ;;  %s1787_s5 = smul.f32 0.25, %s3849_s8 }
 0x559   : > { %s1777_s10 = sadd.f32 1e-06, %s1776_s12 }
 0x55a   : > { %v1783_v35 = vstv %s1782_s3  ;;  %v1802_v32 = vstv %s1787_s5 }
 0x55b   : > { %v1778_v48 = vstv %s1777_s10  ;;  %2253 = vrcp.f32 %v1783_v35  ;;  %v1803_v53 = vsel %vm3748_vm14, %v1802_v32, %v3389_v20  ;;  %v1804_v51 = vsel %vm3749_vm5, %v1802_v32, %v3393_v37 }
 0x55c   : > { %2255 = vrcp.f32 %v1778_v48  ;;  %v1789_v20 = vstv %s2085_s0  ;;  %v1832_v37 = vstv %s2091_s21 }
 0x55d   : > { %v1790_v33 = vsel %vm3748_vm14, %v1789_v20, %v1751_v36  ;;  %v1791_v58 = vsel %vm3749_vm5, %v1789_v20, %v1752_v29  ;;  %v1833_v6 = vsel %vm3750_vm4, %v1832_v37, %v1794_v4  ;;  %v1834_v7 = vsel %vm3751_vm12, %v1832_v37, %v1795_v5 }
 0x55e   : > { %v1829_v31 = vsel %vm3750_vm4, %v1828_v39, %v1790_v33  ;;  %v1830_v34 = vsel %vm3751_vm12, %v1828_v39, %v1791_v58  ;;  %v1856_v40 = vxor.u32 2147483648, %v1833_v6  ;;  %v1857_v17 = vxor.u32 2147483648, %v1834_v7 }
 0x55f   : > { %v1858_v8 = vxor.u32 4294967295, %v1833_v6  ;;  %v1859_v43 = vxor.u32 4294967295, %v1834_v7  ;;  %vm1854_vm15 = vcmp.lt.s32.totalorder %v1833_v6, 0  ;;  %vm1855_vm8 = vcmp.lt.s32.totalorder %v1834_v7, 0 }
 0x560   : > { %v1846_v9 = vxor.u32 2147483648, %v1829_v31  ;;  %v1849_v44 = vxor.u32 4294967295, %v1830_v34  ;;  %vm1844_vm9 = vcmp.lt.s32.totalorder %v1829_v31, 0  ;;  %vm1845_vm6 = vcmp.lt.s32.totalorder %v1830_v34, 0 }
 0x561   : > { %v1860_v38 = vsel %vm1854_vm15, %v1856_v40, %v1858_v8  ;;  %v1861_v45 = vsel %vm1855_vm8, %v1857_v17, %v1859_v43 }
 0x562   : > { %v1864_v47 = vsub.f32 %v2376_v2, %v1860_v38  ;;  %v1865_v35 = vsub.f32 %v2381_v3, %v1861_v45 }
 0x565   : > { %v2254_v41 = vpop.eup %2253 }
 0x566   : > { %v2256_v49 = vpop.eup %2255 }
 0x567   : > { %2182 = vpush %v2256_v49 }
 0x568   : > { %2184 = vpush %v2254_v41 }
 0x569   : > { %2186 = vpush %v2252_v50 }
 0x598   : > { %s2183_s22 = spop %2182 }
 0x599   : > { %s3851_s22 = smov (!%p1767_p1, %s2183_s22), 0.0  ;;  %s2185_s6 = spop %2184 }
 0x59a   : > { %v1796_v52 = vstv %s3851_s22  ;;  %s3853_s6 = smov (!%p1767_p1, %s2185_s6), 0.0  ;;  %s2187_s13 = spop %2186 }
 0x59b   : > { %v3440_v46 = vsel %vm3748_vm14, %v1796_v52, %v1758_v14  ;;  %v3444_v56 = vsel %vm3749_vm5, %v1796_v52, %v1759_v23  ;;  %v1799_v55 = vstv %s3853_s6  ;;  %s3855_s13 = smov (!%p1806_p2, %s2187_s13), 0.0  ;;  %v1847_v14 = vxor.u32 2147483648, %v1830_v34 }
 0x59c   : > { %v3450_v42 = vsel %vm3748_vm14, %v1799_v55, %v1761_v62  ;;  %v3454_v57 = vsel %vm3749_vm5, %v1799_v55, %v1762_v27  ;;  %s1813_s26 = smul.f32 %s2088_s25, %s3855_s13  ;;  %v1848_v23 = vxor.u32 4294967295, %v1829_v31 }
 0x59d   : > { %s1815_s29 = smul.f32 %s2089_s9, %s3855_s13  ;;  %v1851_v27 = vsel %vm1845_vm6, %v1847_v14, %v1849_v44 }
 0x59e   : > { %s1821_s4 = sadd.f32 1e-06, %s1813_s26  ;;  %s1826_s17 = smul.f32 0.25, %s3855_s13  ;;  %v1850_v62 = vsel %vm1844_vm9, %v1846_v9, %v1848_v23 }
 0x59f   : > { %s1816_s1 = sadd.f32 1e-06, %s1815_s29  ;;  %v1868_v48 = vsub.f32 %v2366_v0, %v1850_v62 }
 0x5a0   : > { %v1822_v63 = vstv %s1821_s4  ;;  %v1841_v61 = vstv %s1826_s17 }
 0x5a1   : > { %v1817_v16 = vstv %s1816_s1  ;;  %2257 = vrcp.f32 %v1822_v63  ;;  %v3458_v22 = vsel %vm3750_vm4, %v1841_v61, %v1803_v53  ;;  %v3462_v18 = vsel %vm3751_vm12, %v1841_v61, %v1804_v51 }
 0x5a2   : > { %2259 = vrcp.f32 %v1817_v16  ;;  %v1869_v53 = vsub.f32 %v2371_v1, %v1851_v27  ;;  %vm1874_vm10 = vcmp.gt.f32.partialorder %v3458_v22, 0.0  ;;  %vm1875_vm13 = vcmp.gt.f32.partialorder %v3462_v18, 0.0 }
 0x5ab   : > { %v2258_v19 = vpop.eup %2257 }
 0x5ac   : > { %v2260_v15 = vpop.eup %2259 }
 0x5ad   : > { %2188 = vpush %v2260_v15 }
 0x5ae   : > { %2190 = vpush %v2258_v19 }
 0x5de   : > { %s2189_s15 = spop %2188 }
 0x5df   : > { %s3857_s15 = smov (!%p1806_p2, %s2189_s15), 0.0  ;;  %s2191_s20 = spop %2190 }
 0x5e0   : > { %v1835_v32 = vstv %s3857_s15  ;;  %s3859_s20 = smov (!%p1806_p2, %s2191_s20), 0.0 }
 0x5e1   : > { %v1836_v51 = vsel %vm3750_vm4, %v1835_v32, %v3440_v46  ;;  %v1837_v50 = vsel %vm3751_vm12, %v1835_v32, %v3444_v56  ;;  %v1838_v49 = vstv %s3859_s20 }
 0x5e2   : > { %v1866_v41 = vmul.f32 %v1864_v47, %v1836_v51  ;;  %v1867_v2 = vmul.f32 %v1865_v35, %v1837_v50  ;;  %v1839_v3 = vsel %vm3750_vm4, %v1838_v49, %v3450_v42  ;;  %v1840_v0 = vsel %vm3751_vm12, %v1838_v49, %v3454_v57 }
 0x5e3   : > { %v1870_v1 = vmul.f32 %v1868_v48, %v1839_v3  ;;  %v1871_v52 = vmul.f32 %v1869_v53, %v1840_v0 }
 0x5e5   : > { %v1872_v55 = vsub.f32 %v1866_v41, %v1870_v1  ;;  %v1873_v63 = vsub.f32 %v1867_v2, %v1871_v52 }
 0x5e7   : > { %v1876_v46 = vand.u32 2147483647, %v1872_v55  ;;  %v1877_v61 = vand.u32 2147483647, %v1873_v63 }
 0x5e9   : > { %v1878_v16 = vmul.f32 %v1876_v46, %v3458_v22  ;;  %v1879_v56 = vmul.f32 %v1877_v61, %v3462_v18 }
 0x5eb   : > { %v1880_v10 = vsel %vm1874_vm10, %v1878_v16, 0.0  ;;  %v1881_v42 = vsel %vm1875_vm13, %v1879_v56, 0.0 }
 0x5ec   : > { %v1882_v19 = vadd.f32 %v1881_v42, %v1880_v10 }
 0x5ee   : > { %1883 = vadd.xlane.f32.xlu0 %v1882_v19 }
 0x67b   : > { %v1884_v57 = vpop.xlane.xlu0 %1883 }
 0x67c   : > { %v1885_v15 = vrot.slane %v1884_v57, 4 }
 0x67e   : > { %v1886_v21 = vadd.f32 %v1885_v15, %v1884_v57 }
 0x680   : > { %v1887_v54 = vrot.slane %v1886_v21, 2 }
 0x682   : > { %v1888_v25 = vadd.f32 %v1887_v54, %v1886_v21 }
 0x684   : > { %v1889_v28 = vrot.slane %v1888_v25, 1 }
 0x686   : > { %v1890_v12 = vadd.f32 %v1889_v28, %v1888_v25 }
 0x688   : > { %2192 = vpush %v1890_v12 }
 0x6b9   : > { %s2193_s30 = spop %2192 }
 0x6ba   : > { %v1893_v59 = vstv %s2193_s30 }
 0x6bb   : > { %v1894_v22 = vadd.f32 %v1893_v59, %v1892_v60 }
 0x6bd   : > { %1895 = vst [vmem:[#allocation8] sm:$0x1] %v1894_v22 }
 0x6be PF: > { %s3752_s27 = sld [smem:[#allocation12_spill]]  ;;  %s2326_s8 = smov [#allocation8]  }
 0x6bf   : > { %s1903_s28 = sshll.u32 %s2326_s8, 4  ;;  %s1904_s28 = int_to_ptr.vmem [resolvable:$true] %s1903_s28 }
 0x6c0   : > { %s2261_s19 = scalar_lea.vmem %s1904_s28, 16  ;;  %s2267_s12 = scalar_lea.vmem %s1904_s28, 32 }
 0x6c1   : > { %p2262_p4 = scmp.ne.s32.totalorder %s1904_s28, %s2261_s19  ;;  %p2268_p7 = scmp.lt.s32.totalorder %s1904_s28, %s1904_s28 }
 0x6c2   : > { %p2269_p8 = scmp.lt.s32.totalorder %s2267_s12, %s2261_s19 }
 0x6c4   : > { %s3753_s2 = sadd.s32 4294967295, %s3752_s27   ;;  %p2270_p9 = por %p2269_p8, %p2268_p7 }
 0x6c5   : > { %p3522_p3 = scmp.eq.s32.totalorder %s3753_s2, 18 }
 0x6c7   : > { %p2263_p5 = pnand %p2262_p4, %p3522_p3 }
 0x6c9   : > { %p2264_p6 = pneg %p2263_p5 }
 0x6cb   : > { %p2271_p10 = pnand %p2270_p9, %p2264_p6 }
 0x6cd   : > { %2274 = shalt.err (!%p2271_p10)
}
 0x6ce   : > { %s3755_s10 = sld [smem:[#allocation28_spill]] }
 0x6d4   : > { %s3756_s25 = smov %s3755_s10  ;;  %s2275_s22 = scalar_lea.hbm %s3755_s10, 16 }
 0x6d5   : > { %p2276_p11 = scmp.ne.s32.totalorder %s3756_s25, %s2275_s22  ;;  %p2281_p0 = scmp.lt.u32.totalorder %s2275_s22, %s3756_s25 }
 0x6d7   : > { %p2277_p12 = pnand %p2276_p11, %p3522_p3 }
 0x6d9   : > { %p2278_p13 = pneg %p2277_p12 }
 0x6db   : > { %p2283_p1 = pnand %p2281_p0, %p2278_p13 }
 0x6dd   : > { %2286 = shalt.err (!%p2283_p1)
}
 0x6de   : > { %2195 = dma.vmem_to_hbm [thread:$0]  (%p3522_p3), %s1904_s28, 16, %s3756_s25, [#allocation9]  }
 0x6df   : > { %2300 = dma.done.wait (%p3522_p3), [#allocation9], 16  }
 0x6e0   : > { %2302 = vsyncadd (%p3522_p3), [#allocation9], 4294967280 }
 0x6e1 PF: > { %s3757_s17 = sld [smem:[#allocation12_spill]]  ;;  %s3758_s9 = sld [smem:[#allocation11_spill]] }
 0x6e2   : > { %s3759_s10 = sld [smem:[#allocation13_spill]] }
 0x6e7   : > { %s13_s11 = sadd.s32 1, %s3757_s17  }
 0x6e8   : > { %p10_p2 = scmp.ge.s32.totalorder %s13_s11, 21  }
 0x6ea   :  { %12 = sbr.rel (!%p10_p2) target bundleno = 6 (0x6), region = 210 }
 0x6f1   :  { %1916 = vsyncpa [#allocation9], 1 }
 0x6f2   :  { %1918 = vsyncpa [#allocation9 + $0x1], 1 }

</bundles_post_ra>
